<compile_context>
chip_gen: v7x
topology: tpu7x:2x2x1
jax: 0.10.0
libtpu: 0.0.40
codegen_flags: <defaults>
</compile_context>

<pallas_src>
import functools

import jax
import jax.numpy as jnp
from jax.experimental import pallas as pl
from jax.experimental.pallas import tpu as pltpu

CPAD = 128  # lane-dense channel width used everywhere inside the kernels

VGG_MEAN = jnp.array([0.485, 0.456, 0.406], dtype=jnp.float32)
VGG_STD = jnp.array([0.229, 0.224, 0.225], dtype=jnp.float32)


# ----------------------------------------------------------------------------
# Fused content-feature trunk kernel
#   normalize -> conv3x3+relu -> conv3x3+relu -> 2x2 maxpool -> conv3x3+relu
# ----------------------------------------------------------------------------
def _trunk_kernel(x_ref, stat_ref, w_ref, b_ref, o_ref, pad_ref):
    # x_ref   : (1, H, W, CPAD)        f32  channel-padded input image
    # stat_ref: (2, 1, CPAD)           f32  [mean, 1/std] (zeros in padding)
    # w_ref   : (3, 9*CPAD, CPAD)      bf16 conv weights, im2col layout
    # b_ref   : (3, 1, CPAD)           f32  conv biases
    # o_ref   : (1, H//2, W//2, CPAD)  f32  content feature
    # pad_ref : (H+2, W+2, CPAD)       f32  VMEM scratch (zero-padded activations)
    H, W = x_ref.shape[1], x_ref.shape[2]
    Hp, Wp = H // 2, W // 2

    def conv3x3_relu(hh, ww, layer):
        # im2col over the zero-padded scratch window -> ONE fat MXU matmul.
        pv = pad_ref[0:hh + 2, 0:ww + 2, :]                       # (hh+2, ww+2, C)
        cols = [pv[dy:dy + hh, dx:dx + ww, :]
                for dy in range(3) for dx in range(3)]
        patch = jnp.concatenate(cols, axis=-1).reshape(hh * ww, 9 * CPAD)
        acc = jnp.dot(patch.astype(jnp.bfloat16), w_ref[layer],
                      preferred_element_type=jnp.float32)         # (hh*ww, CPAD)
        acc = jnp.maximum(acc + b_ref[layer], 0.0)                # bias+ReLU (f32)
        return acc.reshape(hh, ww, CPAD)

    # Zero the scratch once; the 1-pixel border then stays zero for every layer.
    pad_ref[...] = jnp.zeros_like(pad_ref)

    # Fused VGG normalization (padded channels have inv_std == 0 -> stay zero).
    xn = (x_ref[0] - stat_ref[0]) * stat_ref[1]
    pad_ref[1:H + 1, 1:W + 1, :] = xn
    a1 = conv3x3_relu(H, W, 0)

    pad_ref[1:H + 1, 1:W + 1, :] = a1
    a2 = conv3x3_relu(H, W, 1)

    # Fused 2x2 / stride-2 max-pool (truncating, like nn.MaxPool2d).
    a2 = a2[0:2 * Hp].reshape(Hp, 2, W, CPAD)
    a2 = jnp.maximum(a2[:, 0], a2[:, 1])                          # (Hp, W, C)
    a2 = a2[:, 0:2 * Wp].reshape(Hp, Wp, 2, CPAD)
    pooled = jnp.maximum(a2[:, :, 0], a2[:, :, 1])                # (Hp, Wp, C)

    # Third conv runs on a sub-window of the same scratch buffer.
    pad_ref[0:Hp + 2, 0:Wp + 2, :] = jnp.zeros((Hp + 2, Wp + 2, CPAD), jnp.float32)
    pad_ref[1:Hp + 1, 1:Wp + 1, :] = pooled
    o_ref[0] = conv3x3_relu(Hp, Wp, 2)


def content_trunk(params, image_nchw):
    """(N, 3, H, W) image -> (N, H//2, W//2, CPAD) content feature (f32)."""
    stat, w_stack, b_stack = params
    x = jnp.transpose(image_nchw, (0, 2, 3, 1)).astype(jnp.float32)   # NHWC
    N, H, W, C = x.shape
    # One-time (tiny) channel pad of the 3-channel input up to the lane width;
    # spatial padding happens inside the kernel's VMEM scratch, not in HBM.
    x = jnp.pad(x, ((0, 0), (0, 0), (0, 0), (0, CPAD - C)))
    Hp, Wp = H // 2, W // 2
    # TODO(synk): for large spatial sizes, tile the trunk over H with halos so
    # per-image activations stay inside the scoped VMEM budget (v7x: 64 MiB).
    return pl.pallas_call(
        _trunk_kernel,
        out_shape=jax.ShapeDtypeStruct((N, Hp, Wp, CPAD), jnp.float32),
        grid=(N,),
        in_specs=[
            pl.BlockSpec((1, H, W, CPAD), lambda n: (n, 0, 0, 0)),
            pl.BlockSpec((2, 1, CPAD), lambda n: (0, 0, 0)),
            pl.BlockSpec((3, 9 * CPAD, CPAD), lambda n: (0, 0, 0)),
            pl.BlockSpec((3, 1, CPAD), lambda n: (0, 0, 0)),
        ],
        out_specs=pl.BlockSpec((1, Hp, Wp, CPAD), lambda n: (n, 0, 0, 0)),
        scratch_shapes=[pltpu.VMEM((H + 2, W + 2, CPAD), jnp.float32)],
        compiler_params=pltpu.CompilerParams(dimension_semantics=("parallel",)),
    )(x, stat, w_stack, b_stack)


# ----------------------------------------------------------------------------
# Tiled MSE (mean reduction) kernel
# ----------------------------------------------------------------------------
def _mse_kernel(a_ref, b_ref, o_ref, acc_ref, *, inv_n):
    step = pl.program_id(0)

    @pl.when(step == 0)
    def _():
        acc_ref[0, 0] = 0.0

    d = a_ref[...] - b_ref[...]
    acc_ref[0, 0] += jnp.sum(d * d)

    @pl.when(step == pl.num_programs(0) - 1)
    def _():
        o_ref[0, 0] = acc_ref[0, 0] * inv_n


def mse_loss(a, b):
    """nn.MSELoss() (mean reduction) as a tiled Pallas accumulate-reduce."""
    assert a.shape == b.shape
    inv_n = 1.0 / float(a.size)
    lanes = a.shape[-1]
    a2 = a.reshape(-1, lanes).astype(jnp.float32)
    b2 = b.reshape(-1, lanes).astype(jnp.float32)
    M = a2.shape[0]
    tm = M
    for cand in (2048, 1024, 512, 256, 128, 64, 32, 16, 8):
        if cand <= M and M % cand == 0:
            tm = cand
            break
    out = pl.pallas_call(
        functools.partial(_mse_kernel, inv_n=inv_n),
        out_shape=jax.ShapeDtypeStruct((1, 1), jnp.float32),
        grid=(M // tm,),
        in_specs=[pl.BlockSpec((tm, lanes), lambda i: (i, 0)),
                  pl.BlockSpec((tm, lanes), lambda i: (i, 0))],
        out_specs=pl.BlockSpec((1, 1), lambda i: (0, 0),
                               memory_space=pltpu.MemorySpace.SMEM),
        scratch_shapes=[pltpu.SMEM((1, 1), jnp.float32)],
        compiler_params=pltpu.CompilerParams(dimension_semantics=("arbitrary",)),
    )(a2, b2)
    return out[0, 0]


# ----------------------------------------------------------------------------
# Synthetic VGG-style parameters (pre-packed in the kernel's im2col layout)
# ----------------------------------------------------------------------------
def init_vgg_params(key):
    # Deterministic stand-in for the VGG19 trunk up to the content layer
    # (conv1_1 -> conv1_2 -> pool1 -> conv2_1).
    # TODO(synk): real pretrained VGG19 (Caffe) weights cannot be loaded here.
    dims = [(3, 64), (64, 64), (64, 128)]
    w_list, b_list = [], []
    for cin, cout in dims:
        key, kw = jax.random.split(key)
        w = jax.random.normal(kw, (3, 3, cin, cout), jnp.float32)
        w = w * (0.2 / (9.0 * cin) ** 0.5)
        wp = jnp.zeros((3, 3, CPAD, CPAD), jnp.float32).at[:, :, :cin, :cout].set(w)
        # Pre-packed im2col layout the kernel consumes; bf16 MXU operands.
        w_list.append(wp.reshape(9 * CPAD, CPAD).astype(jnp.bfloat16))
        b_list.append(jnp.zeros((CPAD,), jnp.float32))
    w_stack = jnp.stack(w_list)                           # (3, 9*CPAD, CPAD) bf16
    b_stack = jnp.stack(b_list).reshape(3, 1, CPAD)       # (3, 1, CPAD)    f32
    mean = jnp.zeros((CPAD,), jnp.float32).at[:3].set(VGG_MEAN)
    inv_std = jnp.zeros((CPAD,), jnp.float32).at[:3].set(1.0 / VGG_STD)
    stat = jnp.stack([mean, inv_std]).reshape(2, 1, CPAD)  # (2, 1, CPAD)   f32
    return stat, w_stack, b_stack


def get_content_feature(params, image_nchw):
    # Mirrors VGGLoss_caffe.get_content_feature: returns a tuple of feature
    # maps; only index [0] is used by the loss.
    return (content_trunk(params, image_nchw),)


# ----------------------------------------------------------------------------
# ContentLossGatys
# ----------------------------------------------------------------------------
class ContentLossGatys:
    def __init__(self, content_image, face_mask=None):
        self.params = init_vgg_params(jax.random.PRNGKey(42))
        self.content_features_target = get_content_feature(self.params, content_image)
        self.face_mask = face_mask

    def __call__(self, image, face_with_background=None, pad_face=False):
        content_feature = get_content_feature(self.params, image)
        if pad_face:
            # TODO(synk): pad_face branch (F.interpolate of face_mask + feature
            # blend) not implemented; default path (pad_face=False) is reproduced.
            raise NotImplementedError("pad_face branch not implemented")
        return mse_loss(content_feature[0], self.content_features_target[0])


if __name__ == "__main__":
    key = jax.random.PRNGKey(0)
    k1, k2 = jax.random.split(key)
    content_image = jax.random.uniform(k1, (2, 3, 16, 16), dtype=jnp.float32)
    image = jax.random.uniform(k2, (2, 3, 16, 16), dtype=jnp.float32)

    loss_mod = ContentLossGatys(content_image)
    loss = loss_mod(image)
    jax.block_until_ready(loss)
    assert loss.shape == () and jnp.isfinite(loss)
    print("KERNEL_OK")
</pallas_src>

<mosaic_0001>
module attributes {stable_mosaic.version = 11 : i64} {
  func.func @_trunk_kernel(%arg0: i32, %arg1: memref<1x16x16x128xf32, #tpu.memory_space<vmem>>, %arg2: memref<2x1x128xf32, #tpu.memory_space<vmem>>, %arg3: memref<3x1152x128xbf16, #tpu.memory_space<vmem>>, %arg4: memref<3x1x128xf32, #tpu.memory_space<vmem>>, %arg5: memref<1x8x8x128xf32, #tpu.memory_space<vmem>>, %arg6: memref<18x18x128xf32, #tpu.memory_space<vmem>>) attributes {dimension_semantics = [#tpu.dimension_semantics<parallel>], iteration_bounds = array<i64: 2>, scalar_prefetch = 0 : i64, scratch_operands = 1 : i64, tpu.core_type = #tpu.core_type<tc>, window_params = [{transform_indices = @transform_0, window_bounds = array<i64: 1, 16, 16, 128>}, {pipeline_mode = #tpu.pipeline_mode<synchronous>, transform_indices = @transform_1, window_bounds = array<i64: 2, 1, 128>}, {pipeline_mode = #tpu.pipeline_mode<synchronous>, transform_indices = @transform_2, window_bounds = array<i64: 3, 1152, 128>}, {pipeline_mode = #tpu.pipeline_mode<synchronous>, transform_indices = @transform_3, window_bounds = array<i64: 3, 1, 128>}, {transform_indices = @transform_4, window_bounds = array<i64: 1, 8, 8, 128>}]} {
    %cst = arith.constant 0.000000e+00 : f32
    %0 = vector.broadcast %cst : f32 to vector<18x18x128xf32>
    %c0 = arith.constant 0 : index
    %c0_0 = arith.constant 0 : index
    %c0_1 = arith.constant 0 : index
    %1 = vector.load %arg6[%c0, %c0_0, %c0_1] : memref<18x18x128xf32, #tpu.memory_space<vmem>>, vector<18x18x128xf32>
    tpu.vector_store %arg6[%c0, %c0_0, %c0_1], %0 {strides = array<i32>} : memref<18x18x128xf32, #tpu.memory_space<vmem>>, vector<18x18x128xf32>,
    %c0_2 = arith.constant 0 : index
    %c0_3 = arith.constant 0 : index
    %c0_4 = arith.constant 0 : index
    %c0_5 = arith.constant 0 : index
    %2 = vector.load %arg1[%c0_2, %c0_3, %c0_4, %c0_5] : memref<1x16x16x128xf32, #tpu.memory_space<vmem>>, vector<1x16x16x128xf32>
    %3 = vector.shape_cast %2 : vector<1x16x16x128xf32> to vector<16x16x128xf32>
    %c0_6 = arith.constant 0 : index
    %c0_7 = arith.constant 0 : index
    %c0_8 = arith.constant 0 : index
    %4 = vector.load %arg2[%c0_6, %c0_7, %c0_8] : memref<2x1x128xf32, #tpu.memory_space<vmem>>, vector<1x1x128xf32>
    %5 = vector.shape_cast %4 : vector<1x1x128xf32> to vector<1x128xf32>
    %6 = vector.shape_cast %5 : vector<1x128xf32> to vector<1x1x128xf32>
    %7 = vector.broadcast %6 : vector<1x1x128xf32> to vector<16x16x128xf32>
    %8 = arith.subf %3, %7 : vector<16x16x128xf32>
    %c1 = arith.constant 1 : index
    %c0_9 = arith.constant 0 : index
    %c0_10 = arith.constant 0 : index
    %9 = vector.load %arg2[%c1, %c0_9, %c0_10] : memref<2x1x128xf32, #tpu.memory_space<vmem>>, vector<1x1x128xf32>
    %10 = vector.shape_cast %9 : vector<1x1x128xf32> to vector<1x128xf32>
    %11 = vector.shape_cast %10 : vector<1x128xf32> to vector<1x1x128xf32>
    %12 = vector.broadcast %11 : vector<1x1x128xf32> to vector<16x16x128xf32>
    %13 = arith.mulf %8, %12 : vector<16x16x128xf32>
    %c1_11 = arith.constant 1 : index
    %c1_12 = arith.constant 1 : index
    %c0_13 = arith.constant 0 : index
    %14 = vector.load %arg6[%c1_11, %c1_12, %c0_13] : memref<18x18x128xf32, #tpu.memory_space<vmem>>, vector<16x16x128xf32>
    tpu.vector_store %arg6[%c1_11, %c1_12, %c0_13], %13 {strides = array<i32>} : memref<18x18x128xf32, #tpu.memory_space<vmem>>, vector<16x16x128xf32>,
    %c0_14 = arith.constant 0 : index
    %c0_15 = arith.constant 0 : index
    %c0_16 = arith.constant 0 : index
    %15 = vector.load %arg6[%c0_14, %c0_15, %c0_16] : memref<18x18x128xf32, #tpu.memory_space<vmem>>, vector<18x18x128xf32>
    %16 = vector.extract_strided_slice %15 {offsets = [0, 0, 0], sizes = [16, 16, 128], strides = [1, 1, 1]} : vector<18x18x128xf32> to vector<16x16x128xf32>
    %17 = vector.extract_strided_slice %15 {offsets = [0, 1, 0], sizes = [16, 16, 128], strides = [1, 1, 1]} : vector<18x18x128xf32> to vector<16x16x128xf32>
    %18 = vector.extract_strided_slice %15 {offsets = [0, 2, 0], sizes = [16, 16, 128], strides = [1, 1, 1]} : vector<18x18x128xf32> to vector<16x16x128xf32>
    %19 = vector.extract_strided_slice %15 {offsets = [1, 0, 0], sizes = [16, 16, 128], strides = [1, 1, 1]} : vector<18x18x128xf32> to vector<16x16x128xf32>
    %20 = vector.extract_strided_slice %15 {offsets = [1, 1, 0], sizes = [16, 16, 128], strides = [1, 1, 1]} : vector<18x18x128xf32> to vector<16x16x128xf32>
    %21 = vector.extract_strided_slice %15 {offsets = [1, 2, 0], sizes = [16, 16, 128], strides = [1, 1, 1]} : vector<18x18x128xf32> to vector<16x16x128xf32>
    %22 = vector.extract_strided_slice %15 {offsets = [2, 0, 0], sizes = [16, 16, 128], strides = [1, 1, 1]} : vector<18x18x128xf32> to vector<16x16x128xf32>
    %23 = vector.extract_strided_slice %15 {offsets = [2, 1, 0], sizes = [16, 16, 128], strides = [1, 1, 1]} : vector<18x18x128xf32> to vector<16x16x128xf32>
    %24 = vector.extract_strided_slice %15 {offsets = [2, 2, 0], sizes = [16, 16, 128], strides = [1, 1, 1]} : vector<18x18x128xf32> to vector<16x16x128xf32>
    %25 = tpu.concatenate %16, %17, %18, %19, %20, %21, %22, %23, %24 in 2 : vector<16x16x128xf32>, vector<16x16x128xf32>, vector<16x16x128xf32>, vector<16x16x128xf32>, vector<16x16x128xf32>, vector<16x16x128xf32>, vector<16x16x128xf32>, vector<16x16x128xf32>, vector<16x16x128xf32> -> vector<16x16x1152xf32>
    %26 = vector.shape_cast %25 : vector<16x16x1152xf32> to vector<256x1152xf32>
    %27 = arith.truncf %26 : vector<256x1152xf32> to vector<256x1152xbf16>
    %c0_17 = arith.constant 0 : index
    %c0_18 = arith.constant 0 : index
    %c0_19 = arith.constant 0 : index
    %28 = vector.load %arg3[%c0_17, %c0_18, %c0_19] : memref<3x1152x128xbf16, #tpu.memory_space<vmem>>, vector<1x1152x128xbf16>
    %29 = vector.shape_cast %28 : vector<1x1152x128xbf16> to vector<1152x128xbf16>
    %cst_20 = arith.constant dense<0.000000e+00> : vector<256x128xf32>
    %30 = tpu.matmul %27, %29, %cst_20 {dimension_numbers = #tpu.dot_dimension_numbers<[1], [0], [0], [1], [0, 0, 1, 1], [], []>} : vector<256x1152xbf16>, vector<1152x128xbf16>, vector<256x128xf32> -> vector<256x128xf32>
    %c0_21 = arith.constant 0 : index
    %c0_22 = arith.constant 0 : index
    %c0_23 = arith.constant 0 : index
    %31 = vector.load %arg4[%c0_21, %c0_22, %c0_23] : memref<3x1x128xf32, #tpu.memory_space<vmem>>, vector<1x1x128xf32>
    %32 = vector.shape_cast %31 : vector<1x1x128xf32> to vector<1x128xf32>
    %33 = vector.broadcast %32 : vector<1x128xf32> to vector<256x128xf32>
    %34 = arith.addf %30, %33 : vector<256x128xf32>
    %cst_24 = arith.constant 0.000000e+00 : f32
    %35 = vector.broadcast %cst_24 : f32 to vector<256x128xf32>
    %36 = arith.maximumf %34, %35 : vector<256x128xf32>
    %37 = vector.shape_cast %36 : vector<256x128xf32> to vector<16x16x128xf32>
    %c1_25 = arith.constant 1 : index
    %c1_26 = arith.constant 1 : index
    %c0_27 = arith.constant 0 : index
    %38 = vector.load %arg6[%c1_25, %c1_26, %c0_27] : memref<18x18x128xf32, #tpu.memory_space<vmem>>, vector<16x16x128xf32>
    tpu.vector_store %arg6[%c1_25, %c1_26, %c0_27], %37 {strides = array<i32>} : memref<18x18x128xf32, #tpu.memory_space<vmem>>, vector<16x16x128xf32>,
    %c0_28 = arith.constant 0 : index
    %c0_29 = arith.constant 0 : index
    %c0_30 = arith.constant 0 : index
    %39 = vector.load %arg6[%c0_28, %c0_29, %c0_30] : memref<18x18x128xf32, #tpu.memory_space<vmem>>, vector<18x18x128xf32>
    %40 = vector.extract_strided_slice %39 {offsets = [0, 0, 0], sizes = [16, 16, 128], strides = [1, 1, 1]} : vector<18x18x128xf32> to vector<16x16x128xf32>
    %41 = vector.extract_strided_slice %39 {offsets = [0, 1, 0], sizes = [16, 16, 128], strides = [1, 1, 1]} : vector<18x18x128xf32> to vector<16x16x128xf32>
    %42 = vector.extract_strided_slice %39 {offsets = [0, 2, 0], sizes = [16, 16, 128], strides = [1, 1, 1]} : vector<18x18x128xf32> to vector<16x16x128xf32>
    %43 = vector.extract_strided_slice %39 {offsets = [1, 0, 0], sizes = [16, 16, 128], strides = [1, 1, 1]} : vector<18x18x128xf32> to vector<16x16x128xf32>
    %44 = vector.extract_strided_slice %39 {offsets = [1, 1, 0], sizes = [16, 16, 128], strides = [1, 1, 1]} : vector<18x18x128xf32> to vector<16x16x128xf32>
    %45 = vector.extract_strided_slice %39 {offsets = [1, 2, 0], sizes = [16, 16, 128], strides = [1, 1, 1]} : vector<18x18x128xf32> to vector<16x16x128xf32>
    %46 = vector.extract_strided_slice %39 {offsets = [2, 0, 0], sizes = [16, 16, 128], strides = [1, 1, 1]} : vector<18x18x128xf32> to vector<16x16x128xf32>
    %47 = vector.extract_strided_slice %39 {offsets = [2, 1, 0], sizes = [16, 16, 128], strides = [1, 1, 1]} : vector<18x18x128xf32> to vector<16x16x128xf32>
    %48 = vector.extract_strided_slice %39 {offsets = [2, 2, 0], sizes = [16, 16, 128], strides = [1, 1, 1]} : vector<18x18x128xf32> to vector<16x16x128xf32>
    %49 = tpu.concatenate %40, %41, %42, %43, %44, %45, %46, %47, %48 in 2 : vector<16x16x128xf32>, vector<16x16x128xf32>, vector<16x16x128xf32>, vector<16x16x128xf32>, vector<16x16x128xf32>, vector<16x16x128xf32>, vector<16x16x128xf32>, vector<16x16x128xf32>, vector<16x16x128xf32> -> vector<16x16x1152xf32>
    %50 = vector.shape_cast %49 : vector<16x16x1152xf32> to vector<256x1152xf32>
    %51 = arith.truncf %50 : vector<256x1152xf32> to vector<256x1152xbf16>
    %c1_31 = arith.constant 1 : index
    %c0_32 = arith.constant 0 : index
    %c0_33 = arith.constant 0 : index
    %52 = vector.load %arg3[%c1_31, %c0_32, %c0_33] : memref<3x1152x128xbf16, #tpu.memory_space<vmem>>, vector<1x1152x128xbf16>
    %53 = vector.shape_cast %52 : vector<1x1152x128xbf16> to vector<1152x128xbf16>
    %cst_34 = arith.constant dense<0.000000e+00> : vector<256x128xf32>
    %54 = tpu.matmul %51, %53, %cst_34 {dimension_numbers = #tpu.dot_dimension_numbers<[1], [0], [0], [1], [0, 0, 1, 1], [], []>} : vector<256x1152xbf16>, vector<1152x128xbf16>, vector<256x128xf32> -> vector<256x128xf32>
    %c1_35 = arith.constant 1 : index
    %c0_36 = arith.constant 0 : index
    %c0_37 = arith.constant 0 : index
    %55 = vector.load %arg4[%c1_35, %c0_36, %c0_37] : memref<3x1x128xf32, #tpu.memory_space<vmem>>, vector<1x1x128xf32>
    %56 = vector.shape_cast %55 : vector<1x1x128xf32> to vector<1x128xf32>
    %57 = vector.broadcast %56 : vector<1x128xf32> to vector<256x128xf32>
    %58 = arith.addf %54, %57 : vector<256x128xf32>
    %cst_38 = arith.constant 0.000000e+00 : f32
    %59 = vector.broadcast %cst_38 : f32 to vector<256x128xf32>
    %60 = arith.maximumf %58, %59 : vector<256x128xf32>
    %61 = vector.shape_cast %60 : vector<256x128xf32> to vector<16x16x128xf32>
    %62 = vector.shape_cast %61 : vector<16x16x128xf32> to vector<8x2x16x128xf32>
    %63 = vector.extract_strided_slice %62 {offsets = [0, 0, 0, 0], sizes = [8, 1, 16, 128], strides = [1, 1, 1, 1]} : vector<8x2x16x128xf32> to vector<8x1x16x128xf32>
    %64 = vector.shape_cast %63 : vector<8x1x16x128xf32> to vector<8x16x128xf32>
    %65 = vector.extract_strided_slice %62 {offsets = [0, 1, 0, 0], sizes = [8, 1, 16, 128], strides = [1, 1, 1, 1]} : vector<8x2x16x128xf32> to vector<8x1x16x128xf32>
    %66 = vector.shape_cast %65 : vector<8x1x16x128xf32> to vector<8x16x128xf32>
    %67 = arith.maximumf %64, %66 : vector<8x16x128xf32>
    %68 = vector.shape_cast %67 : vector<8x16x128xf32> to vector<8x8x2x128xf32>
    %69 = vector.extract_strided_slice %68 {offsets = [0, 0, 0, 0], sizes = [8, 8, 1, 128], strides = [1, 1, 1, 1]} : vector<8x8x2x128xf32> to vector<8x8x1x128xf32>
    %70 = vector.shape_cast %69 : vector<8x8x1x128xf32> to vector<8x8x128xf32>
    %71 = vector.extract_strided_slice %68 {offsets = [0, 0, 1, 0], sizes = [8, 8, 1, 128], strides = [1, 1, 1, 1]} : vector<8x8x2x128xf32> to vector<8x8x1x128xf32>
    %72 = vector.shape_cast %71 : vector<8x8x1x128xf32> to vector<8x8x128xf32>
    %73 = arith.maximumf %70, %72 : vector<8x8x128xf32>
    %cst_39 = arith.constant 0.000000e+00 : f32
    %74 = vector.broadcast %cst_39 : f32 to vector<10x10x128xf32>
    %c0_40 = arith.constant 0 : index
    %c0_41 = arith.constant 0 : index
    %c0_42 = arith.constant 0 : index
    %75 = vector.load %arg6[%c0_40, %c0_41, %c0_42] : memref<18x18x128xf32, #tpu.memory_space<vmem>>, vector<10x10x128xf32>
    tpu.vector_store %arg6[%c0_40, %c0_41, %c0_42], %74 {strides = array<i32>} : memref<18x18x128xf32, #tpu.memory_space<vmem>>, vector<10x10x128xf32>,
    %c1_43 = arith.constant 1 : index
    %c1_44 = arith.constant 1 : index
    %c0_45 = arith.constant 0 : index
    %76 = vector.load %arg6[%c1_43, %c1_44, %c0_45] : memref<18x18x128xf32, #tpu.memory_space<vmem>>, vector<8x8x128xf32>
    tpu.vector_store %arg6[%c1_43, %c1_44, %c0_45], %73 {strides = array<i32>} : memref<18x18x128xf32, #tpu.memory_space<vmem>>, vector<8x8x128xf32>,
    %c0_46 = arith.constant 0 : index
    %c0_47 = arith.constant 0 : index
    %c0_48 = arith.constant 0 : index
    %77 = vector.load %arg6[%c0_46, %c0_47, %c0_48] : memref<18x18x128xf32, #tpu.memory_space<vmem>>, vector<10x10x128xf32>
    %78 = vector.extract_strided_slice %77 {offsets = [0, 0, 0], sizes = [8, 8, 128], strides = [1, 1, 1]} : vector<10x10x128xf32> to vector<8x8x128xf32>
    %79 = vector.extract_strided_slice %77 {offsets = [0, 1, 0], sizes = [8, 8, 128], strides = [1, 1, 1]} : vector<10x10x128xf32> to vector<8x8x128xf32>
    %80 = vector.extract_strided_slice %77 {offsets = [0, 2, 0], sizes = [8, 8, 128], strides = [1, 1, 1]} : vector<10x10x128xf32> to vector<8x8x128xf32>
    %81 = vector.extract_strided_slice %77 {offsets = [1, 0, 0], sizes = [8, 8, 128], strides = [1, 1, 1]} : vector<10x10x128xf32> to vector<8x8x128xf32>
    %82 = vector.extract_strided_slice %77 {offsets = [1, 1, 0], sizes = [8, 8, 128], strides = [1, 1, 1]} : vector<10x10x128xf32> to vector<8x8x128xf32>
    %83 = vector.extract_strided_slice %77 {offsets = [1, 2, 0], sizes = [8, 8, 128], strides = [1, 1, 1]} : vector<10x10x128xf32> to vector<8x8x128xf32>
    %84 = vector.extract_strided_slice %77 {offsets = [2, 0, 0], sizes = [8, 8, 128], strides = [1, 1, 1]} : vector<10x10x128xf32> to vector<8x8x128xf32>
    %85 = vector.extract_strided_slice %77 {offsets = [2, 1, 0], sizes = [8, 8, 128], strides = [1, 1, 1]} : vector<10x10x128xf32> to vector<8x8x128xf32>
    %86 = vector.extract_strided_slice %77 {offsets = [2, 2, 0], sizes = [8, 8, 128], strides = [1, 1, 1]} : vector<10x10x128xf32> to vector<8x8x128xf32>
    %87 = tpu.concatenate %78, %79, %80, %81, %82, %83, %84, %85, %86 in 2 : vector<8x8x128xf32>, vector<8x8x128xf32>, vector<8x8x128xf32>, vector<8x8x128xf32>, vector<8x8x128xf32>, vector<8x8x128xf32>, vector<8x8x128xf32>, vector<8x8x128xf32>, vector<8x8x128xf32> -> vector<8x8x1152xf32>
    %88 = vector.shape_cast %87 : vector<8x8x1152xf32> to vector<64x1152xf32>
    %89 = arith.truncf %88 : vector<64x1152xf32> to vector<64x1152xbf16>
    %c2 = arith.constant 2 : index
    %c0_49 = arith.constant 0 : index
    %c0_50 = arith.constant 0 : index
    %90 = vector.load %arg3[%c2, %c0_49, %c0_50] : memref<3x1152x128xbf16, #tpu.memory_space<vmem>>, vector<1x1152x128xbf16>
    %91 = vector.shape_cast %90 : vector<1x1152x128xbf16> to vector<1152x128xbf16>
    %cst_51 = arith.constant dense<0.000000e+00> : vector<64x128xf32>
    %92 = tpu.matmul %89, %91, %cst_51 {dimension_numbers = #tpu.dot_dimension_numbers<[1], [0], [0], [1], [0, 0, 1, 1], [], []>} : vector<64x1152xbf16>, vector<1152x128xbf16>, vector<64x128xf32> -> vector<64x128xf32>
    %c2_52 = arith.constant 2 : index
    %c0_53 = arith.constant 0 : index
    %c0_54 = arith.constant 0 : index
    %93 = vector.load %arg4[%c2_52, %c0_53, %c0_54] : memref<3x1x128xf32, #tpu.memory_space<vmem>>, vector<1x1x128xf32>
    %94 = vector.shape_cast %93 : vector<1x1x128xf32> to vector<1x128xf32>
    %95 = vector.broadcast %94 : vector<1x128xf32> to vector<64x128xf32>
    %96 = arith.addf %92, %95 : vector<64x128xf32>
    %cst_55 = arith.constant 0.000000e+00 : f32
    %97 = vector.broadcast %cst_55 : f32 to vector<64x128xf32>
    %98 = arith.maximumf %96, %97 : vector<64x128xf32>
    %99 = vector.shape_cast %98 : vector<64x128xf32> to vector<8x8x128xf32>
    %c0_56 = arith.constant 0 : index
    %c0_57 = arith.constant 0 : index
    %c0_58 = arith.constant 0 : index
    %c0_59 = arith.constant 0 : index
    %100 = vector.load %arg5[%c0_56, %c0_57, %c0_58, %c0_59] : memref<1x8x8x128xf32, #tpu.memory_space<vmem>>, vector<1x8x8x128xf32>
    %101 = vector.shape_cast %100 : vector<1x8x8x128xf32> to vector<8x8x128xf32>
    %102 = vector.shape_cast %99 : vector<8x8x128xf32> to vector<1x8x8x128xf32>
    tpu.vector_store %arg5[%c0_56, %c0_57, %c0_58, %c0_59], %102 {strides = array<i32>} : memref<1x8x8x128xf32, #tpu.memory_space<vmem>>, vector<1x8x8x128xf32>,
    return
  }
  func.func @transform_0(%arg0: i32) -> (i32, i32, i32, i32) {
    %c0_i32 = arith.constant 0 : i32
    %c0_i32_0 = arith.constant 0 : i32
    %c0_i32_1 = arith.constant 0 : i32
    %c0_i32_2 = arith.constant 0 : i32
    return %arg0, %c0_i32, %c0_i32_0, %c0_i32_1 : i32, i32, i32, i32
  }
  func.func @transform_1(%arg0: i32) -> (i32, i32, i32) {
    %c0_i32 = arith.constant 0 : i32
    %c0_i32_0 = arith.constant 0 : i32
    %c0_i32_1 = arith.constant 0 : i32
    %c0_i32_2 = arith.constant 0 : i32
    return %c0_i32, %c0_i32_0, %c0_i32_1 : i32, i32, i32
  }
  func.func @transform_2(%arg0: i32) -> (i32, i32, i32) {
    %c0_i32 = arith.constant 0 : i32
    %c0_i32_0 = arith.constant 0 : i32
    %c0_i32_1 = arith.constant 0 : i32
    %c0_i32_2 = arith.constant 0 : i32
    return %c0_i32, %c0_i32_0, %c0_i32_1 : i32, i32, i32
  }
  func.func @transform_3(%arg0: i32) -> (i32, i32, i32) {
    %c0_i32 = arith.constant 0 : i32
    %c0_i32_0 = arith.constant 0 : i32
    %c0_i32_1 = arith.constant 0 : i32
    %c0_i32_2 = arith.constant 0 : i32
    return %c0_i32, %c0_i32_0, %c0_i32_1 : i32, i32, i32
  }
  func.func @transform_4(%arg0: i32) -> (i32, i32, i32, i32) {
    %c0_i32 = arith.constant 0 : i32
    %c0_i32_0 = arith.constant 0 : i32
    %c0_i32_1 = arith.constant 0 : i32
    %c0_i32_2 = arith.constant 0 : i32
    return %arg0, %c0_i32, %c0_i32_0, %c0_i32_1 : i32, i32, i32, i32
  }
}

</mosaic_0001>

<bundles_post_ra>
// kernel: tpu_custom_call.1
= control target key start
LH: loop header
LB: loop body
LE: loop exit
PB: predicated region body
PF: predicated region fallthrough
CT: control target
= control target key end

     0   :  { %9 = vsyncpa [#allocation4], 0  ;;  %s10601_s0 = inlined_call_operand.hbm [shape: f32[2,16,16,128], index: 0, kind: input, shape index: {}]   ;;  %s10602_s1 = inlined_call_operand.vmem [shape: f32[2,1,128], index: 1, kind: input, shape index: {}]   ;;  %s10603_s2 = inlined_call_operand.hbm [shape: bf16[3,1152,128], index: 2, kind: input, shape index: {}]   ;;  %s10604_s3 = inlined_call_operand.vmem [shape: f32[3,1,128], index: 3, kind: input, shape index: {}]   ;;  %s10605_s4 = inlined_call_operand.hbm [shape: f32[2,8,8,128], index: 4, kind: output, shape index: {}]  }
   0x1   :  { %11 = vsyncpa [#allocation4 + $0x1], 0 }
   0x2   :  { %12 = vsyncpa [#allocation7], 0 }
   0x3   :  { %13 = vsyncpa [#allocation5], 0 }
   0x4   :  { %15 = vsyncpa [#allocation5 + $0x1], 0  ;;  %s8358_s15 = smov 0   ;;  %s8360_s16 = smov 0  }
   0x5   :  { %s8362_s17 = smov 0   ;;  %s8364_s18 = smov 0  }
   0x6 LB: > { %s8379_s19 = sadd.s32 4294967295, %s8319_s18   ;;  %s6347_s20 = sadd.s32 4294967294, %s8319_s18   ;;  %s8319_s18 = sphi %s8364_s18, %s10656_s18   ;;  %s8315_s17 = sphi %s8362_s17, %s10655_s17   ;;  %s8311_s16 = sphi %s8360_s16, %s10654_s16   ;;  %s8307_s15 = sphi %s8358_s15, %s10653_s15  }
   0x7   : > { %p41_p0 = scmp.ne.s32.totalorder %s8311_s16, %s8307_s15  ;;  %p10606_p1 = scmp.eq.s32.totalorder %s8379_s19, 0 }
   0x8   : > { %p134_p3 = scmp.eq.s32.totalorder %s6347_s20, 1  ;;  %p6348_p5 = scmp.ge.s32.totalorder %s8319_s18, 1 }
   0x9   : > { %p8388_p4 = por %p10606_p1, %p41_p0  ;;  %p141_p7 = scmp.lt.s32.totalorder %s8319_s18, 3 }
   0xa   : > { %p8393_p6 = por %p134_p3, %p41_p0  ;;  %s8321_s24 = smov [#allocation6]  }
   0xb   : > { %s10615_s21 = scalar_select %p8388_p4, 1, 0 }
   0xc   : > { %s10616_s22 = scalar_select %p8393_p6, 1, 0 }
   0xd   : > { %p8398_p8 = pnand %p6348_p5, %p141_p7  ;;  %s156_s25 = sshll.u32 %s8321_s24, 4  ;;  %s8402_s25 = int_to_ptr.vmem [resolvable:$true] %s156_s25 }
   0xe   : > { %s8414_s27 = sadd.s32 1, %s8319_s18   ;;  %s28_s28 = sadd.s32 1, %s8315_s17 }
   0xf   : > { %s10617_s23 = scalar_select %p8398_p8, 1, 0 }
  0x10   : > { %p7913_p9 = pneg %p8398_p8  ;;  %s25_s29 = ssub.s32 %s8319_s18, %s8414_s27 }
  0x11   : > { %s8191_s6 = scalar_lea.hbm %s10603_s2, 27648 }
  0x12   : > { %p8409_p11 = pnand %p7913_p9, %p10606_p1  ;;  %p8192_p12 = scmp.ne.s32.totalorder %s10603_s2, %s8191_s6 }
  0x13   : > { %p8198_p5 = scmp.lt.u32.totalorder %s8191_s6, %s10603_s2 }
  0x14   : > { %p8193_p13 = pneg %p8409_p11 }
  0x16   : > { %p8194_p0 = pnand %p8193_p13, %p8192_p12 }
  0x18   : > { %p8195_p3 = pneg %p8194_p0 }
  0x1a   : > { %p8200_p7 = pnand %p8198_p5, %p8195_p3 }
  0x1c   : > { %8203 = shalt.err (!%p8200_p7)
}
  0x1d   : > { %s8204_s11 = scalar_lea.vmem %s8402_s25, 27648  ;;  %p8212_p2 = scmp.lt.s32.totalorder %s8402_s25, %s8402_s25 }
  0x1e   : > { %p8205_p9 = scmp.ne.s32.totalorder %s8402_s25, %s8204_s11  ;;  %p8213_p6 = scmp.lt.s32.totalorder %s8204_s11, %s8204_s11 }
  0x20   : > { %p8207_p10 = pnand %p8205_p9, %p8193_p13  ;;  %p8214_p4 = por %p8213_p6, %p8212_p2 }
  0x22   : > { %p8208_p1 = pneg %p8207_p10 }
  0x24   : > { %p8215_p8 = pnand %p8214_p4, %p8208_p1 }
  0x26   : > { %8218 = shalt.err (!%p8215_p8)
}
  0x27   : > { %s8322_s12 = smov 64   ;;  %s8323_s13 = smov 4  }
  0x28   : > { %7916 = dma.hbm_to_vmem [thread:$0]  (!%p8409_p11), %s10603_s2, 27648, %s8402_s25, [#allocation7], %s8322_s12, %s8322_s12, %s8323_s13  }
  0x29   : > { %p26_p2 = scmp.eq.s32.totalorder %s25_s29, 0  ;;  %p35_p1 = scmp.ne.s32.totalorder %s8315_s17, %s8311_s16 }
  0x2a   : > { %p36_p4 = scmp.eq.s32.totalorder %s8319_s18, 0  ;;  %p7926_p6 = scmp.lt.s32.totalorder %s8319_s18, 2 }
  0x2b   : > { %s8445_s24 = scalar_select %p26_p2, %s8315_s17, %s28_s28  }
  0x2c   : > { %p37_p8 = por %p36_p4, %p35_p1  ;;  %p10619_p10 = scmp.eq.s32.totalorder %s8379_s19, 1 }
  0x2d   : > { %s173_s5 = sand.u32 1, %s8315_s17   ;;  %s6651_s6 = sshll.u32 %s8319_s18, 12 }
  0x2e   : > { %p8449_p12 = por %p10619_p10, %p35_p1  ;;  %s6351_s7 = sshll.u32 %s173_s5, 8 }
  0x2f   : > { %s8458_s9 = scalar_lea.hbm %s10601_s0, %s6651_s6  ;;  %s177_s25 = scalar_lea.vmem [#allocation3], %s6351_s7 }
  0x30   : > { %s184_s28 = sshll.u32 %s177_s25, 4  ;;  %p8460_p11 = pnand %p7926_p6, %p37_p8  ;;  %s8464_s28 = int_to_ptr.vmem [resolvable:$true] %s184_s28 }
  0x31   : > { %s8466_s10 = scalar_lea.sflag [#allocation4], %s173_s5  ;;  %s8219_s11 = scalar_lea.hbm %s8458_s9, 4096 }
  0x32   : > { %p8220_p13 = scmp.ne.s32.totalorder %s8458_s9, %s8219_s11  ;;  %p8221_p0 = pneg %p8460_p11 }
  0x33   : > { %s8224_s14 = scalar_lea.hbm %s10601_s0, 8192  ;;  %p8225_p7 = scmp.lt.u32.totalorder %s8458_s9, %s10601_s0 }
  0x34   : > { %p8222_p3 = pnand %p8221_p0, %p8220_p13  ;;  %p8226_p9 = scmp.lt.u32.totalorder %s8224_s14, %s8219_s11 }
  0x35   : > { %p8228_p1 = scmp.lt.u32.totalorder %s8219_s11, %s8458_s9 }
  0x36   : > { %p8223_p5 = pneg %p8222_p3  ;;  %p8227_p2 = por %p8226_p9, %p8225_p7 }
  0x38   : > { %p8229_p4 = por %p8228_p1, %p8227_p2 }
  0x3a   : > { %p8230_p6 = pnand %p8229_p4, %p8223_p5 }
  0x3c   : > { %8233 = shalt.err (!%p8230_p6)
}
  0x3d   : > { %s8234_s5 = scalar_lea.vmem %s8464_s28, 4096  ;;  %s8324_s7 = smov [#allocation3]  }
  0x3e   : > { %p8235_p8 = scmp.ne.s32.totalorder %s8464_s28, %s8234_s5  ;;  %s8239_s26 = sshll.u32 %s8324_s7, 4  ;;  %s8240_s26 = int_to_ptr.vmem [resolvable:$false] %s8239_s26 }
  0x3f   : > { %s8241_s8 = scalar_lea.vmem %s8240_s26, 8192  ;;  %p8242_p3 = scmp.lt.s32.totalorder %s8464_s28, %s8240_s26 }
  0x40   : > { %p8237_p10 = pnand %p8235_p8, %p8221_p0  ;;  %p8243_p7 = scmp.lt.s32.totalorder %s8241_s8, %s8234_s5 }
  0x42   : > { %p8238_p13 = pneg %p8237_p10  ;;  %p8244_p9 = por %p8243_p7, %p8242_p3 }
  0x44   : > { %p8245_p2 = pnand %p8244_p9, %p8238_p13 }
  0x46   : > { %8248 = shalt.err (!%p8245_p2)
}
  0x47   : > { %s8325_s25 = smov 128   ;;  %s8326_s11 = smov 8  }
  0x48   : > { %7920 = dma.hbm_to_vmem [thread:$0]  (!%p8460_p11), %s8458_s9, 4096, %s8464_s28, %s8466_s10, %s8325_s25, %s8325_s25, %s8326_s11  }
  0x49   : > { %p10622_p0 = scmp.ne.s32.totalorder %s10617_s23, 0 }
  0x4b   : > { %196 = sbr.rel (%p10622_p0) target bundleno = 1481 (0x5c9), region = 36 }
  0x52   : > { %s8497_s12 = sand.u32 1, %s8311_s16   ;;  %p10623_p5 = scmp.ne.s32.totalorder %s10615_s21, 0 }
  0x53   : > { %s6355_s13 = sshll.u32 %s8497_s12, 8  ;;  %s199_s14 = scalar_lea.sflag [#allocation4], %s8497_s12 }
  0x54   : > { %s8501_s20 = scalar_lea.vmem [#allocation3], %s6355_s13 }
  0x55   : > { %8294 = dma.done.wait (%p10623_p5), %s199_s14, 4096  }
  0x56   : > { %8296 = vsyncadd (%p10623_p5), %s199_s14, 4294963200  ;;  %p10624_p11 = scmp.eq.s32.totalorder %s8379_s19, 0 }
  0x58   : > { %8298 = dma.done.wait (%p10624_p11), [#allocation7], 27648   ;;  %p10625_p1 = pmov %p10624_p11 }
  0x59   : > { %v8327_v0 = vmov 0.0   ;;  %v7970_v1 = vld [vmem:[#allocation6 + $0x40] sm:$0xff]   ;;  %v7974_v5 = vld [vmem:[#allocation6 + $0x48] sm:$0xff]   ;;  %v7978_v9 = vld [vmem:[#allocation6 + $0x50] sm:$0xff]   ;;  %vm532_vm0 = vcmask 1046528   ;;  %v8328_v55 = vmov 0.0|0.0  }
  0x5a   : > { %8300 = vsyncadd (%p10625_p1), [#allocation7], 4294939648  ;;  %233 = vst [vmem:[#allocation2 + $0x8] sm:$0xff] %v8327_v0  ;;  %v7971_v2 = vld [vmem:[#allocation6] sm:$0xff]   ;;  %6653 = vmatprep.subr.bf16.mxu0 %v7970_v1  ;;  %v7975_v6 = vld [vmem:[#allocation6 + $0x8] sm:$0xff]   ;;  %v533_v30 = vrot.slane %v8327_v0, 1 }
  0x5b   : > { %234 = vst [vmem:[#allocation2 + $0x10] sm:$0x3] %v8327_v0  ;;  %235 = vst [vmem:[#allocation2 + $0x18] sm:$0xff] %v8327_v0  ;;  %v7972_v3 = vld [vmem:[#allocation6 + $0xc0] sm:$0xff]   ;;  %6654 = vmatpush3.bf16.msra.mxu0 %v7971_v2  ;;  %v7976_v7 = vld [vmem:[#allocation6 + $0xc8] sm:$0xff]   ;;  %v8589_v56 = vrot.slane %v8327_v0, 2 }
  0x5c   : > { %236 = vst [vmem:[#allocation2 + $0x20] sm:$0xff] %v8327_v0  ;;  %237 = vst [vmem:[#allocation2 + $0x28] sm:$0x3] %v8327_v0  ;;  %v7973_v4 = vld [vmem:[#allocation6 + $0x80] sm:$0xff]   ;;  %6765 = vmatprep.subr.bf16.mxu1 %v7972_v3  ;;  %6655 = vmatprep.subr.bf16.mxu0 %v7974_v5  ;;  %v7977_v8 = vld [vmem:[#allocation6 + $0x88] sm:$0xff]   ;;  %vm645_vm1 = vcmask 1045504  }
  0x5d   : > { %238 = vst [vmem:[#allocation2 + $0x30] sm:$0xff] %v8327_v0  ;;  %239 = vst [vmem:[#allocation2 + $0x38] sm:$0xff] %v8327_v0  ;;  %6766 = vmatpush3.bf16.msra.mxu1 %v7973_v4  ;;  %v7979_v10 = vld [vmem:[#allocation6 + $0x10] sm:$0xff]   ;;  %v7982_v13 = vld [vmem:[#allocation6 + $0x58] sm:$0xff]   ;;  %vm5098_vm2 = vcmask 1041409   ;;  %vm5100_vm3 = vcmask 1042434  }
  0x5e   : > { %240 = vst [vmem:[#allocation2 + $0x40] sm:$0x3] %v8327_v0  ;;  %241 = vst [vmem:[#allocation2 + $0x48] sm:$0xff] %v8327_v0  ;;  %6767 = vmatprep.subr.bf16.mxu1 %v7976_v7  ;;  %v7980_v11 = vld [vmem:[#allocation6 + $0xd0] sm:$0xff]   ;;  %v7983_v14 = vld [vmem:[#allocation6 + $0x18] sm:$0xff]   ;;  %vm5102_vm4 = vcmask 1043459  }
  0x5f   : > { %242 = vst [vmem:[#allocation2 + $0x50] sm:$0xff] %v8327_v0  ;;  %243 = vst [vmem:[#allocation2 + $0x58] sm:$0x3] %v8327_v0  ;;  %6656 = vmatpush3.bf16.msra.mxu0 %v7975_v6  ;;  %v7981_v12 = vld [vmem:[#allocation6 + $0x90] sm:$0xff]   ;;  %v7984_v15 = vld [vmem:[#allocation6 + $0xd8] sm:$0xff]   ;;  %vm5104_vm5 = vcmask 1044484  }
  0x60   : > { %244 = vst [vmem:[#allocation2 + $0x60] sm:$0xff] %v8327_v0  ;;  %245 = vst [vmem:[#allocation2 + $0x68] sm:$0xff] %v8327_v0  ;;  %6657 = vmatprep.subr.bf16.mxu0 %v7978_v9  ;;  %v7985_v16 = vld [vmem:[#allocation6 + $0x98] sm:$0xff]   ;;  %v7986_v17 = vld [vmem:[#allocation6 + $0x60] sm:$0xff]   ;;  %vm5106_vm6 = vcmask 1045509   ;;  %vm5108_vm7 = vcmask 1046534  }
  0x61   : > { %246 = vst [vmem:[#allocation2 + $0x70] sm:$0x3] %v8327_v0  ;;  %247 = vst [vmem:[#allocation2 + $0x78] sm:$0xff] %v8327_v0  ;;  %6768 = vmatpush3.bf16.msra.mxu1 %v7977_v8  ;;  %v7987_v18 = vld [vmem:[#allocation6 + $0x20] sm:$0xff]   ;;  %v7990_v21 = vld [vmem:[#allocation6 + $0x68] sm:$0xff]   ;;  %vm5110_vm8 = vcmask 1047559  }
  0x62   : > { %248 = vst [vmem:[#allocation2 + $0x80] sm:$0xff] %v8327_v0  ;;  %249 = vst [vmem:[#allocation2 + $0x88] sm:$0x3] %v8327_v0  ;;  %6769 = vmatprep.subr.bf16.mxu1 %v7980_v11  ;;  %v7988_v19 = vld [vmem:[#allocation6 + $0xe0] sm:$0xff]   ;;  %v7991_v22 = vld [vmem:[#allocation6 + $0x28] sm:$0xff]   ;;  %s6357_s8 = sshll.u32 %s8497_s12, 6 }
  0x63   : > { %250 = vst [vmem:[#allocation2 + $0x90] sm:$0xff] %v8327_v0  ;;  %251 = vst [vmem:[#allocation2 + $0x98] sm:$0xff] %v8327_v0  ;;  %6658 = vmatpush3.bf16.msra.mxu0 %v7979_v10  ;;  %v7989_v20 = vld [vmem:[#allocation6 + $0xa0] sm:$0xff]   ;;  %v7992_v23 = vld [vmem:[#allocation6 + $0xe8] sm:$0xff]   ;;  %s230_s25 = scalar_lea.vmem [#allocation8], %s6357_s8  ;;  %s6652_s13 = sshll.u32 %s8379_s19, 10 }
  0x64   : > { %252 = vst [vmem:[#allocation2 + $0xa0] sm:$0x3] %v8327_v0  ;;  %253 = vst [vmem:[#allocation2 + $0xa8] sm:$0xff] %v8327_v0  ;;  %6659 = vmatprep.subr.bf16.mxu0 %v7982_v13  ;;  %v7993_v24 = vld [vmem:[#allocation6 + $0xa8] sm:$0xff]   ;;  %v7994_v25 = vld [vmem:[#allocation6 + $0x70] sm:$0xff]   ;;  %s6264_s11 = sshll.u32 %s230_s25, 4  ;;  %s10557_s21 = scalar_lea.hbm %s10605_s4, %s6652_s13  ;;  %s10552_s11 = int_to_ptr.vmem [resolvable:$true] %s6264_s11 }
  0x65   : > { %254 = vst [vmem:[#allocation2 + $0xb0] sm:$0xff] %v8327_v0  ;;  %255 = vst [vmem:[#allocation2 + $0xb8] sm:$0x3] %v8327_v0  ;;  %6770 = vmatpush3.bf16.msra.mxu1 %v7981_v12  ;;  %v7995_v26 = vld [vmem:[#allocation6 + $0x30] sm:$0xff]   ;;  %v7998_v29 = vld [vmem:[#allocation6 + $0x78] sm:$0xff]   ;;  %s6251_s19 = scalar_lea.sflag [#allocation5], %s8497_s12 }
  0x66   : > { %256 = vst [vmem:[#allocation2 + $0xc0] sm:$0xff] %v8327_v0  ;;  %257 = vst [vmem:[#allocation2 + $0xc8] sm:$0xff] %v8327_v0  ;;  %6771 = vmatprep.subr.bf16.mxu1 %v7984_v15  ;;  %v7996_v27 = vld [vmem:[#allocation6 + $0xf0] sm:$0xff]   ;;  %v7999_v31 = vld [vmem:[#allocation6 + $0x38] sm:$0xff]   ;;  %s8249_s23 = scalar_lea.vmem %s10552_s11, 1024  ;;  %s8330_s9 = smov [#allocation8]  }
  0x67   : > { %258 = vst [vmem:[#allocation2 + $0xd0] sm:$0x3] %v8327_v0  ;;  %259 = vst [vmem:[#allocation2 + $0xd8] sm:$0xff] %v8327_v0  ;;  %6660 = vmatpush3.bf16.msra.mxu0 %v7983_v14  ;;  %v7997_v28 = vld [vmem:[#allocation6 + $0xb0] sm:$0xff]   ;;  %v8000_v32 = vld [vmem:[#allocation6 + $0xf8] sm:$0xff]   ;;  %p8250_p4 = scmp.ne.s32.totalorder %s10552_s11, %s8249_s23  ;;  %s8253_s28 = sshll.u32 %s8330_s9, 4  ;;  %s8254_s28 = int_to_ptr.vmem [resolvable:$false] %s8253_s28 }
  0x68   : > { %260 = vst [vmem:[#allocation2 + $0xe0] sm:$0xff] %v8327_v0  ;;  %261 = vst [vmem:[#allocation2 + $0xe8] sm:$0x3] %v8327_v0  ;;  %6661 = vmatprep.subr.bf16.mxu0 %v7986_v17  ;;  %v432_v33 = vld [vmem:[#allocation2 + $0x10] sm:$0x3]  ;;  %v8001_v35 = vld [vmem:[#allocation6 + $0xb8] sm:$0xff]   ;;  %p8256_p10 = scmp.lt.s32.totalorder %s10552_s11, %s8254_s28 }
  0x69   : > { %262 = vst [vmem:[#allocation2 + $0xf0] sm:$0xff] %v8327_v0  ;;  %263 = vst [vmem:[#allocation2 + $0xf8] sm:$0xff] %v8327_v0  ;;  %6772 = vmatpush3.bf16.msra.mxu1 %v7985_v16  ;;  %v536_v34 = vrot.slane %v432_v33, 1  ;;  %v8002_v36 = vld [vmem:[#allocation6 + $0x140] sm:$0xff]   ;;  %v287_v38 = vld [vmem:[%s8501_s20 + $0x8] sm:$0xff]  ;;  %v649_v61 = vrot.slane %v432_v33, 2  ;;  %p8251_p6 = pnand %p8250_p4, %p8449_p12 }
  0x6a   : > { %264 = vst [vmem:[#allocation2 + $0x100] sm:$0x3] %v8327_v0  ;;  %265 = vst [vmem:[#allocation2 + $0x108] sm:$0xff] %v8327_v0  ;;  %6773 = vmatprep.subr.bf16.mxu1 %v7988_v19  ;;  %v286_v37 = vld [vmem:[%s8501_s20] sm:$0xff]  ;;  %v8571_v40 = vld [vmem:[%s10602_s1] ss:$0 sm:$0xff] }
  0x6b   : > { %266 = vst [vmem:[#allocation2 + $0x110] sm:$0xff] %v8327_v0  ;;  %267 = vst [vmem:[#allocation2 + $0x118] sm:$0x3] %v8327_v0  ;;  %6662 = vmatpush3.bf16.msra.mxu0 %v7987_v18  ;;  %v537_v39 = vsel %vm532_vm0, %v533_v30, %v536_v34  ;;  %v8576_v41 = vld [vmem:[%s10602_s1 + $0x1] ss:$0 sm:$0xff]  ;;  %v325_v43 = vsub.f32 %v286_v37, %v8571_v40  ;;  %v326_v44 = vsub.f32 %v287_v38, %v8571_v40  ;;  %v8003_v45 = vld [vmem:[#allocation6 + $0x100] sm:$0xff]   ;;  %p8252_p8 = pneg %p8251_p6 }
  0x6c   : > { %268 = vst [vmem:[#allocation2 + $0x120] sm:$0xff] %v8327_v0  ;;  %269 = vst [vmem:[#allocation2 + $0x128] sm:$0xff] %v8327_v0  ;;  %6663 = vmatprep.subr.bf16.mxu0 %v7990_v21  ;;  %v793_v42 = vpack.c.bf16 %v537_v39, %v533_v30  ;;  %v288_v46 = vld [vmem:[%s8501_s20 + $0x10] sm:$0xff]  ;;  %v289_v47 = vld [vmem:[%s8501_s20 + $0x18] sm:$0xff]  ;;  %v650_v14 = vsel %vm645_vm1, %v8589_v56, %v649_v61  ;;  %s8255_s29 = scalar_lea.vmem %s8254_s28, 2048 }
  0x6d   : > { %270 = vst [vmem:[#allocation2 + $0x130] sm:$0x3] %v8327_v0  ;;  %271 = vst [vmem:[#allocation2 + $0x138] sm:$0xff] %v8327_v0  ;;  %6774 = vmatpush3.bf16.msra.mxu1 %v7989_v20  ;;  %v327_v48 = vsub.f32 %v288_v46, %v8571_v40  ;;  %v365_v49 = vmul.f32 %v8576_v41, %v325_v43  ;;  %v366_v50 = vmul.f32 %v8576_v41, %v326_v44  ;;  %v8004_v52 = vld [vmem:[#allocation6 + $0x148] sm:$0xff]   ;;  %v290_v53 = vld [vmem:[%s8501_s20 + $0x20] sm:$0xff]  ;;  %p8257_p13 = scmp.lt.s32.totalorder %s8255_s29, %s8249_s23 }
  0x6e   : > { %272 = vst [vmem:[#allocation2 + $0x140] sm:$0xff] %v8327_v0  ;;  %273 = vst [vmem:[#allocation2 + $0x148] sm:$0x3] %v8327_v0  ;;  %6775 = vmatprep.subr.bf16.mxu1 %v7992_v23  ;;  %1461 = vmatprep.mubr.bf16.mxu0 %v793_v42  ;;  %v328_v51 = vsub.f32 %v289_v47, %v8571_v40  ;;  %v291_v54 = vld [vmem:[%s8501_s20 + $0x28] sm:$0xff]  ;;  %v329_v58 = vsub.f32 %v290_v53, %v8571_v40  ;;  %v292_v63 = vld [vmem:[%s8501_s20 + $0x30] sm:$0xff] }
  0x6f   : > { %274 = vst [vmem:[#allocation2 + $0x150] sm:$0xff] %v8327_v0  ;;  %275 = vst [vmem:[#allocation2 + $0x158] sm:$0xff] %v8327_v0  ;;  %6664 = vmatpush3.bf16.msra.mxu0 %v7991_v22  ;;  %v367_v57 = vmul.f32 %v8576_v41, %v327_v48  ;;  %v330_v59 = vsub.f32 %v291_v54, %v8571_v40  ;;  %v8005_v60 = vld [vmem:[#allocation6 + $0x108] sm:$0xff]   ;;  %v293_v1 = vld [vmem:[%s8501_s20 + $0x38] sm:$0xff]  ;;  %v331_v3 = vsub.f32 %v292_v63, %v8571_v40  ;;  %p8258_p3 = por %p8257_p13, %p8256_p10 }
  0x70   : > { %276 = vst [vmem:[#allocation2 + $0x160] sm:$0x3] %v8327_v0  ;;  %277 = vst [vmem:[#allocation2 + $0x168] sm:$0xff] %v8327_v0  ;;  %6665 = vmatprep.subr.bf16.mxu0 %v7994_v25  ;;  %v368_v62 = vmul.f32 %v8576_v41, %v328_v51  ;;  %v332_v4 = vsub.f32 %v293_v1, %v8571_v40  ;;  %v8006_v5 = vld [vmem:[#allocation6 + $0x150] sm:$0xff]   ;;  %v294_v6 = vld [vmem:[%s8501_s20 + $0x40] sm:$0xff] }
  0x71   : > { %278 = vst [vmem:[#allocation2 + $0x170] sm:$0xff] %v8327_v0  ;;  %279 = vst [vmem:[#allocation2 + $0x178] sm:$0x3] %v8327_v0  ;;  %6776 = vmatpush3.bf16.msra.mxu1 %v7993_v24  ;;  %v370_v2 = vmul.f32 %v8576_v41, %v330_v59  ;;  %v295_v7 = vld [vmem:[%s8501_s20 + $0x48] sm:$0xff]  ;;  %v333_v8 = vsub.f32 %v294_v6, %v8571_v40  ;;  %v371_v9 = vmul.f32 %v8576_v41, %v331_v3  ;;  %v296_v12 = vld [vmem:[%s8501_s20 + $0x50] sm:$0xff]  ;;  %p8259_p7 = pnand %p8258_p3, %p8252_p8 }
  0x72   : > { %280 = vst [vmem:[#allocation2 + $0x180] sm:$0xff] %v8327_v0  ;;  %281 = vst [vmem:[#allocation2 + $0x188] sm:$0xff] %v8327_v0  ;;  %6777 = vmatprep.subr.bf16.mxu1 %v7996_v27  ;;  %v372_v10 = vmul.f32 %v8576_v41, %v332_v4  ;;  %v334_v11 = vsub.f32 %v295_v7, %v8571_v40  ;;  %v297_v13 = vld [vmem:[%s8501_s20 + $0x58] sm:$0xff]  ;;  %v8007_v16 = vld [vmem:[#allocation6 + $0x110] sm:$0xff]   ;;  %v335_v17 = vsub.f32 %v296_v12, %v8571_v40 }
  0x73   : > { %282 = vst [vmem:[#allocation2 + $0x190] sm:$0x3] %v8327_v0  ;;  %283 = vst [vmem:[#allocation2 + $0x198] sm:$0xff] %v8327_v0  ;;  %6666 = vmatpush3.bf16.msra.mxu0 %v7995_v26  ;;  %v373_v15 = vmul.f32 %v8576_v41, %v333_v8  ;;  %v336_v18 = vsub.f32 %v297_v13, %v8571_v40  ;;  %v8008_v20 = vld [vmem:[#allocation6 + $0x158] sm:$0xff]   ;;  %v298_v21 = vld [vmem:[%s8501_s20 + $0x60] sm:$0xff]  ;;  %v794_v27 = vpack.c.bf16 %v650_v14, %v8589_v56 }
  0x74   : > { %285 = vst [vmem:[#allocation2 + $0x1a8] sm:$0x3] %v8327_v0  ;;  %4759 = vst [vmem:[#allocation2 + $0x8] sm:$0x3] %v8327_v0  ;;  %6667 = vmatprep.subr.bf16.mxu0 %v7998_v29  ;;  %v369_v0 = vmul.f32 %v8576_v41, %v329_v58  ;;  %v374_v19 = vmul.f32 %v8576_v41, %v334_v11  ;;  %v375_v22 = vmul.f32 %v8576_v41, %v335_v17  ;;  %v8009_v34 = vld [vmem:[#allocation6 + $0x118] sm:$0xff]   ;;  %v299_v6 = vld [vmem:[%s8501_s20 + $0x68] sm:$0xff] }
  0x75   : > { %6778 = vmatpush3.bf16.msra.mxu1 %v7997_v28  ;;  %398 = vst [vmem:[#allocation2 + $0x19] sm:$0xff] %v365_v49  ;;  %399 = vst [vmem:[#allocation2 + $0x21] sm:$0xff] %v366_v50  ;;  %v376_v23 = vmul.f32 %v8576_v41, %v336_v18  ;;  %v337_v24 = vsub.f32 %v298_v21, %v8571_v40  ;;  %v8649_v8 = vld [vmem:[%s8501_s20 + $0x70] sm:$0xff] }
  0x76   : > { %6779 = vmatprep.subr.bf16.mxu1 %v8000_v32  ;;  %400 = vst [vmem:[#allocation2 + $0x31] sm:$0xff] %v367_v57  ;;  %401 = vst [vmem:[#allocation2 + $0x39] sm:$0xff] %v368_v62 }
  0x77   : > { %6668 = vmatpush3.bf16.msra.mxu0 %v7999_v31  ;;  %402 = vst [vmem:[#allocation2 + $0x49] sm:$0xff] %v369_v0  ;;  %403 = vst [vmem:[#allocation2 + $0x51] sm:$0xff] %v370_v2  ;;  %v377_v43 = vmul.f32 %v8576_v41, %v337_v24 }
  0x78   : > { %6877 = vmatprep.subr.bf16.mxu0 %v8002_v36  ;;  %404 = vst [vmem:[#allocation2 + $0x61] sm:$0xff] %v371_v9  ;;  %405 = vst [vmem:[#allocation2 + $0x69] sm:$0xff] %v372_v10  ;;  %v8012_v9 = vld [vmem:[#allocation6 + $0x168] sm:$0xff]  }
  0x79   : > { %6780 = vmatpush3.bf16.msra.mxu1 %v8001_v35  ;;  %406 = vst [vmem:[#allocation2 + $0x79] sm:$0xff] %v373_v15  ;;  %407 = vst [vmem:[#allocation2 + $0x81] sm:$0xff] %v374_v19  ;;  %v8010_v35 = vld [vmem:[#allocation6 + $0x160] sm:$0xff]  }
  0x7a   : > { %1462 = vmatmul.mubr.bf16.vlgmr.msra.gmra.mrb[0].mxu0 %v8328_v55  ;;  %408 = vst [vmem:[#allocation2 + $0x91] sm:$0xff] %v375_v22  ;;  %409 = vst [vmem:[#allocation2 + $0x99] sm:$0xff] %v376_v23  ;;  %v338_v22 = vsub.f32 %v299_v6, %v8571_v40  ;;  %v8014_v23 = vld [vmem:[#allocation6 + $0x170] sm:$0xff]   ;;  %v8019_v6 = vld [vmem:[#allocation6 + $0x188] sm:$0xff]  }
  0x7b   : > { %6878 = vmatpush3.bf16.msra.mxu0 %v8003_v45  ;;  %410 = vst [vmem:[#allocation2 + $0xa9] sm:$0xff] %v377_v43  ;;  %v304_v43 = vld [vmem:[%s8501_s20 + $0x90] sm:$0xff] }
  0x7c   : > { %6879 = vmatprep.subr.bf16.mxu0 %v8004_v52  ;;  %v433_v25 = vld [vmem:[#allocation2 + $0x18] sm:$0xff]  ;;  %v434_v26 = vld [vmem:[#allocation2 + $0x20] sm:$0xff]  ;;  %v435_v28 = vld [vmem:[#allocation2 + $0x28] sm:$0x3] }
  0x7d   : > { %v795_v29 = vpack.c.bf16 %v434_v26, %v433_v25  ;;  %v538_v30 = vrot.slane %v433_v25, 1  ;;  %v539_v31 = vrot.slane %v434_v26, 1  ;;  %v541_v32 = vrot.slane %v435_v28, 1  ;;  %v436_v33 = vld [vmem:[#allocation2 + $0x30] sm:$0xff]  ;;  %v437_v36 = vld [vmem:[#allocation2 + $0x38] sm:$0xff] }
  0x7e   : > { %v651_v37 = vrot.slane %v433_v25, 2  ;;  %v652_v38 = vrot.slane %v434_v26, 2  ;;  %v654_v39 = vrot.slane %v435_v28, 2  ;;  %v438_v42 = vld [vmem:[#allocation2 + $0x40] sm:$0x3]  ;;  %v8623_v46 = vpack.c.bf16 %v437_v36, %v436_v33  ;;  %v439_v54 = vld [vmem:[#allocation2 + $0x48] sm:$0xff] }
  0x7f   : > { %6880 = vmatpush3.bf16.msra.mxu0 %v8005_v60  ;;  %1622 = vmatprep.mubr.bf16.mxu1 %v795_v29  ;;  %v540_v44 = vsel %vm532_vm0, %v538_v30, %v539_v31  ;;  %v542_v45 = vsel %vm532_vm0, %v539_v31, %v541_v32  ;;  %v543_v47 = vrot.slane %v436_v33, 1  ;;  %v8625_v48 = vld [vmem:[#allocation2 + $0x58] sm:$0x3]  ;;  %v544_v50 = vrot.slane %v437_v36, 1  ;;  %v440_v56 = vld [vmem:[#allocation2 + $0x50] sm:$0xff]  ;;  %v8653_v12 = vld [vmem:[#allocation2 + $0x60] sm:$0xff] }
  0x80   : > { %6881 = vmatprep.subr.bf16.mxu0 %v8006_v5  ;;  %1623 = vmatmul.mubr.bf16.vlgmr.msra.gmra.mrb[0].mxu1 %v794_v27  ;;  %v8627_v49 = vpack.c.bf16 %v542_v45, %v540_v44  ;;  %v653_v51 = vsel %vm645_vm1, %v651_v37, %v652_v38  ;;  %v655_v52 = vsel %vm645_vm1, %v652_v38, %v654_v39  ;;  %v546_v53 = vrot.slane %v438_v42, 1  ;;  %v8011_v60 = vld [vmem:[#allocation6 + $0x120] sm:$0xff]   ;;  %v8655_v13 = vld [vmem:[#allocation2 + $0x68] sm:$0xff]  ;;  %v8673_v26 = vld [vmem:[#allocation2 + $0x78] sm:$0xff] }
  0x81   : > { %1630 = vmatprep.mubr.bf16.mxu1 %v8623_v46  ;;  %v545_v55 = vsel %vm532_vm0, %v543_v47, %v544_v50  ;;  %v656_v57 = vrot.slane %v436_v33, 2  ;;  %v657_v58 = vrot.slane %v437_v36, 2  ;;  %v548_v59 = vrot.slane %v439_v54, 1  ;;  %v8646_v7 = vld [vmem:[#allocation2 + $0x70] sm:$0x3]  ;;  %v301_v28 = vld [vmem:[%s8501_s20 + $0x78] sm:$0xff] }
  0x82   : > { %1469 = vmatprep.mubr.bf16.mxu0 %v8627_v49  ;;  %v547_v61 = vsel %vm532_vm0, %v544_v50, %v546_v53  ;;  %v659_v62 = vrot.slane %v438_v42, 2  ;;  %v549_v63 = vrot.slane %v440_v56, 1  ;;  %v551_v1 = vrot.slane %v8625_v48, 1  ;;  %v8675_v27 = vld [vmem:[#allocation2 + $0x88] sm:$0x3]  ;;  %v8684_v33 = vld [vmem:[#allocation2 + $0x80] sm:$0xff] }
  0x83   : > { %6882 = vmatpush3.bf16.msra.mxu0 %v8007_v16  ;;  %v8636_v0 = vpack.c.bf16 %v655_v52, %v653_v51  ;;  %v8638_v2 = vpack.c.bf16 %v547_v61, %v545_v55  ;;  %v8640_v3 = vpack.c.bf16 %v440_v56, %v439_v54  ;;  %v658_v10 = vsel %vm645_vm1, %v656_v57, %v657_v58  ;;  %v303_v42 = vld [vmem:[%s8501_s20 + $0x88] sm:$0xff]  ;;  %v305_v45 = vld [vmem:[%s8501_s20 + $0x98] sm:$0xff]  ;;  %v306_v47 = vld [vmem:[%s8501_s20 + $0xa0] sm:$0xff] }
  0x84   : > { %6883 = vmatprep.subr.bf16.mxu0 %v8008_v20  ;;  %1470 = vmatmul.mubr.bf16.gmra.mrb[4].mxu0 %v795_v29  ;;  %v550_v4 = vsel %vm532_vm0, %v548_v59, %v549_v63  ;;  %v552_v5 = vsel %vm532_vm0, %v549_v63, %v551_v1  ;;  %v660_v11 = vsel %vm645_vm1, %v657_v58, %v659_v62  ;;  %v661_v14 = vrot.slane %v439_v54, 2  ;;  %v8013_v20 = vld [vmem:[#allocation6 + $0x128] sm:$0xff]   ;;  %v8016_v50 = vld [vmem:[#allocation6 + $0x1c0] sm:$0xff]   ;;  %v308_v54 = vld [vmem:[%s8501_s20 + $0xb0] sm:$0xff] }
  0x85   : > { %1477 = vmatprep.mubr.bf16.mxu0 %v8638_v2  ;;  %v662_v15 = vrot.slane %v440_v56, 2  ;;  %v8658_v16 = vpack.c.bf16 %v552_v5, %v550_v4  ;;  %v664_v17 = vrot.slane %v8625_v48, 2  ;;  %v553_v18 = vrot.slane %v8653_v12, 1  ;;  %v307_v48 = vld [vmem:[%s8501_s20 + $0xa8] sm:$0xff]  ;;  %v8017_v51 = vld [vmem:[#allocation6 + $0x180] sm:$0xff]   ;;  %v309_v55 = vld [vmem:[%s8501_s20 + $0xb8] sm:$0xff]  ;;  %6989 = vmatprep.subr.bf16.mxu1 %v8016_v50 }
  0x86   : > { %v554_v19 = vrot.slane %v8655_v13, 1  ;;  %v556_v21 = vrot.slane %v8646_v7, 1  ;;  %v8667_v24 = vpack.c.bf16 %v660_v11, %v658_v10  ;;  %v8671_v25 = vpack.c.bf16 %v8655_v13, %v8653_v12  ;;  %v8018_v56 = vld [vmem:[#allocation6 + $0x1c8] sm:$0xff]   ;;  %v310_v61 = vld [vmem:[%s8501_s20 + $0xc0] sm:$0xff]  ;;  %6990 = vmatpush3.bf16.msra.mxu1 %v8017_v51 }
  0x87   : > { %6884 = vmatpush3.bf16.msra.mxu0 %v8009_v34  ;;  %v339_v29 = vsub.f32 %v8649_v8, %v8571_v40  ;;  %v663_v30 = vsel %vm645_vm1, %v661_v14, %v662_v15  ;;  %v665_v31 = vsel %vm645_vm1, %v662_v15, %v664_v17  ;;  %v302_v34 = vld [vmem:[%s8501_s20 + $0x80] sm:$0xff]  ;;  %v558_v37 = vrot.slane %v8673_v26, 1  ;;  %v311_v5 = vld [vmem:[%s8501_s20 + $0xc8] sm:$0xff]  ;;  %6991 = vmatprep.subr.bf16.mxu1 %v8018_v56 }
  0x88   : > { %6885 = vmatprep.subr.bf16.mxu0 %v8010_v35  ;;  %1631 = vmatmul.mubr.bf16.gmra.mrb[4].mxu1 %v8636_v0  ;;  %v555_v32 = vsel %vm532_vm0, %v553_v18, %v554_v19  ;;  %v8015_v35 = vld [vmem:[#allocation6 + $0x130] sm:$0xff]   ;;  %v557_v36 = vsel %vm532_vm0, %v554_v19, %v556_v21  ;;  %v559_v38 = vrot.slane %v8684_v33, 1  ;;  %v378_v39 = vmul.f32 %v8576_v41, %v338_v22  ;;  %v314_v56 = vld [vmem:[%s8501_s20 + $0xe0] sm:$0xff] }
  0x89   : > { %1638 = vmatprep.mubr.bf16.mxu1 %v8640_v3  ;;  %v561_v44 = vrot.slane %v8675_v27, 1  ;;  %v8699_v52 = vpack.c.bf16 %v8684_v33, %v8673_v26  ;;  %v666_v53 = vrot.slane %v8653_v12, 2  ;;  %v8705_v57 = vpack.c.bf16 %v665_v31, %v663_v30  ;;  %v312_v19 = vld [vmem:[%s8501_s20 + $0xd0] sm:$0xff] }
  0x8a   : > { %411 = vst [vmem:[#allocation2 + $0xb1] sm:$0xff] %v378_v39  ;;  %v8707_v58 = vpack.c.bf16 %v557_v36, %v555_v32  ;;  %v667_v59 = vrot.slane %v8655_v13, 2  ;;  %v669_v62 = vrot.slane %v8646_v7, 2  ;;  %v560_v63 = vsel %vm532_vm0, %v558_v37, %v559_v38  ;;  %v8020_v7 = vld [vmem:[#allocation6 + $0x1d0] sm:$0xff]   ;;  %6992 = vmatpush3.bf16.msra.mxu1 %v8019_v6  ;;  %v8023_v6 = vld [vmem:[#allocation6 + $0x198] sm:$0xff]   ;;  %v8026_v13 = vld [vmem:[#allocation6 + $0x1e0] sm:$0xff]  }
  0x8b   : > { %6886 = vmatpush3.bf16.msra.mxu0 %v8011_v60  ;;  %v340_v60 = vsub.f32 %v301_v28, %v8571_v40  ;;  %v379_v1 = vmul.f32 %v8576_v41, %v339_v29  ;;  %v341_v4 = vsub.f32 %v302_v34, %v8571_v40  ;;  %v562_v8 = vsel %vm532_vm0, %v559_v38, %v561_v44  ;;  %v8735_v29 = vld [vmem:[#allocation2 + $0x98] sm:$0xff]  ;;  %v8742_v36 = vld [vmem:[#allocation2 + $0xa0] sm:$0x3] }
  0x8c   : > { %6887 = vmatprep.subr.bf16.mxu0 %v8012_v9  ;;  %1478 = vmatmul.mubr.bf16.gmra.mrb[8].mxu0 %v8623_v46  ;;  %v342_v10 = vsub.f32 %v303_v42, %v8571_v40  ;;  %v343_v11 = vsub.f32 %v304_v43, %v8571_v40  ;;  %v344_v15 = vsub.f32 %v305_v45, %v8571_v40  ;;  %v8021_v43 = vld [vmem:[#allocation6 + $0x190] sm:$0xff]   ;;  %v564_v50 = vrot.slane %v8735_v29, 1 }
  0x8d   : > { %1485 = vmatprep.mubr.bf16.mxu0 %v8658_v16  ;;  %v380_v9 = vmul.f32 %v8576_v41, %v340_v60  ;;  %412 = vst [vmem:[#allocation2 + $0xc1] sm:$0xff] %v379_v1  ;;  %v381_v14 = vmul.f32 %v8576_v41, %v341_v4  ;;  %v345_v17 = vsub.f32 %v306_v47, %v8571_v40  ;;  %v8022_v47 = vld [vmem:[#allocation6 + $0x1d8] sm:$0xff]  }
  0x8e   : > { %v346_v18 = vsub.f32 %v307_v48, %v8571_v40  ;;  %v382_v21 = vmul.f32 %v8576_v41, %v342_v10  ;;  %v383_v22 = vmul.f32 %v8576_v41, %v343_v11  ;;  %v348_v28 = vsub.f32 %v309_v55, %v8571_v40  ;;  %6993 = vmatprep.subr.bf16.mxu1 %v8020_v7  ;;  %v8024_v48 = vld [vmem:[#allocation6 + $0x178] sm:$0xff]  }
  0x8f   : > { %6888 = vmatpush3.bf16.msra.mxu0 %v8013_v20  ;;  %v8729_v20 = vld [vmem:[#allocation2 + $0x90] sm:$0xff]  ;;  %413 = vst [vmem:[#allocation2 + $0xc9] sm:$0xff] %v380_v9  ;;  %414 = vst [vmem:[#allocation2 + $0xd9] sm:$0xff] %v381_v14  ;;  %v384_v30 = vmul.f32 %v8576_v41, %v344_v15  ;;  %v385_v31 = vmul.f32 %v8576_v41, %v345_v17  ;;  %v349_v34 = vsub.f32 %v310_v61, %v8571_v40  ;;  %v8025_v4 = vld [vmem:[#allocation6 + $0x138] sm:$0xff]  }
  0x90   : > { %6889 = vmatprep.subr.bf16.mxu0 %v8014_v23  ;;  %1639 = vmatmul.mubr.bf16.gmra.mrb[8].mxu1 %v8667_v24  ;;  %v347_v23 = vsub.f32 %v308_v54, %v8571_v40  ;;  %v386_v32 = vmul.f32 %v8576_v41, %v346_v18  ;;  %415 = vst [vmem:[#allocation2 + $0xe1] sm:$0xff] %v382_v21  ;;  %416 = vst [vmem:[#allocation2 + $0xf1] sm:$0xff] %v383_v22  ;;  %v563_v45 = vrot.slane %v8729_v20, 1  ;;  %v8027_v15 = vld [vmem:[#allocation6 + $0x1a0] sm:$0xff]   ;;  %v8790_v17 = vld [vmem:[#allocation2 + $0xa8] sm:$0xff] }
  0x91   : > { %1646 = vmatprep.mubr.bf16.mxu1 %v8671_v25  ;;  %v388_v38 = vmul.f32 %v8576_v41, %v348_v28  ;;  %v350_v39 = vsub.f32 %v311_v5, %v8571_v40  ;;  %v351_v42 = vsub.f32 %v312_v19, %v8571_v40  ;;  %v8748_v44 = vpack.c.bf16 %v562_v8, %v560_v63  ;;  %v8784_v14 = vld [vmem:[#allocation2 + $0xb8] sm:$0x3] }
  0x92   : > { %v387_v37 = vmul.f32 %v8576_v41, %v347_v23  ;;  %417 = vst [vmem:[#allocation2 + $0xf9] sm:$0xff] %v384_v30  ;;  %418 = vst [vmem:[#allocation2 + $0x109] sm:$0xff] %v385_v31  ;;  %v389_v51 = vmul.f32 %v8576_v41, %v349_v34  ;;  %v668_v60 = vsel %vm645_vm1, %v666_v53, %v667_v59  ;;  %v566_v63 = vrot.slane %v8742_v36, 1  ;;  %v8028_v18 = vld [vmem:[#allocation6 + $0x1e8] sm:$0xff]  }
  0x93   : > { %6890 = vmatpush3.bf16.msra.mxu0 %v8015_v35  ;;  %v313_v35 = vld [vmem:[%s8501_s20 + $0xd8] sm:$0xff]  ;;  %419 = vst [vmem:[#allocation2 + $0x111] sm:$0xff] %v386_v32  ;;  %421 = vst [vmem:[#allocation2 + $0x129] sm:$0xff] %v388_v38  ;;  %v390_v54 = vmul.f32 %v8576_v41, %v350_v39  ;;  %v670_v61 = vsel %vm645_vm1, %v667_v59, %v669_v62  ;;  %v391_v1 = vmul.f32 %v8576_v41, %v351_v42  ;;  %v8029_v30 = vld [vmem:[#allocation6 + $0x1a8] sm:$0xff]  }
  0x94   : > { %1486 = vmatmul.mubr.bf16.gmra.mrb[12].mxu0 %v8640_v3  ;;  %420 = vst [vmem:[#allocation2 + $0x121] sm:$0xff] %v387_v37  ;;  %v352_v55 = vsub.f32 %v313_v35, %v8571_v40  ;;  %422 = vst [vmem:[#allocation2 + $0x139] sm:$0xff] %v389_v51  ;;  %6994 = vmatpush3.bf16.msra.mxu1 %v8021_v43  ;;  %v353_v12 = vsub.f32 %v314_v56, %v8571_v40  ;;  %v671_v62 = vrot.slane %v8673_v26, 2  ;;  %v315_v51 = vld [vmem:[%s8501_s20 + $0xe8] sm:$0xff] }
  0x95   : > { %1493 = vmatprep.mubr.bf16.mxu0 %v8707_v58  ;;  %423 = vst [vmem:[#allocation2 + $0x141] sm:$0xff] %v390_v54  ;;  %6891 = vmatprep.subr.bf16.mxu0 %v8024_v48  ;;  %424 = vst [vmem:[#allocation2 + $0x151] sm:$0xff] %v391_v1  ;;  %v8771_v53 = vpack.c.bf16 %v670_v61, %v668_v60  ;;  %v8776_v59 = vpack.c.bf16 %v8735_v29, %v8729_v20  ;;  %v672_v8 = vrot.slane %v8684_v33, 2  ;;  %v8030_v54 = vld [vmem:[#allocation6 + $0x1f0] sm:$0xff]  }
  0x96   : > { %v392_v5 = vmul.f32 %v8576_v41, %v352_v55  ;;  %6995 = vmatprep.subr.bf16.mxu1 %v8022_v47  ;;  %v674_v9 = vrot.slane %v8675_v27, 2  ;;  %v565_v10 = vsel %vm532_vm0, %v563_v45, %v564_v50  ;;  %v567_v11 = vsel %vm532_vm0, %v564_v50, %v566_v63  ;;  %v8792_v27 = vld [vmem:[#allocation2 + $0xb0] sm:$0xff]  ;;  %v8819_v43 = vld [vmem:[#allocation2 + $0xc8] sm:$0xff]  ;;  %v8828_v60 = vld [vmem:[#allocation2 + $0xd8] sm:$0xff] }
  0x97   : > { %6892 = vmatpush3.bf16.msra.mxu0 %v8025_v4  ;;  %v393_v7 = vmul.f32 %v8576_v41, %v353_v12  ;;  %v673_v26 = vsel %vm645_vm1, %v671_v62, %v672_v8  ;;  %v8788_v33 = vpack.c.bf16 %v567_v11, %v565_v10  ;;  %v568_v21 = vrot.slane %v8790_v17, 1  ;;  %v8805_v37 = vld [vmem:[#allocation2 + $0xd0] sm:$0x3]  ;;  %v8830_v61 = vld [vmem:[#allocation2 + $0xe8] sm:$0x3]  ;;  %v8835_v1 = vld [vmem:[#allocation2 + $0xe0] sm:$0xff] }
  0x98   : > { %1647 = vmatmul.mubr.bf16.gmra.mrb[12].mxu1 %v8705_v57  ;;  %425 = vst [vmem:[#allocation2 + $0x159] sm:$0xff] %v392_v5  ;;  %v675_v19 = vsel %vm645_vm1, %v672_v8, %v674_v9  ;;  %v569_v22 = vrot.slane %v8792_v27, 1  ;;  %v571_v23 = vrot.slane %v8784_v14, 1  ;;  %v676_v28 = vrot.slane %v8729_v20, 2  ;;  %v8810_v20 = vld [vmem:[#allocation2 + $0xc0] sm:$0xff]  ;;  %v8032_v62 = vld [vmem:[#allocation6 + $0x1f8] sm:$0xff]  }
  0x99   : > { %1654 = vmatprep.mubr.bf16.mxu1 %v8699_v52  ;;  %6996 = vmatpush3.bf16.msra.mxu1 %v8023_v6  ;;  %426 = vst [vmem:[#allocation2 + $0x169] sm:$0xff] %v393_v7  ;;  %v677_v31 = vrot.slane %v8735_v29, 2  ;;  %v679_v32 = vrot.slane %v8742_v36, 2  ;;  %v681_v34 = vrot.slane %v8790_v17, 2  ;;  %v682_v35 = vrot.slane %v8792_v27, 2  ;;  %v8031_v6 = vld [vmem:[#allocation6 + $0x1b0] sm:$0xff]  }
  0x9a   : > { %6997 = vmatprep.subr.bf16.mxu1 %v8026_v13  ;;  %v8807_v38 = vpack.c.bf16 %v675_v19, %v673_v26  ;;  %v684_v39 = vrot.slane %v8784_v14, 2  ;;  %v8815_v29 = vpack.c.bf16 %v8792_v27, %v8790_v17  ;;  %v570_v36 = vsel %vm532_vm0, %v568_v21, %v569_v22  ;;  %v8838_v5 = vld [vmem:[#allocation2 + $0x100] sm:$0x3]  ;;  %v8842_v13 = vld [vmem:[#allocation2 + $0xf0] sm:$0xff]  ;;  %v8033_v10 = vld [vmem:[#allocation6 + $0x1b8] sm:$0xff]  }
  0x9b   : > { %v572_v42 = vsel %vm532_vm0, %v569_v22, %v571_v23  ;;  %v573_v45 = vrot.slane %v8810_v20, 1  ;;  %v574_v47 = vrot.slane %v8819_v43, 1  ;;  %v576_v48 = vrot.slane %v8805_v37, 1 }
  0x9c   : > { %1494 = vmatmul.mubr.bf16.gmra.mrb[16].mxu0 %v8671_v25  ;;  %v686_v50 = vrot.slane %v8810_v20, 2  ;;  %v678_v55 = vsel %vm645_vm1, %v676_v28, %v677_v31  ;;  %v680_v56 = vsel %vm645_vm1, %v677_v31, %v679_v32  ;;  %v8833_v63 = vpack.c.bf16 %v572_v42, %v570_v36  ;;  %v8864_v28 = vld [vmem:[#allocation2 + $0x118] sm:$0x3]  ;;  %v8870_v42 = vld [vmem:[#allocation2 + $0x108] sm:$0xff] }
  0x9d   : > { %1501 = vmatprep.mubr.bf16.mxu0 %v8748_v44  ;;  %6998 = vmatpush3.bf16.msra.mxu1 %v8027_v15  ;;  %v687_v4 = vrot.slane %v8819_v43, 2  ;;  %v689_v12 = vrot.slane %v8805_v37, 2  ;;  %v8844_v8 = vpack.c.bf16 %v680_v56, %v678_v55  ;;  %v578_v9 = vrot.slane %v8828_v60, 1  ;;  %v8854_v15 = vld [vmem:[#allocation2 + $0xf8] sm:$0xff]  ;;  %v316_v55 = vld [vmem:[%s8501_s20 + $0xf0] sm:$0xff] }
  0x9e   : > { %6999 = vmatprep.subr.bf16.mxu1 %v8028_v18  ;;  %v8850_v11 = vpack.c.bf16 %v8819_v43, %v8810_v20  ;;  %v579_v7 = vrot.slane %v8835_v1, 1  ;;  %v581_v14 = vrot.slane %v8830_v61, 1  ;;  %v354_v26 = vsub.f32 %v315_v51, %v8571_v40  ;;  %v8857_v18 = vld [vmem:[#allocation6 + $0x200] sm:$0xff]   ;;  %v8886_v56 = vld [vmem:[#allocation2 + $0x120] sm:$0xff] }
  0x9f   : > { %v692_v21 = vrot.slane %v8835_v1, 2  ;;  %v583_v23 = vrot.slane %v8842_v13, 1  ;;  %v577_v31 = vsel %vm532_vm0, %v574_v47, %v576_v48  ;;  %v584_v32 = vrot.slane %v8854_v15, 1  ;;  %7769 = vmatprep.subr.bf16.mxu0 %v8857_v18  ;;  %v8873_v51 = vld [vmem:[#allocation2 + $0x110] sm:$0xff] }
  0xa0   : > { %1655 = vmatmul.mubr.bf16.gmra.mrb[16].mxu1 %v8771_v53  ;;  %v586_v36 = vrot.slane %v8838_v5, 1  ;;  %v394_v17 = vmul.f32 %v8576_v41, %v354_v26  ;;  %v8914_v48 = vpack.c.bf16 %v8835_v1, %v8828_v60  ;;  %v706_v20 = vrot.slane %v8886_v56, 2 }
  0xa1   : > { %1662 = vmatprep.mubr.bf16.mxu1 %v8776_v59  ;;  %7000 = vmatpush3.bf16.msra.mxu1 %v8029_v30  ;;  %v575_v30 = vsel %vm532_vm0, %v573_v45, %v574_v47  ;;  %v683_v45 = vsel %vm645_vm1, %v681_v34, %v682_v35  ;;  %v685_v47 = vsel %vm645_vm1, %v682_v35, %v684_v39  ;;  %v591_v34 = vrot.slane %v8864_v28, 1 }
  0xa2   : > { %7001 = vmatprep.subr.bf16.mxu1 %v8030_v54  ;;  %427 = vst [vmem:[#allocation2 + $0x171] sm:$0xff] %v394_v17  ;;  %v8905_v26 = vpack.c.bf16 %v685_v47, %v683_v45  ;;  %v8908_v54 = vld [vmem:[#allocation2 + $0x130] sm:$0x3]  ;;  %v8920_v45 = vld [vmem:[#allocation2 + $0x128] sm:$0xff]  ;;  %v8922_v47 = vld [vmem:[#allocation2 + $0x138] sm:$0xff]  ;;  %v585_v27 = vsel %vm532_vm0, %v583_v23, %v584_v32  ;;  %v10628_v23 = vrot.slane %v8828_v60, 2 }
  0xa3   : > { %v8924_v17 = vld [vmem:[#allocation2 + $0x140] sm:$0xff]  ;;  %v709_v37 = vrot.slane %v8908_v54, 2  ;;  %v598_v43 = vrot.slane %v8922_v47, 1  ;;  %v10630_v60 = vrot.slane %v8873_v51, 1 }
  0xa4   : > { %1502 = vmatmul.mubr.bf16.gmra.mrb[20].mxu0 %v8699_v52 }
  0xa5   : > { %1509 = vmatprep.mubr.bf16.mxu0 %v8788_v33  ;;  %7002 = vmatpush3.bf16.msra.mxu1 %v8031_v6  ;;  %v317_v6 = vld [vmem:[%s8501_s20 + $0xf8] sm:$0xff]  ;;  %v10632_v1 = vmov %v10630_v60 }
  0xa6   : > { %7003 = vmatprep.subr.bf16.mxu1 %v8032_v62  ;;  %v8890_v62 = vpack.c.bf16 %v577_v31, %v575_v30  ;;  %v355_v31 = vsub.f32 %v316_v55, %v8571_v40  ;;  %v580_v55 = vsel %vm532_vm0, %v578_v9, %v579_v7  ;;  %v690_v9 = vsel %vm645_vm1, %v687_v4, %v689_v12 }
  0xa8   : > { %1663 = vmatmul.mubr.bf16.gmra.mrb[20].mxu1 %v8807_v38  ;;  %v395_v35 = vmul.f32 %v8576_v41, %v355_v31  ;;  %v8952_v31 = vld [vmem:[#allocation2 + $0x158] sm:$0xff] }
  0xa9   : > { %1670 = vmatprep.mubr.bf16.mxu1 %v8815_v29  ;;  %7004 = vmatpush3.bf16.msra.mxu1 %v8033_v10  ;;  %v356_v10 = vsub.f32 %v317_v6, %v8571_v40  ;;  %v582_v40 = vsel %vm532_vm0, %v579_v7, %v581_v14  ;;  %v8918_v6 = vld [vmem:[#allocation2 + $0x148] sm:$0x3]  ;;  %v8939_v14 = vld [vmem:[#allocation2 + $0x160] sm:$0x3] }
  0xaa   : > { %428 = vst [vmem:[#allocation2 + $0x181] sm:$0xff] %v395_v35  ;;  %v8937_v7 = vpack.c.bf16 %v582_v40, %v580_v55  ;;  %v596_v35 = vrot.slane %v8908_v54, 1  ;;  %v601_v12 = vrot.slane %v8918_v6, 1  ;;  %v8962_v54 = vpack.c.bf16 %v8854_v15, %v8842_v13 }
  0xab   : > { %v396_v39 = vmul.f32 %v8576_v41, %v356_v10  ;;  %v688_v41 = vsel %vm645_vm1, %v686_v50, %v687_v4  ;;  %v594_v10 = vrot.slane %v8920_v45, 1  ;;  %v707_v50 = vrot.slane %v8920_v45, 2 }
  0xac   : > { %1510 = vmatmul.mubr.bf16.gmra.mrb[24].mxu0 %v8776_v59  ;;  %10626 = vst [vmem:[#allocation12_spill] sm:$0xff] %v8937_v7  ;;  %v599_v4 = vrot.slane %v8924_v17, 1  ;;  %v8957_v30 = vpack.c.bf16 %v690_v9, %v688_v41  ;;  %v587_v55 = vsel %vm532_vm0, %v584_v32, %v586_v36  ;;  %v714_v41 = vrot.slane %v8918_v6, 2 }
  0xad   : > { %1517 = vmatprep.mubr.bf16.mxu0 %v8833_v63  ;;  %429 = vst [vmem:[#allocation2 + $0x189] sm:$0xff] %v396_v39  ;;  %v8950_v39 = vld [vmem:[#allocation2 + $0x150] sm:$0xff]  ;;  %v604_v40 = vrot.slane %v8952_v31, 1  ;;  %v606_v22 = vrot.slane %v8939_v14, 1  ;;  %v8979_v19 = vpack.c.bf16 %v587_v55, %v585_v27  ;;  %v693_v32 = vsel %vm645_vm1, %v10628_v23, %v692_v21 }
  0xae   : > { %v603_v9 = vrot.slane %v8950_v39, 1  ;;  %v10629_v36 = vrot.slane %v8830_v61, 2  ;;  %v8998_v27 = vpack.c.bf16 %v8873_v51, %v8870_v42  ;;  %v10631_v55 = vrot.slane %v8870_v42, 1 }
  0xaf   : > { %10627 = vst [vmem:[#allocation13_spill] sm:$0xff] %v8979_v19 }
  0xb0   : > { %1671 = vmatmul.mubr.bf16.gmra.mrb[24].mxu1 %v8844_v8  ;;  %v695_v6 = vsel %vm645_vm1, %v692_v21, %v10629_v36  ;;  %v590_v61 = vsel %vm532_vm0, %v10631_v55, %v10630_v60  ;;  %v592_v21 = vsel %vm532_vm0, %v10632_v1, %v591_v34  ;;  %v10634_v36 = vrot.slane %v8842_v13, 2 }
  0xb1   : > { %1678 = vmatprep.mubr.bf16.mxu1 %v8850_v11  ;;  %v9009_v23 = vpack.c.bf16 %v592_v21, %v590_v61  ;;  %v716_v34 = vrot.slane %v8950_v39, 2  ;;  %v717_v61 = vrot.slane %v8952_v31, 2  ;;  %v9030_v13 = vpack.c.bf16 %v8920_v45, %v8886_v56  ;;  %v475_v21 = vld [vmem:[#allocation2 + $0x168] sm:$0xff] }
  0xb2   : > { %v10639_v45 = vrot.slane %v8870_v42, 2  ;;  %v600_v42 = vsel %vm532_vm0, %v598_v43, %v599_v4  ;;  %v476_v43 = vld [vmem:[#allocation2 + $0x170] sm:$0xff] }
  0xb4   : > { %1518 = vmatmul.mubr.bf16.gmra.mrb[28].mxu0 %v8815_v29 }
  0xb5   : > { %1525 = vmatprep.mubr.bf16.mxu0 %v8890_v62 }
  0xb8   : > { %1679 = vmatmul.mubr.bf16.gmra.mrb[28].mxu1 %v8905_v26 }
  0xb9   : > { %1686 = vmatprep.mubr.bf16.mxu1 %v8914_v48 }
  0xbc   : > { %1526 = vmatmul.mubr.bf16.gmra.mrb[32].mxu0 %v8850_v11 }
  0xbd   : > { %1533 = vmatprep.mubr.bf16.mxu0 %v8937_v7  ;;  %v8993_v7 = vpack.c.bf16 %v695_v6, %v693_v32  ;;  %v10633_v32 = vrot.slane %v8854_v15, 2 }
  0xbf   : > { %v698_v6 = vsel %vm645_vm1, %v10634_v36, %v10633_v32  ;;  %v10636_v60 = vmov %v10633_v32  ;;  %v719_v36 = vrot.slane %v8939_v14, 2  ;;  %v9057_v14 = vpack.c.bf16 %v8924_v17, %v8922_v47 }
  0xc0   : > { %1687 = vmatmul.mubr.bf16.gmra.mrb[32].mxu1 %v8957_v30 }
  0xc1   : > { %1694 = vmatprep.mubr.bf16.mxu1 %v8962_v54 }
  0xc4   : > { %1534 = vmatmul.mubr.bf16.gmra.mrb[36].mxu0 %v8914_v48 }
  0xc5   : > { %1541 = vmatprep.mubr.bf16.mxu0 %v8979_v19  ;;  %v10635_v19 = vrot.slane %v8838_v5, 2  ;;  %v10637_v5 = vrot.slane %v8886_v56, 1 }
  0xc7   : > { %v700_v55 = vsel %vm645_vm1, %v10636_v60, %v10635_v19  ;;  %v595_v15 = vsel %vm532_vm0, %v10637_v5, %v594_v10  ;;  %v597_v19 = vsel %vm532_vm0, %v594_v10, %v596_v35  ;;  %v10638_v60 = vrot.slane %v8873_v51, 2 }
  0xc8   : > { %1695 = vmatmul.mubr.bf16.gmra.mrb[36].mxu1 %v8993_v7  ;;  %v9025_v1 = vpack.c.bf16 %v700_v55, %v698_v6  ;;  %v9037_v32 = vpack.c.bf16 %v597_v19, %v595_v15  ;;  %v608_v6 = vrot.slane %v475_v21, 1  ;;  %v10640_v55 = vrot.slane %v8864_v28, 2 }
  0xc9   : > { %1702 = vmatprep.mubr.bf16.mxu1 %v8998_v27  ;;  %v703_v56 = vsel %vm645_vm1, %v10639_v45, %v10638_v60  ;;  %v10641_v10 = vmov %v10638_v60  ;;  %v602_v15 = vsel %vm532_vm0, %v599_v4, %v601_v12  ;;  %v708_v51 = vsel %vm645_vm1, %v706_v20, %v707_v50  ;;  %v477_v60 = vld [vmem:[#allocation2 + $0x178] sm:$0x3] }
  0xca   : > { %v705_v35 = vsel %vm645_vm1, %v10641_v10, %v10640_v55  ;;  %v9062_v28 = vpack.c.bf16 %v602_v15, %v600_v42  ;;  %v710_v19 = vsel %vm645_vm1, %v707_v50, %v709_v37  ;;  %v9073_v4 = vpack.c.bf16 %v8952_v31, %v8950_v39 }
  0xcb   : > { %v9052_v5 = vpack.c.bf16 %v705_v35, %v703_v56  ;;  %v9068_v45 = vpack.c.bf16 %v710_v19, %v708_v51  ;;  %v605_v12 = vsel %vm532_vm0, %v603_v9, %v604_v40  ;;  %v607_v56 = vsel %vm532_vm0, %v604_v40, %v606_v22  ;;  %v9103_v51 = vld [vmem:[#allocation2 + $0x180] sm:$0xff]  ;;  %v9105_v19 = vld [vmem:[#allocation2 + $0x188] sm:$0xff] }
  0xcc   : > { %1542 = vmatmul.mubr.bf16.gmra.mrb[40].mxu0 %v8962_v54  ;;  %v609_v55 = vrot.slane %v476_v43, 1  ;;  %v611_v20 = vrot.slane %v477_v60, 1  ;;  %v9078_v50 = vpack.c.bf16 %v607_v56, %v605_v12  ;;  %v10642_v37 = vrot.slane %v8924_v17, 2 }
  0xcd   : > { %1549 = vmatprep.mubr.bf16.mxu0 %v9009_v23  ;;  %v10643_v10 = vrot.slane %v8922_v47, 2  ;;  %v9093_v40 = vpack.c.bf16 %v476_v43, %v475_v21  ;;  %v718_v17 = vsel %vm645_vm1, %v716_v34, %v717_v61  ;;  %v721_v15 = vrot.slane %v475_v21, 2 }
  0xce   : > { %v10644_v39 = vmov %v10642_v37  ;;  %v610_v9 = vsel %vm532_vm0, %v608_v6, %v609_v55  ;;  %v612_v42 = vsel %vm532_vm0, %v609_v55, %v611_v20  ;;  %v722_v12 = vrot.slane %v476_v43, 2  ;;  %v8037_v43 = vld [vmem:[#allocation6 + $0x218] sm:$0xff]  }
  0xcf   : > { %v713_v35 = vsel %vm645_vm1, %v10643_v10, %v10642_v37  ;;  %v715_v31 = vsel %vm645_vm1, %v10644_v39, %v714_v41  ;;  %v9098_v47 = vpack.c.bf16 %v612_v42, %v610_v9  ;;  %v720_v41 = vsel %vm645_vm1, %v717_v61, %v719_v36  ;;  %v8035_v36 = vld [vmem:[#allocation6 + $0x208] sm:$0xff]  }
  0xd0   : > { %1703 = vmatmul.mubr.bf16.gmra.mrb[40].mxu1 %v9025_v1  ;;  %v9090_v22 = vpack.c.bf16 %v715_v31, %v713_v35  ;;  %v724_v56 = vrot.slane %v477_v60, 2  ;;  %v9108_v6 = vpack.c.bf16 %v720_v41, %v718_v17  ;;  %v9113_v55 = vpack.c.bf16 %v9105_v19, %v9103_v51  ;;  %v8036_v60 = vld [vmem:[#allocation6 + $0x210] sm:$0xff]   ;;  %v480_v31 = vld [vmem:[#allocation2 + $0x190] sm:$0x3] }
  0xd1   : > { %1710 = vmatprep.mubr.bf16.mxu1 %v9030_v13  ;;  %v723_v34 = vsel %vm645_vm1, %v721_v15, %v722_v12  ;;  %v761_v15 = vrot.slane %v9103_v51, 1 }
  0xd2   : > { %v725_v61 = vsel %vm645_vm1, %v722_v12, %v724_v56  ;;  %v764_v12 = vrot.slane %v480_v31, 1 }
  0xd3   : > { %v9120_v21 = vpack.c.bf16 %v725_v61, %v723_v34 }
  0xd4   : > { %1550 = vmatmul.mubr.bf16.gmra.mrb[44].mxu0 %v8998_v27 }
  0xd5   : > { %1557 = vmatprep.mubr.bf16.mxu0 %v9037_v32 }
  0xd8   : > { %1711 = vmatmul.mubr.bf16.gmra.mrb[44].mxu1 %v9052_v5 }
  0xd9   : > { %1718 = vmatprep.mubr.bf16.mxu1 %v9057_v14 }
  0xdc   : > { %1558 = vmatmul.mubr.bf16.gmra.mrb[48].mxu0 %v9030_v13 }
  0xdd   : > { %1565 = vmatprep.mubr.bf16.mxu0 %v9062_v28 }
  0xe0   : > { %1719 = vmatmul.mubr.bf16.gmra.mrb[48].mxu1 %v9068_v45 }
  0xe1   : > { %1726 = vmatprep.mubr.bf16.mxu1 %v9073_v4 }
  0xe4   : > { %1566 = vmatmul.mubr.bf16.gmra.mrb[52].mxu0 %v9057_v14 }
  0xe5   : > { %1573 = vmatprep.mubr.bf16.mxu0 %v9078_v50 }
  0xe8   : > { %1727 = vmatmul.mubr.bf16.gmra.mrb[52].mxu1 %v9090_v22 }
  0xe9   : > { %1734 = vmatprep.mubr.bf16.mxu1 %v9093_v40 }
  0xec   : > { %1574 = vmatmul.mubr.bf16.gmra.mrb[56].mxu0 %v9073_v4 }
  0xed   : > { %1581 = vmatprep.mubr.bf16.mxu0 %v9098_v47 }
  0xf0   : > { %1735 = vmatmul.mubr.bf16.gmra.mrb[56].mxu1 %v9108_v6 }
  0xf1   : > { %1742 = vmatprep.mubr.bf16.mxu1 %v9113_v55 }
  0xf4   : > { %1582 = vmatmul.mubr.bf16.gmra.mrb[60].mxu0 %v9093_v40 }
  0xf5   : > { %1783 = vmatprep.mubr.bf16.mxu0 %v8636_v0  ;;  %v8038_v0 = vld [vmem:[#allocation6 + $0x220] sm:$0xff]  }
  0xf8   : > { %1743 = vmatmul.mubr.bf16.gmra.mrb[60].mxu1 %v9120_v21 }
  0xf9   : > { %1944 = vmatprep.mubr.bf16.mxu1 %v8638_v2 }
  0xfc   : > { %1784 = vmatmul.mubr.bf16.vlgmr.msra.gmra.mrb[64].mxu0 %v8627_v49  ;;  %v8039_v49 = vld [vmem:[#allocation6 + $0x228] sm:$0xff]  }
  0xfd   : > { %7770 = vmatpush3.bf16.msra.mxu0 %v8857_v18  ;;  %1791 = vmatprep.mubr.bf16.mxu0 %v8667_v24 }
  0xfe   : > { %7771 = vmatprep.subr.bf16.mxu0 %v8035_v36 }
 0x100   : > { %1945 = vmatmul.mubr.bf16.vlgmr.msra.gmra.mrb[64].mxu1 %v8623_v46  ;;  %v8040_v46 = vld [vmem:[#allocation6 + $0x230] sm:$0xff]  }
 0x101   : > { %7772 = vmatpush3.bf16.msra.mxu0 %v8035_v36  ;;  %1952 = vmatprep.mubr.bf16.mxu1 %v8658_v16 }
 0x102   : > { %7773 = vmatprep.subr.bf16.mxu0 %v8036_v60 }
 0x104   : > { %1792 = vmatmul.mubr.bf16.gmra.mrb[68].mxu0 %v8638_v2  ;;  %v8041_v2 = vld [vmem:[#allocation6 + $0x238] sm:$0xff]  }
 0x105   : > { %1799 = vmatprep.mubr.bf16.mxu0 %v8705_v57  ;;  %7774 = vmatpush3.bf16.msra.mxu0 %v8036_v60 }
 0x106   : > { %7775 = vmatprep.subr.bf16.mxu0 %v8037_v43 }
 0x108   : > { %1953 = vmatmul.mubr.bf16.gmra.mrb[68].mxu1 %v8640_v3  ;;  %v10645_v3 = vld [vmem:[#allocation12_spill] sm:$0xff] }
 0x109   : > { %7776 = vmatpush3.bf16.msra.mxu0 %v8037_v43  ;;  %1960 = vmatprep.mubr.bf16.mxu1 %v8707_v58 }
 0x10a   : > { %7777 = vmatprep.subr.bf16.mxu0 %v8038_v0 }
 0x10c   : > { %1800 = vmatmul.mubr.bf16.gmra.mrb[72].mxu0 %v8658_v16  ;;  %v10646_v16 = vld [vmem:[#allocation13_spill] sm:$0xff] }
 0x10d   : > { %1807 = vmatprep.mubr.bf16.mxu0 %v8771_v53  ;;  %7778 = vmatpush3.bf16.msra.mxu0 %v8038_v0 }
 0x10e   : > { %7779 = vmatprep.subr.bf16.mxu0 %v8039_v49 }
 0x110   : > { %1961 = vmatmul.mubr.bf16.gmra.mrb[72].mxu1 %v8671_v25 }
 0x111   : > { %7780 = vmatpush3.bf16.msra.mxu0 %v8039_v49  ;;  %1968 = vmatprep.mubr.bf16.mxu1 %v8748_v44 }
 0x112   : > { %7781 = vmatprep.subr.bf16.mxu0 %v8040_v46 }
 0x114   : > { %1808 = vmatmul.mubr.bf16.gmra.mrb[76].mxu0 %v8707_v58 }
 0x115   : > { %1815 = vmatprep.mubr.bf16.mxu0 %v8807_v38  ;;  %7782 = vmatpush3.bf16.msra.mxu0 %v8040_v46  ;;  %v8042_v46 = vld [vmem:[#allocation6 + $0x280] sm:$0xff]  }
 0x116   : > { %7783 = vmatprep.subr.bf16.mxu0 %v8041_v2  ;;  %7125 = vmatprep.subr.bf16.mxu1 %v8042_v46 }
 0x118   : > { %1969 = vmatmul.mubr.bf16.gmra.mrb[76].mxu1 %v8699_v52 }
 0x119   : > { %7784 = vmatpush3.bf16.msra.mxu0 %v8041_v2  ;;  %1976 = vmatprep.mubr.bf16.mxu1 %v8788_v33 }
 0x11c   : > { %1816 = vmatmul.mubr.bf16.gmra.mrb[80].mxu0 %v8748_v44 }
 0x11d   : > { %1823 = vmatprep.mubr.bf16.mxu0 %v8844_v8 }
 0x120   : > { %1977 = vmatmul.mubr.bf16.gmra.mrb[80].mxu1 %v8776_v59 }
 0x121   : > { %1984 = vmatprep.mubr.bf16.mxu1 %v8833_v63 }
 0x124   : > { %1824 = vmatmul.mubr.bf16.gmra.mrb[84].mxu0 %v8788_v33 }
 0x125   : > { %1831 = vmatprep.mubr.bf16.mxu0 %v8905_v26 }
 0x128   : > { %1985 = vmatmul.mubr.bf16.gmra.mrb[84].mxu1 %v8815_v29  ;;  %v9172_v29 = vld [vmem:[%s10604_s3] ss:$0 sm:$0xff] }
 0x129   : > { %1992 = vmatprep.mubr.bf16.mxu1 %v8890_v62 }
 0x12c   : > { %1832 = vmatmul.mubr.bf16.gmra.mrb[88].mxu0 %v8833_v63 }
 0x12d   : > { %1839 = vmatprep.mubr.bf16.mxu0 %v8957_v30 }
 0x130   : > { %1993 = vmatmul.mubr.bf16.gmra.mrb[88].mxu1 %v8850_v11 }
 0x131   : > { %2000 = vmatprep.mubr.bf16.mxu1 %v10645_v3 }
 0x134   : > { %1840 = vmatmul.mubr.bf16.gmra.mrb[92].mxu0 %v8890_v62 }
 0x135   : > { %1847 = vmatprep.mubr.bf16.mxu0 %v8993_v7 }
 0x138   : > { %2001 = vmatmul.mubr.bf16.gmra.mrb[92].mxu1 %v8914_v48 }
 0x139   : > { %2008 = vmatprep.mubr.bf16.mxu1 %v10646_v16 }
 0x13c   : > { %1848 = vmatmul.mubr.bf16.gmra.mrb[96].mxu0 %v10645_v3 }
 0x13d   : > { %1855 = vmatprep.mubr.bf16.mxu0 %v9025_v1 }
 0x140   : > { %2009 = vmatmul.mubr.bf16.gmra.mrb[96].mxu1 %v8962_v54 }
 0x141   : > { %2016 = vmatprep.mubr.bf16.mxu1 %v9009_v23 }
 0x144   : > { %1856 = vmatmul.mubr.bf16.gmra.mrb[100].mxu0 %v10646_v16 }
 0x145   : > { %1863 = vmatprep.mubr.bf16.mxu0 %v9052_v5 }
 0x148   : > { %2017 = vmatmul.mubr.bf16.gmra.mrb[100].mxu1 %v8998_v27 }
 0x149   : > { %2024 = vmatprep.mubr.bf16.mxu1 %v9037_v32 }
 0x14c   : > { %1864 = vmatmul.mubr.bf16.gmra.mrb[104].mxu0 %v9009_v23 }
 0x14d   : > { %v6669_v25 = vpop.f32.mrb[0].mxu0  ;;  %1871 = vmatprep.mubr.bf16.mxu0 %v9068_v45 }
 0x14e   : > { %v6670_v52 = vpop.f32.mrb[1].mxu0 }
 0x14f   : > { %v6671_v58 = vadd.f32 %v6670_v52, %v6669_v25  ;;  %v6672_v44 = vpop.f32.mrb[2].mxu0 }
 0x150   : > { %v6673_v59 = vpop.f32.mrb[3].mxu0  ;;  %2025 = vmatmul.mubr.bf16.gmra.mrb[104].mxu1 %v9030_v13 }
 0x151   : > { %v6674_v33 = vadd.f32 %v6673_v59, %v6672_v44  ;;  %2032 = vmatprep.mubr.bf16.mxu1 %v9062_v28  ;;  %v1464_v63 = vadd.f32 %v6671_v58, %v9172_v29  ;;  %v768_v58 = vrot.slane %v9103_v51, 2  ;;  %v769_v44 = vrot.slane %v9105_v19, 2 }
 0x152   : > { %v771_v59 = vrot.slane %v480_v31, 2 }
 0x153   : > { %v6781_v11 = vpop.f32.mrb[0].mxu1  ;;  %v1467_v48 = vadd.f32 %v6674_v33, %v9172_v29 }
 0x154   : > { %1872 = vmatmul.mubr.bf16.gmra.mrb[108].mxu0 %v9037_v32  ;;  %v6782_v18 = vpop.f32.mrb[1].mxu1 }
 0x155   : > { %1879 = vmatprep.mubr.bf16.mxu0 %v9090_v22  ;;  %v6783_v62 = vadd.f32 %v6782_v18, %v6781_v11  ;;  %v6784_v54 = vpop.f32.mrb[2].mxu1  ;;  %v9203_v18 = vld [vmem:[#allocation2 + $0x1a8] sm:$0x3] }
 0x156   : > { %v6785_v27 = vpop.f32.mrb[3].mxu1 }
 0x157   : > { %v6675_v23 = vpop.f32.mrb[4].mxu0  ;;  %v9179_v13 = vadd.f32 %v6783_v62, %v1464_v63  ;;  %v6786_v20 = vadd.f32 %v6785_v27, %v6784_v54  ;;  %v770_v27 = vsel %vm645_vm1, %v768_v58, %v769_v44 }
 0x158   : > { %v6676_v37 = vpop.f32.mrb[5].mxu0  ;;  %2033 = vmatmul.mubr.bf16.gmra.mrb[108].mxu1 %v9057_v14  ;;  %v762_v14 = vrot.slane %v9105_v19, 1 }
 0x159   : > { %v6677_v10 = vadd.f32 %v6676_v37, %v6675_v23  ;;  %v6678_v35 = vpop.f32.mrb[6].mxu0  ;;  %v9182_v39 = vadd.f32 %v6786_v20, %v1467_v48  ;;  %2040 = vmatprep.mubr.bf16.mxu1 %v9078_v50  ;;  %v772_v23 = vsel %vm645_vm1, %v769_v44, %v771_v59 }
 0x15a   : > { %v6679_v32 = vpop.f32.mrb[7].mxu0  ;;  %v763_v16 = vsel %vm532_vm0, %v761_v15, %v762_v14  ;;  %v765_v25 = vsel %vm532_vm0, %v762_v14, %v764_v12 }
 0x15b   : > { %v6680_v9 = vadd.f32 %v6679_v32, %v6678_v35  ;;  %v1472_v42 = vadd.f32 %v6677_v10, %v9172_v29  ;;  %v6787_v17 = vpop.f32.mrb[4].mxu1  ;;  %v841_v62 = vpack.c.bf16 %v765_v25, %v763_v16  ;;  %v9209_v10 = vld [vmem:[#allocation2 + $0x198] sm:$0xff]  ;;  %v781_v35 = vrot.slane %v9203_v18, 1 }
 0x15c   : > { %1880 = vmatmul.mubr.bf16.gmra.mrb[112].mxu0 %v9062_v28  ;;  %v6788_v41 = vpop.f32.mrb[5].mxu1  ;;  %v8043_v28 = vld [vmem:[#allocation6 + $0x240] sm:$0xff]   ;;  %v8044_v25 = vld [vmem:[#allocation6 + $0x288] sm:$0xff]  }
 0x15d   : > { %1887 = vmatprep.mubr.bf16.mxu0 %v9108_v6  ;;  %v1475_v56 = vadd.f32 %v6680_v9, %v9172_v29  ;;  %v6789_v34 = vadd.f32 %v6788_v41, %v6787_v17  ;;  %v6790_v61 = vpop.f32.mrb[6].mxu1  ;;  %7126 = vmatpush3.bf16.msra.mxu1 %v8043_v28  ;;  %v9218_v41 = vpack.c.bf16 %v772_v23, %v770_v27 }
 0x15e   : > { %v6791_v36 = vpop.f32.mrb[7].mxu1  ;;  %7127 = vmatprep.subr.bf16.mxu1 %v8044_v25 }
 0x15f   : > { %v6681_v60 = vpop.f32.mrb[8].mxu0  ;;  %v6792_v43 = vadd.f32 %v6791_v36, %v6790_v61  ;;  %v9191_v49 = vadd.f32 %v6789_v34, %v1472_v42 }
 0x160   : > { %v6682_v0 = vpop.f32.mrb[9].mxu0  ;;  %2041 = vmatmul.mubr.bf16.gmra.mrb[112].mxu1 %v9073_v4 }
 0x161   : > { %v6683_v2 = vadd.f32 %v6682_v0, %v6681_v60  ;;  %v6684_v3 = vpop.f32.mrb[10].mxu0  ;;  %2048 = vmatprep.mubr.bf16.mxu1 %v9098_v47  ;;  %v9199_v33 = vadd.f32 %v6792_v43, %v1475_v56 }
 0x162   : > { %v6685_v52 = vpop.f32.mrb[11].mxu0 }
 0x163   : > { %v6686_v63 = vadd.f32 %v6685_v52, %v6684_v3  ;;  %v1480_v4 = vadd.f32 %v6683_v2, %v9172_v29  ;;  %v6793_v11 = vpop.f32.mrb[8].mxu1  ;;  %v8045_v52 = vld [vmem:[#allocation6 + $0x248] sm:$0xff]  }
 0x164   : > { %1888 = vmatmul.mubr.bf16.gmra.mrb[116].mxu0 %v9078_v50  ;;  %v6794_v48 = vpop.f32.mrb[9].mxu1  ;;  %v9212_v50 = vrot.slane %v9209_v10, 1  ;;  %7128 = vmatpush3.bf16.msra.mxu1 %v8045_v52 }
 0x165   : > { %1895 = vmatprep.mubr.bf16.mxu0 %v9120_v21  ;;  %v1483_v51 = vadd.f32 %v6686_v63, %v9172_v29  ;;  %v6795_v19 = vadd.f32 %v6794_v48, %v6793_v11  ;;  %v6796_v54 = vpop.f32.mrb[10].mxu1 }
 0x166   : > { %v6797_v20 = vpop.f32.mrb[11].mxu1  ;;  %v782_v56 = vsel %vm532_vm0, %v9212_v50, %v781_v35 }
 0x167   : > { %v6687_v37 = vpop.f32.mrb[12].mxu0  ;;  %v6798_v32 = vadd.f32 %v6797_v20, %v6796_v54  ;;  %v9215_v9 = vadd.f32 %v6795_v19, %v1480_v4  ;;  %v844_v0 = vpack.c.bf16 %v782_v56, %v9212_v50 }
 0x168   : > { %v6688_v31 = vpop.f32.mrb[13].mxu0  ;;  %2049 = vmatmul.mubr.bf16.gmra.mrb[116].mxu1 %v9093_v40 }
 0x169   : > { %v6689_v42 = vadd.f32 %v6688_v31, %v6687_v37  ;;  %v6690_v17 = vpop.f32.mrb[14].mxu0  ;;  %2056 = vmatprep.mubr.bf16.mxu1 %v841_v62  ;;  %v9220_v14 = vadd.f32 %v6798_v32, %v1483_v51  ;;  %v9237_v51 = vpack.c.bf16 %v9209_v10, %v9209_v10 }
 0x16a   : > { %v6691_v15 = vpop.f32.mrb[15].mxu0 }
 0x16b   : > { %v6692_v12 = vadd.f32 %v6691_v15, %v6690_v17  ;;  %v1488_v34 = vadd.f32 %v6689_v42, %v9172_v29  ;;  %v6799_v61 = vpop.f32.mrb[12].mxu1 }
 0x16c   : > { %1896 = vmatmul.mubr.bf16.gmra.mrb[120].mxu0 %v9098_v47  ;;  %v6800_v36 = vpop.f32.mrb[13].mxu1 }
 0x16d   : > { %1903 = vmatprep.mubr.bf16.mxu0 %v9218_v41  ;;  %v1491_v40 = vadd.f32 %v6692_v12, %v9172_v29  ;;  %v6801_v60 = vadd.f32 %v6800_v36, %v6799_v61  ;;  %v6802_v43 = vpop.f32.mrb[14].mxu1 }
 0x16e   : > { %v6803_v46 = vpop.f32.mrb[15].mxu1 }
 0x16f   : > { %v6693_v28 = vpop.f32.mrb[16].mxu0  ;;  %v6804_v2 = vadd.f32 %v6803_v46, %v6802_v43  ;;  %v9229_v16 = vadd.f32 %v6801_v60, %v1488_v34  ;;  %v8046_v46 = vld [vmem:[#allocation6 + $0x290] sm:$0xff]  }
 0x170   : > { %v6694_v3 = vpop.f32.mrb[17].mxu0  ;;  %2057 = vmatmul.mubr.bf16.gmra.mrb[120].mxu1 %v9113_v55  ;;  %7129 = vmatprep.subr.bf16.mxu1 %v8046_v46 }
 0x171   : > { %v6695_v47 = vadd.f32 %v6694_v3, %v6693_v28  ;;  %v6696_v58 = vpop.f32.mrb[18].mxu0  ;;  %2064 = vmatprep.mubr.bf16.mxu1 %v844_v0  ;;  %v9232_v59 = vadd.f32 %v6804_v2, %v1491_v40  ;;  %v8047_v28 = vld [vmem:[#allocation6 + $0x250] sm:$0xff]  }
 0x172   : > { %v6697_v44 = vpop.f32.mrb[19].mxu0  ;;  %7130 = vmatpush3.bf16.msra.mxu1 %v8047_v28 }
 0x173   : > { %v6698_v63 = vadd.f32 %v6697_v44, %v6696_v58  ;;  %v1496_v4 = vadd.f32 %v6695_v47, %v9172_v29  ;;  %v6805_v11 = vpop.f32.mrb[16].mxu1 }
 0x174   : > { %1904 = vmatmul.mubr.bf16.gmra.mrb[124].mxu0 %v841_v62  ;;  %v6806_v48 = vpop.f32.mrb[17].mxu1 }
 0x175   : > { %7785 = vmatprep.mubr.bf16.mxu0 %v8667_v24  ;;  %v1499_v55 = vadd.f32 %v6698_v63, %v9172_v29  ;;  %v6807_v19 = vadd.f32 %v6806_v48, %v6805_v11  ;;  %v6808_v54 = vpop.f32.mrb[18].mxu1 }
 0x176   : > { %v6809_v27 = vpop.f32.mrb[19].mxu1 }
 0x177   : > { %v6699_v23 = vpop.f32.mrb[20].mxu0  ;;  %v6810_v20 = vadd.f32 %v6809_v27, %v6808_v54  ;;  %v9241_v35 = vadd.f32 %v6807_v19, %v1496_v4 }
 0x178   : > { %v6700_v37 = vpop.f32.mrb[21].mxu0  ;;  %2065 = vmatmul.mubr.bf16.gmra.mrb[124].mxu1 %v9237_v51 }
 0x179   : > { %v6701_v62 = vadd.f32 %v6700_v37, %v6699_v23  ;;  %v6702_v32 = vpop.f32.mrb[22].mxu0  ;;  %v9244_v42 = vadd.f32 %v6810_v20, %v1499_v55 }
 0x17a   : > { %v6703_v31 = vpop.f32.mrb[23].mxu0 }
 0x17b   : > { %v6704_v17 = vadd.f32 %v6703_v31, %v6702_v32  ;;  %v1504_v24 = vadd.f32 %v6701_v62, %v9172_v29  ;;  %v6811_v15 = vpop.f32.mrb[20].mxu1 }
 0x17c   : > { %7786 = vmatmul.mubr.bf16.vlgmr.msra.gmra.mrb[128].mxu0 %v8705_v57  ;;  %v6812_v12 = vpop.f32.mrb[21].mxu1 }
 0x17d   : > { %7789 = vmatprep.mubr.bf16.mxu0 %v8771_v53  ;;  %v1507_v56 = vadd.f32 %v6704_v17, %v9172_v29  ;;  %v6813_v34 = vadd.f32 %v6812_v12, %v6811_v15  ;;  %v6814_v61 = vpop.f32.mrb[22].mxu1 }
 0x17e   : > { %v6815_v36 = vpop.f32.mrb[23].mxu1 }
 0x17f   : > { %v6705_v40 = vpop.f32.mrb[24].mxu0  ;;  %v6816_v60 = vadd.f32 %v6815_v36, %v6814_v61  ;;  %v9250_v0 = vadd.f32 %v6813_v34, %v1504_v24  ;;  %v8048_v36 = vld [vmem:[#allocation6 + $0x298] sm:$0xff]  }
 0x180   : > { %v6706_v43 = vpop.f32.mrb[25].mxu0  ;;  %7131 = vmatprep.subr.bf16.mxu1 %v8048_v36 }
 0x181   : > { %v6707_v2 = vadd.f32 %v6706_v43, %v6705_v40  ;;  %v6708_v3 = vpop.f32.mrb[26].mxu0  ;;  %v9252_v52 = vadd.f32 %v6816_v60, %v1507_v56  ;;  %v8049_v40 = vld [vmem:[#allocation6 + $0x258] sm:$0xff]  }
 0x182   : > { %v6709_v25 = vpop.f32.mrb[27].mxu0  ;;  %7132 = vmatpush3.bf16.msra.mxu1 %v8049_v40 }
 0x183   : > { %v6710_v57 = vadd.f32 %v6709_v25, %v6708_v3  ;;  %v1512_v53 = vadd.f32 %v6707_v2, %v9172_v29  ;;  %v6817_v47 = vpop.f32.mrb[24].mxu1 }
 0x184   : > { %7790 = vmatmul.mubr.bf16.gmra.mrb[132].mxu0 %v8807_v38  ;;  %v6818_v58 = vpop.f32.mrb[25].mxu1 }
 0x185   : > { %7793 = vmatprep.mubr.bf16.mxu0 %v8844_v8  ;;  %v1515_v44 = vadd.f32 %v6710_v57, %v9172_v29  ;;  %v6819_v63 = vadd.f32 %v6818_v58, %v6817_v47  ;;  %v6820_v4 = vpop.f32.mrb[26].mxu1 }
 0x186   : > { %v6821_v11 = vpop.f32.mrb[27].mxu1 }
 0x187   : > { %v6711_v48 = vpop.f32.mrb[28].mxu0  ;;  %v6822_v55 = vadd.f32 %v6821_v11, %v6820_v4  ;;  %v9258_v54 = vadd.f32 %v6819_v63, %v1512_v53 }
 0x188   : > { %v6712_v19 = vpop.f32.mrb[29].mxu0 }
 0x189   : > { %v6713_v27 = vadd.f32 %v6712_v19, %v6711_v48  ;;  %v6714_v23 = vpop.f32.mrb[30].mxu0  ;;  %v9260_v37 = vadd.f32 %v6822_v55, %v1515_v44 }
 0x18a   : > { %v6715_v20 = vpop.f32.mrb[31].mxu0 }
 0x18b   : > { %v6716_v62 = vadd.f32 %v6715_v20, %v6714_v23  ;;  %v1520_v38 = vadd.f32 %v6713_v27, %v9172_v29  ;;  %v6823_v32 = vpop.f32.mrb[28].mxu1 }
 0x18c   : > { %7794 = vmatmul.mubr.bf16.gmra.mrb[136].mxu0 %v8905_v26  ;;  %v6824_v8 = vpop.f32.mrb[29].mxu1 }
 0x18d   : > { %7797 = vmatprep.mubr.bf16.mxu0 %v8957_v30  ;;  %v1523_v31 = vadd.f32 %v6716_v62, %v9172_v29  ;;  %v6825_v17 = vadd.f32 %v6824_v8, %v6823_v32  ;;  %v6826_v24 = vpop.f32.mrb[30].mxu1 }
 0x18e   : > { %v6827_v15 = vpop.f32.mrb[31].mxu1 }
 0x18f   : > { %v6717_v12 = vpop.f32.mrb[32].mxu0  ;;  %v6828_v56 = vadd.f32 %v6827_v15, %v6826_v24  ;;  %v9266_v61 = vadd.f32 %v6825_v17, %v1520_v38  ;;  %v8050_v15 = vld [vmem:[#allocation6 + $0x2a0] sm:$0xff]  }
 0x190   : > { %v6718_v34 = vpop.f32.mrb[33].mxu0  ;;  %7133 = vmatprep.subr.bf16.mxu1 %v8050_v15 }
 0x191   : > { %v6719_v60 = vadd.f32 %v6718_v34, %v6717_v12  ;;  %v6720_v43 = vpop.f32.mrb[34].mxu0  ;;  %v9268_v28 = vadd.f32 %v6828_v56, %v1523_v31  ;;  %v8051_v12 = vld [vmem:[#allocation6 + $0x260] sm:$0xff]  }
 0x192   : > { %v6721_v46 = vpop.f32.mrb[35].mxu0  ;;  %7134 = vmatpush3.bf16.msra.mxu1 %v8051_v12 }
 0x193   : > { %v6722_v26 = vadd.f32 %v6721_v46, %v6720_v43  ;;  %v1528_v30 = vadd.f32 %v6719_v60, %v9172_v29  ;;  %v6829_v2 = vpop.f32.mrb[32].mxu1 }
 0x194   : > { %7798 = vmatmul.mubr.bf16.gmra.mrb[140].mxu0 %v8993_v7  ;;  %v6830_v3 = vpop.f32.mrb[33].mxu1 }
 0x195   : > { %7801 = vmatprep.mubr.bf16.mxu0 %v9025_v1  ;;  %v1531_v25 = vadd.f32 %v6722_v26, %v9172_v29  ;;  %v6831_v57 = vadd.f32 %v6830_v3, %v6829_v2  ;;  %v6832_v53 = vpop.f32.mrb[34].mxu1 }
 0x196   : > { %v6833_v47 = vpop.f32.mrb[35].mxu1 }
 0x197   : > { %v6723_v58 = vpop.f32.mrb[36].mxu0  ;;  %v6834_v44 = vadd.f32 %v6833_v47, %v6832_v53  ;;  %v9274_v4 = vadd.f32 %v6831_v57, %v1528_v30 }
 0x198   : > { %v6724_v63 = vpop.f32.mrb[37].mxu0 }
 0x199   : > { %v6725_v11 = vadd.f32 %v6724_v63, %v6723_v58  ;;  %v6726_v48 = vpop.f32.mrb[38].mxu0  ;;  %v9276_v19 = vadd.f32 %v6834_v44, %v1531_v25  ;;  %v785_v44 = vrot.slane %v9209_v10, 2  ;;  %v788_v63 = vrot.slane %v9203_v18, 2 }
 0x19a   : > { %v6727_v55 = vpop.f32.mrb[39].mxu0 }
 0x19b   : > { %v6728_v27 = vadd.f32 %v6727_v55, %v6726_v48  ;;  %v1536_v7 = vadd.f32 %v6725_v11, %v9172_v29  ;;  %v6835_v23 = vpop.f32.mrb[36].mxu1 }
 0x19c   : > { %7802 = vmatmul.mubr.bf16.gmra.mrb[144].mxu0 %v9052_v5  ;;  %v6836_v1 = vpop.f32.mrb[37].mxu1 }
 0x19d   : > { %7805 = vmatprep.mubr.bf16.mxu0 %v9068_v45  ;;  %v1539_v20 = vadd.f32 %v6728_v27, %v9172_v29  ;;  %v6837_v62 = vadd.f32 %v6836_v1, %v6835_v23  ;;  %v6838_v38 = vpop.f32.mrb[38].mxu1 }
 0x19e   : > { %v6839_v32 = vpop.f32.mrb[39].mxu1 }
 0x19f   : > { %v6729_v8 = vpop.f32.mrb[40].mxu0  ;;  %v6840_v31 = vadd.f32 %v6839_v32, %v6838_v38  ;;  %v9282_v24 = vadd.f32 %v6837_v62, %v1536_v7  ;;  %v789_v7 = vsel %vm645_vm1, %v785_v44, %v788_v63 }
 0x1a0   : > { %v6730_v17 = vpop.f32.mrb[41].mxu0  ;;  %v845_v32 = vpack.c.bf16 %v789_v7, %v785_v44 }
 0x1a1   : > { %v6731_v56 = vadd.f32 %v6730_v17, %v6729_v8  ;;  %v6732_v34 = vpop.f32.mrb[42].mxu0  ;;  %v9284_v40 = vadd.f32 %v6840_v31, %v1539_v20  ;;  %v8052_v31 = vld [vmem:[#allocation6 + $0x2a8] sm:$0xff]  }
 0x1a2   : > { %v6733_v36 = vpop.f32.mrb[43].mxu0  ;;  %v8053_v17 = vld [vmem:[#allocation6 + $0x268] sm:$0xff]   ;;  %7135 = vmatprep.subr.bf16.mxu1 %v8052_v31 }
 0x1a3   : > { %v6734_v5 = vadd.f32 %v6733_v36, %v6732_v34  ;;  %v1544_v45 = vadd.f32 %v6731_v56, %v9172_v29  ;;  %v6841_v60 = vpop.f32.mrb[40].mxu1  ;;  %7136 = vmatpush3.bf16.msra.mxu1 %v8053_v17 }
 0x1a4   : > { %7806 = vmatmul.mubr.bf16.gmra.mrb[148].mxu0 %v9090_v22  ;;  %v6842_v43 = vpop.f32.mrb[41].mxu1 }
 0x1a5   : > { %7809 = vmatprep.mubr.bf16.mxu0 %v9108_v6  ;;  %v1547_v46 = vadd.f32 %v6734_v5, %v9172_v29  ;;  %v6843_v26 = vadd.f32 %v6842_v43, %v6841_v60  ;;  %v6844_v30 = vpop.f32.mrb[42].mxu1 }
 0x1a6   : > { %v6845_v2 = vpop.f32.mrb[43].mxu1 }
 0x1a7   : > { %v6735_v3 = vpop.f32.mrb[44].mxu0  ;;  %v6846_v25 = vadd.f32 %v6845_v2, %v6844_v30  ;;  %v9290_v53 = vadd.f32 %v6843_v26, %v1544_v45 }
 0x1a8   : > { %v6736_v57 = vpop.f32.mrb[45].mxu0 }
 0x1a9   : > { %v6737_v47 = vadd.f32 %v6736_v57, %v6735_v3  ;;  %v6738_v58 = vpop.f32.mrb[46].mxu0  ;;  %v9294_v11 = vadd.f32 %v6846_v25, %v1547_v46 }
 0x1aa   : > { %v6739_v22 = vpop.f32.mrb[47].mxu0 }
 0x1ab   : > { %v6740_v6 = vadd.f32 %v6739_v22, %v6738_v58  ;;  %v1552_v48 = vadd.f32 %v6737_v47, %v9172_v29  ;;  %v6847_v55 = vpop.f32.mrb[44].mxu1 }
 0x1ac   : > { %7810 = vmatmul.mubr.bf16.gmra.mrb[152].mxu0 %v9120_v21  ;;  %v6848_v27 = vpop.f32.mrb[45].mxu1 }
 0x1ad   : > { %7813 = vmatprep.mubr.bf16.mxu0 %v9218_v41  ;;  %v1555_v23 = vadd.f32 %v6740_v6, %v9172_v29  ;;  %v6849_v1 = vadd.f32 %v6848_v27, %v6847_v55  ;;  %v6850_v10 = vpop.f32.mrb[46].mxu1 }
 0x1ae   : > { %v6851_v20 = vpop.f32.mrb[47].mxu1 }
 0x1af   : > { %v6741_v18 = vpop.f32.mrb[48].mxu0  ;;  %v6852_v62 = vadd.f32 %v6851_v20, %v6850_v10  ;;  %v9301_v8 = vadd.f32 %v6849_v1, %v1552_v48 }
 0x1b0   : > { %v6742_v38 = vpop.f32.mrb[49].mxu0 }
 0x1b1   : > { %v6743_v15 = vadd.f32 %v6742_v38, %v6741_v18  ;;  %v6744_v21 = vpop.f32.mrb[50].mxu0  ;;  %v9303_v56 = vadd.f32 %v6852_v62, %v1555_v23  ;;  %v8054_v18 = vld [vmem:[#allocation6 + $0x2b0] sm:$0xff]  }
 0x1b2   : > { %v6745_v12 = vpop.f32.mrb[51].mxu0  ;;  %v8055_v62 = vld [vmem:[#allocation6 + $0x270] sm:$0xff]   ;;  %7137 = vmatprep.subr.bf16.mxu1 %v8054_v18 }
 0x1b3   : > { %v6746_v41 = vadd.f32 %v6745_v12, %v6744_v21  ;;  %v1560_v34 = vadd.f32 %v6743_v15, %v9172_v29  ;;  %v6853_v36 = vpop.f32.mrb[48].mxu1  ;;  %7138 = vmatpush3.bf16.msra.mxu1 %v8055_v62  ;;  %v8056_v21 = vld [vmem:[#allocation6 + $0x300] sm:$0xff]  }
 0x1b4   : > { %7814 = vmatmul.mubr.bf16.gmra.mrb[156].mxu0 %v845_v32  ;;  %v6854_v5 = vpop.f32.mrb[49].mxu1  ;;  %7237 = vmatprep.subr.bf16.mxu0 %v8056_v21 }
 0x1b5   : > { %v1563_v45 = vadd.f32 %v6746_v41, %v9172_v29  ;;  %v6855_v60 = vadd.f32 %v6854_v5, %v6853_v36  ;;  %v6856_v43 = vpop.f32.mrb[50].mxu1 }
 0x1b6   : > { %v6857_v46 = vpop.f32.mrb[51].mxu1 }
 0x1b7   : > { %v6747_v26 = vpop.f32.mrb[52].mxu0  ;;  %v6858_v30 = vadd.f32 %v6857_v46, %v6856_v43  ;;  %v9307_v3 = vadd.f32 %v6855_v60, %v1560_v34  ;;  %v8057_v34 = vld [vmem:[#allocation6 + $0x2c0] sm:$0xff]  }
 0x1b8   : > { %v6748_v2 = vpop.f32.mrb[53].mxu0  ;;  %7238 = vmatpush3.bf16.msra.mxu0 %v8057_v34  ;;  %v8065_v34 = vld [vmem:[#allocation6 + $0x2d8] sm:$0xff]  }
 0x1b9   : > { %v6749_v25 = vadd.f32 %v6748_v2, %v6747_v26  ;;  %v6750_v57 = vpop.f32.mrb[54].mxu0  ;;  %v9309_v58 = vadd.f32 %v6858_v30, %v1563_v45  ;;  %v8058_v26 = vld [vmem:[#allocation6 + $0x308] sm:$0xff]  }
 0x1ba   : > { %v6751_v47 = vpop.f32.mrb[55].mxu0  ;;  %7239 = vmatprep.subr.bf16.mxu0 %v8058_v26 }
 0x1bb   : > { %v6752_v44 = vadd.f32 %v6751_v47, %v6750_v57  ;;  %v1568_v63 = vadd.f32 %v6749_v25, %v9172_v29  ;;  %v6859_v22 = vpop.f32.mrb[52].mxu1  ;;  %v8059_v57 = vld [vmem:[#allocation6 + $0x2c8] sm:$0xff]  }
 0x1bc   : > { %v6860_v6 = vpop.f32.mrb[53].mxu1  ;;  %7240 = vmatpush3.bf16.msra.mxu0 %v8059_v57 }
 0x1bd   : > { %v1571_v48 = vadd.f32 %v6752_v44, %v9172_v29  ;;  %v6861_v55 = vadd.f32 %v6860_v6, %v6859_v22  ;;  %v6862_v27 = vpop.f32.mrb[54].mxu1 }
 0x1be   : > { %v6863_v7 = vpop.f32.mrb[55].mxu1 }
 0x1bf   : > { %v6753_v23 = vpop.f32.mrb[56].mxu0  ;;  %v6864_v1 = vadd.f32 %v6863_v7, %v6862_v27  ;;  %v9313_v20 = vadd.f32 %v6861_v55, %v1568_v63  ;;  %v8061_v7 = vld [vmem:[#allocation6 + $0x2d0] sm:$0xff]  }
 0x1c0   : > { %v6754_v10 = vpop.f32.mrb[57].mxu0 }
 0x1c1   : > { %v6755_v38 = vadd.f32 %v6754_v10, %v6753_v23  ;;  %v6756_v32 = vpop.f32.mrb[58].mxu0  ;;  %v9315_v17 = vadd.f32 %v6864_v1, %v1571_v48  ;;  %v8060_v48 = vld [vmem:[#allocation6 + $0x310] sm:$0xff]  }
 0x1c2   : > { %v6757_v31 = vpop.f32.mrb[59].mxu0  ;;  %7241 = vmatprep.subr.bf16.mxu0 %v8060_v48 }
 0x1c3   : > { %v6758_v15 = vadd.f32 %v6757_v31, %v6756_v32  ;;  %v1576_v12 = vadd.f32 %v6755_v38, %v9172_v29  ;;  %v6865_v41 = vpop.f32.mrb[56].mxu1  ;;  %7242 = vmatpush3.bf16.msra.mxu0 %v8061_v7  ;;  %v8064_v32 = vld [vmem:[#allocation6 + $0x318] sm:$0xff]  }
 0x1c4   : > { %v6866_v36 = vpop.f32.mrb[57].mxu1  ;;  %7243 = vmatprep.subr.bf16.mxu0 %v8064_v32 }
 0x1c5   : > { %v1579_v5 = vadd.f32 %v6758_v15, %v9172_v29  ;;  %v6867_v45 = vadd.f32 %v6866_v36, %v6865_v41  ;;  %v6868_v60 = vpop.f32.mrb[58].mxu1  ;;  %v8063_v41 = vld [vmem:[#allocation6 + $0x278] sm:$0xff]  }
 0x1c6   : > { %v6869_v43 = vpop.f32.mrb[59].mxu1 }
 0x1c7   : > { %v6759_v46 = vpop.f32.mrb[60].mxu0  ;;  %v6870_v30 = vadd.f32 %v6869_v43, %v6868_v60  ;;  %v9319_v25 = vadd.f32 %v6867_v45, %v1576_v12  ;;  %v8062_v12 = vld [vmem:[#allocation6 + $0x2b8] sm:$0xff]   ;;  %7244 = vmatpush3.bf16.msra.mxu0 %v8065_v34  ;;  %v8071_v34 = vld [vmem:[#allocation6 + $0x2f0] sm:$0xff]  }
 0x1c8   : > { %v6760_v2 = vpop.f32.mrb[61].mxu0  ;;  %7139 = vmatprep.subr.bf16.mxu1 %v8062_v12  ;;  %v8070_v12 = vld [vmem:[#allocation6 + $0x330] sm:$0xff]  }
 0x1c9   : > { %v6761_v47 = vadd.f32 %v6760_v2, %v6759_v46  ;;  %v6762_v44 = vpop.f32.mrb[62].mxu0  ;;  %v9321_v22 = vadd.f32 %v6870_v30, %v1579_v5  ;;  %7140 = vmatpush3.bf16.msra.mxu1 %v8063_v41  ;;  %v8066_v46 = vld [vmem:[#allocation6 + $0x320] sm:$0xff]  }
 0x1ca   : > { %v6763_v63 = vpop.f32.mrb[63].mxu0  ;;  %v8067_v30 = vld [vmem:[#allocation6 + $0x2e0] sm:$0xff]   ;;  %7245 = vmatprep.subr.bf16.mxu0 %v8066_v46 }
 0x1cb   : > { %v6764_v6 = vadd.f32 %v6763_v63, %v6762_v44  ;;  %v1584_v55 = vadd.f32 %v6761_v47, %v9172_v29  ;;  %v6871_v27 = vpop.f32.mrb[60].mxu1  ;;  %7246 = vmatpush3.bf16.msra.mxu0 %v8067_v30  ;;  %v9331_v63 = vld [vmem:[#allocation2 + $0x10] sm:$0x3] }
 0x1cc   : > { %v6872_v23 = vpop.f32.mrb[61].mxu1  ;;  %v8074_v30 = vld [vmem:[#allocation6 + $0x340] sm:$0xff]  }
 0x1cd   : > { %v1587_v1 = vadd.f32 %v6764_v6, %v9172_v29  ;;  %v6873_v10 = vadd.f32 %v6872_v23, %v6871_v27  ;;  %v6874_v18 = vpop.f32.mrb[62].mxu1  ;;  %v2403_v27 = vrot.slane %v9331_v63, 1 }
 0x1ce   : > { %v6875_v62 = vpop.f32.mrb[63].mxu1 }
 0x1cf   : > { %v6893_v38 = vpop.f32.mrb[64].mxu0  ;;  %v6876_v31 = vadd.f32 %v6875_v62, %v6874_v18  ;;  %v9325_v21 = vadd.f32 %v6873_v10, %v1584_v55  ;;  %v8068_v55 = vld [vmem:[#allocation6 + $0x328] sm:$0xff]  }
 0x1d0   : > { %v6894_v15 = vpop.f32.mrb[65].mxu0  ;;  %7247 = vmatprep.subr.bf16.mxu0 %v8068_v55 }
 0x1d1   : > { %v6895_v36 = vadd.f32 %v6894_v15, %v6893_v38  ;;  %v6896_v5 = vpop.f32.mrb[66].mxu0  ;;  %v9327_v60 = vadd.f32 %v6876_v31, %v1587_v1  ;;  %v8069_v1 = vld [vmem:[#allocation6 + $0x2e8] sm:$0xff]  }
 0x1d2   : > { %v6897_v45 = vpop.f32.mrb[67].mxu0  ;;  %7248 = vmatpush3.bf16.msra.mxu0 %v8069_v1 }
 0x1d3   : > { %v6898_v29 = vadd.f32 %v6897_v45, %v6896_v5  ;;  %v1786_v43 = vadd.f32 %v6895_v36, %v9179_v13  ;;  %v7005_v26 = vpop.f32.mrb[64].mxu1  ;;  %7249 = vmatprep.subr.bf16.mxu0 %v8070_v12 }
 0x1d4   : > { %v7006_v2 = vpop.f32.mrb[65].mxu1 }
 0x1d5   : > { %v1789_v57 = vadd.f32 %v6898_v29, %v9182_v39  ;;  %v7007_v47 = vadd.f32 %v7006_v2, %v7005_v26  ;;  %v7008_v44 = vpop.f32.mrb[66].mxu1  ;;  %v2404_v39 = vsel %vm532_vm0, %v9212_v50, %v2403_v27  ;;  %v8072_v26 = vld [vmem:[#allocation6 + $0x380] sm:$0xff]  }
 0x1d6   : > { %v7009_v6 = vpop.f32.mrb[67].mxu1  ;;  %v2659_v32 = vpack.c.bf16 %v2404_v39, %v9212_v50  ;;  %7250 = vmatpush3.bf16.msra.mxu0 %v8071_v34  ;;  %v8073_v50 = vld [vmem:[#allocation6 + $0x338] sm:$0xff]   ;;  %7349 = vmatprep.subr.bf16.mxu1 %v8072_v26 }
 0x1d7   : > { %v6899_v48 = vpop.f32.mrb[68].mxu0  ;;  %v7010_v7 = vadd.f32 %v7009_v6, %v7008_v44  ;;  %v9334_v13 = vadd.f32 %v7007_v47, %v1786_v43  ;;  %v8075_v47 = vld [vmem:[#allocation6 + $0x2f8] sm:$0xff]   ;;  %7251 = vmatprep.subr.bf16.mxu0 %v8073_v50  ;;  %v8076_v50 = vld [vmem:[#allocation6 + $0x388] sm:$0xff]  }
 0x1d8   : > { %v6900_v23 = vpop.f32.mrb[69].mxu0  ;;  %3329 = vmatprep.mubr.bf16.mxu1 %v2659_v32 }
 0x1d9   : > { %v6901_v10 = vadd.f32 %v6900_v23, %v6899_v48  ;;  %v6902_v18 = vpop.f32.mrb[70].mxu0  ;;  %v9338_v38 = vadd.f32 %v7010_v7, %v1789_v57  ;;  %3330 = vmatmul.mubr.bf16.vlgmr.msra.gmra.mrb[128].mxu1 %v9237_v51 }
 0x1da   : > { %v6903_v62 = vpop.f32.mrb[71].mxu0  ;;  %7350 = vmatpush3.bf16.msra.mxu1 %v8074_v30  ;;  %7252 = vmatpush3.bf16.msra.mxu0 %v8075_v47  ;;  %v8077_v30 = vld [vmem:[#allocation6 + $0x348] sm:$0xff]  }
 0x1db   : > { %v1794_v31 = vadd.f32 %v6901_v10, %v9191_v49  ;;  %v6904_v15 = vadd.f32 %v6903_v62, %v6902_v18  ;;  %v7011_v41 = vpop.f32.mrb[68].mxu1  ;;  %7351 = vmatprep.subr.bf16.mxu1 %v8076_v50  ;;  %v8079_v50 = vld [vmem:[#allocation6 + $0x350] sm:$0xff]  }
 0x1dc   : > { %v7012_v5 = vpop.f32.mrb[69].mxu1 }
 0x1dd   : > { %v1797_v36 = vadd.f32 %v6904_v15, %v9199_v33  ;;  %v7013_v45 = vadd.f32 %v7012_v5, %v7011_v41  ;;  %v7014_v29 = vpop.f32.mrb[70].mxu1 }
 0x1de   : > { %v7015_v43 = vpop.f32.mrb[71].mxu1  ;;  %7352 = vmatpush3.bf16.msra.mxu1 %v8077_v30 }
 0x1df   : > { %v6905_v46 = vpop.f32.mrb[72].mxu0  ;;  %v7016_v49 = vadd.f32 %v7015_v43, %v7014_v29  ;;  %v9344_v57 = vadd.f32 %v7013_v45, %v1794_v31 }
 0x1e0   : > { %v6906_v2 = vpop.f32.mrb[73].mxu0 }
 0x1e1   : > { %v6907_v44 = vadd.f32 %v6906_v2, %v6905_v46  ;;  %v6908_v6 = vpop.f32.mrb[74].mxu0  ;;  %v9346_v48 = vadd.f32 %v7016_v49, %v1797_v36 }
 0x1e2   : > { %v6909_v33 = vpop.f32.mrb[75].mxu0 }
 0x1e3   : > { %v1802_v51 = vadd.f32 %v6907_v44, %v9215_v9  ;;  %v6910_v55 = vadd.f32 %v6909_v33, %v6908_v6  ;;  %v7017_v27 = vpop.f32.mrb[72].mxu1 }
 0x1e4   : > { %v7018_v23 = vpop.f32.mrb[73].mxu1 }
 0x1e5   : > { %v1805_v7 = vadd.f32 %v6910_v55, %v9220_v14  ;;  %v7019_v1 = vadd.f32 %v7018_v23, %v7017_v27  ;;  %v7020_v10 = vpop.f32.mrb[74].mxu1 }
 0x1e6   : > { %v7021_v18 = vpop.f32.mrb[75].mxu1 }
 0x1e7   : > { %v6911_v39 = vpop.f32.mrb[76].mxu0  ;;  %v7022_v62 = vadd.f32 %v7021_v18, %v7020_v10  ;;  %v9350_v31 = vadd.f32 %v7019_v1, %v1802_v51 }
 0x1e8   : > { %v6912_v32 = vpop.f32.mrb[77].mxu0 }
 0x1e9   : > { %v6913_v15 = vadd.f32 %v6912_v32, %v6911_v39  ;;  %v6914_v12 = vpop.f32.mrb[78].mxu0  ;;  %v9352_v34 = vadd.f32 %v7022_v62, %v1805_v7 }
 0x1ea   : > { %v6915_v41 = vpop.f32.mrb[79].mxu0 }
 0x1eb   : > { %v1810_v9 = vadd.f32 %v6913_v15, %v9229_v16  ;;  %v6916_v36 = vadd.f32 %v6915_v41, %v6914_v12  ;;  %v7023_v5 = vpop.f32.mrb[76].mxu1 }
 0x1ec   : > { %v7024_v45 = vpop.f32.mrb[77].mxu1 }
 0x1ed   : > { %v1813_v14 = vadd.f32 %v6916_v36, %v9232_v59  ;;  %v7025_v29 = vadd.f32 %v7024_v45, %v7023_v5  ;;  %v7026_v43 = vpop.f32.mrb[78].mxu1 }
 0x1ee   : > { %v7027_v46 = vpop.f32.mrb[79].mxu1 }
 0x1ef   : > { %v6917_v26 = vpop.f32.mrb[80].mxu0  ;;  %v7028_v49 = vadd.f32 %v7027_v46, %v7026_v43  ;;  %v9356_v47 = vadd.f32 %v7025_v29, %v1810_v9 }
 0x1f0   : > { %v6918_v2 = vpop.f32.mrb[81].mxu0 }
 0x1f1   : > { %v6919_v44 = vadd.f32 %v6918_v2, %v6917_v26  ;;  %v6920_v6 = vpop.f32.mrb[82].mxu0  ;;  %v9358_v16 = vadd.f32 %v7028_v49, %v1813_v14  ;;  %v8078_v26 = vld [vmem:[#allocation6 + $0x390] sm:$0xff]  }
 0x1f2   : > { %v6921_v33 = vpop.f32.mrb[83].mxu0  ;;  %7353 = vmatprep.subr.bf16.mxu1 %v8078_v26  ;;  %v8081_v26 = vld [vmem:[#allocation6 + $0x358] sm:$0xff]  }
 0x1f3   : > { %v1818_v59 = vadd.f32 %v6919_v44, %v9241_v35  ;;  %v6922_v51 = vadd.f32 %v6921_v33, %v6920_v6  ;;  %v7029_v55 = vpop.f32.mrb[80].mxu1  ;;  %7354 = vmatpush3.bf16.msra.mxu1 %v8079_v50 }
 0x1f4   : > { %v7030_v7 = vpop.f32.mrb[81].mxu1 }
 0x1f5   : > { %v1821_v27 = vadd.f32 %v6922_v51, %v9244_v42  ;;  %v7031_v23 = vadd.f32 %v7030_v7, %v7029_v55  ;;  %v7032_v1 = vpop.f32.mrb[82].mxu1 }
 0x1f6   : > { %v7033_v10 = vpop.f32.mrb[83].mxu1 }
 0x1f7   : > { %v6923_v18 = vpop.f32.mrb[84].mxu0  ;;  %v7034_v39 = vadd.f32 %v7033_v10, %v7032_v1  ;;  %v9362_v32 = vadd.f32 %v7031_v23, %v1818_v59 }
 0x1f8   : > { %v6924_v62 = vpop.f32.mrb[85].mxu0 }
 0x1f9   : > { %v6925_v15 = vadd.f32 %v6924_v62, %v6923_v18  ;;  %v6926_v12 = vpop.f32.mrb[86].mxu0  ;;  %v9364_v9 = vadd.f32 %v7034_v39, %v1821_v27 }
 0x1fa   : > { %v6927_v41 = vpop.f32.mrb[87].mxu0 }
 0x1fb   : > { %v1826_v35 = vadd.f32 %v6925_v15, %v9250_v0  ;;  %v6928_v36 = vadd.f32 %v6927_v41, %v6926_v12  ;;  %v7035_v5 = vpop.f32.mrb[84].mxu1 }
 0x1fc   : > { %v7036_v14 = vpop.f32.mrb[85].mxu1 }
 0x1fd   : > { %v1829_v42 = vadd.f32 %v6928_v36, %v9252_v52  ;;  %v7037_v45 = vadd.f32 %v7036_v14, %v7035_v5  ;;  %v7038_v29 = vpop.f32.mrb[86].mxu1 }
 0x1fe   : > { %v7039_v43 = vpop.f32.mrb[87].mxu1 }
 0x1ff   : > { %v6929_v46 = vpop.f32.mrb[88].mxu0  ;;  %v7040_v30 = vadd.f32 %v7039_v43, %v7038_v29  ;;  %v9368_v2 = vadd.f32 %v7037_v45, %v1826_v35 }
 0x200   : > { %v6930_v49 = vpop.f32.mrb[89].mxu0 }
 0x201   : > { %v6931_v44 = vadd.f32 %v6930_v49, %v6929_v46  ;;  %v6932_v6 = vpop.f32.mrb[90].mxu0  ;;  %v9370_v0 = vadd.f32 %v7040_v30, %v1829_v42  ;;  %v8080_v46 = vld [vmem:[#allocation6 + $0x398] sm:$0xff]  }
 0x202   : > { %v6933_v33 = vpop.f32.mrb[91].mxu0  ;;  %7355 = vmatprep.subr.bf16.mxu1 %v8080_v46 }
 0x203   : > { %v1834_v52 = vadd.f32 %v6931_v44, %v9258_v54  ;;  %v6934_v59 = vadd.f32 %v6933_v33, %v6932_v6  ;;  %v7041_v51 = vpop.f32.mrb[88].mxu1  ;;  %7356 = vmatpush3.bf16.msra.mxu1 %v8081_v26 }
 0x204   : > { %v7042_v27 = vpop.f32.mrb[89].mxu1 }
 0x205   : > { %v1837_v55 = vadd.f32 %v6934_v59, %v9260_v37  ;;  %v7043_v7 = vadd.f32 %v7042_v27, %v7041_v51  ;;  %v7044_v23 = vpop.f32.mrb[90].mxu1 }
 0x206   : > { %v7045_v1 = vpop.f32.mrb[91].mxu1 }
 0x207   : > { %v6935_v10 = vpop.f32.mrb[92].mxu0  ;;  %v7046_v18 = vadd.f32 %v7045_v1, %v7044_v23  ;;  %v9374_v62 = vadd.f32 %v7043_v7, %v1834_v52  ;;  %v8082_v23 = vld [vmem:[#allocation6 + $0x400] sm:$0xff]  }
 0x208   : > { %v6936_v39 = vpop.f32.mrb[93].mxu0  ;;  %7461 = vmatprep.subr.bf16.mxu0 %v8082_v23 }
 0x209   : > { %v6937_v15 = vadd.f32 %v6936_v39, %v6935_v10  ;;  %v6938_v12 = vpop.f32.mrb[94].mxu0  ;;  %v9376_v35 = vadd.f32 %v7046_v18, %v1837_v55 }
 0x20a   : > { %v6939_v41 = vpop.f32.mrb[95].mxu0 }
 0x20b   : > { %v1842_v54 = vadd.f32 %v6937_v15, %v9266_v61  ;;  %v6940_v36 = vadd.f32 %v6939_v41, %v6938_v12  ;;  %v7047_v5 = vpop.f32.mrb[92].mxu1 }
 0x20c   : > { %v7048_v42 = vpop.f32.mrb[93].mxu1 }
 0x20d   : > { %v1845_v37 = vadd.f32 %v6940_v36, %v9268_v28  ;;  %v7049_v14 = vadd.f32 %v7048_v42, %v7047_v5  ;;  %v7050_v45 = vpop.f32.mrb[94].mxu1 }
 0x20e   : > { %v7051_v29 = vpop.f32.mrb[95].mxu1 }
 0x20f   : > { %v6941_v43 = vpop.f32.mrb[96].mxu0  ;;  %v7052_v50 = vadd.f32 %v7051_v29, %v7050_v45  ;;  %v9380_v49 = vadd.f32 %v7049_v14, %v1842_v54  ;;  %v8084_v14 = vld [vmem:[#allocation6 + $0x3a0] sm:$0xff]  }
 0x210   : > { %v6942_v30 = vpop.f32.mrb[97].mxu0  ;;  %7357 = vmatprep.subr.bf16.mxu1 %v8084_v14 }
 0x211   : > { %v6943_v44 = vadd.f32 %v6942_v30, %v6941_v43  ;;  %v6944_v6 = vpop.f32.mrb[98].mxu0  ;;  %v9382_v61 = vadd.f32 %v7052_v50, %v1845_v37  ;;  %v8085_v43 = vld [vmem:[#allocation6 + $0x360] sm:$0xff]  }
 0x212   : > { %v6945_v33 = vpop.f32.mrb[99].mxu0  ;;  %7358 = vmatpush3.bf16.msra.mxu1 %v8085_v43 }
 0x213   : > { %v1850_v28 = vadd.f32 %v6943_v44, %v9274_v4  ;;  %v6946_v52 = vadd.f32 %v6945_v33, %v6944_v6  ;;  %v7053_v59 = vpop.f32.mrb[96].mxu1 }
 0x214   : > { %v7054_v55 = vpop.f32.mrb[97].mxu1 }
 0x215   : > { %v1853_v51 = vadd.f32 %v6946_v52, %v9276_v19  ;;  %v7055_v27 = vadd.f32 %v7054_v55, %v7053_v59  ;;  %v7056_v7 = vpop.f32.mrb[98].mxu1 }
 0x216   : > { %v7057_v1 = vpop.f32.mrb[99].mxu1 }
 0x217   : > { %v6947_v10 = vpop.f32.mrb[100].mxu0  ;;  %v7058_v18 = vadd.f32 %v7057_v1, %v7056_v7  ;;  %v9386_v15 = vadd.f32 %v7055_v27, %v1850_v28 }
 0x218   : > { %v6948_v39 = vpop.f32.mrb[101].mxu0 }
 0x219   : > { %v6949_v12 = vadd.f32 %v6948_v39, %v6947_v10  ;;  %v6950_v41 = vpop.f32.mrb[102].mxu0  ;;  %v9388_v36 = vadd.f32 %v7058_v18, %v1853_v51 }
 0x21a   : > { %v6951_v54 = vpop.f32.mrb[103].mxu0 }
 0x21b   : > { %v1858_v4 = vadd.f32 %v6949_v12, %v9282_v24  ;;  %v6952_v5 = vadd.f32 %v6951_v54, %v6950_v41  ;;  %v7059_v19 = vpop.f32.mrb[100].mxu1 }
 0x21c   : > { %v7060_v42 = vpop.f32.mrb[101].mxu1 }
 0x21d   : > { %v1861_v37 = vadd.f32 %v6952_v5, %v9284_v40  ;;  %v7061_v45 = vadd.f32 %v7060_v42, %v7059_v19  ;;  %v7062_v29 = vpop.f32.mrb[102].mxu1  ;;  %v8088_v42 = vld [vmem:[#allocation6 + $0x3a8] sm:$0xff]  }
 0x21e   : > { %v7063_v46 = vpop.f32.mrb[103].mxu1  ;;  %7359 = vmatprep.subr.bf16.mxu1 %v8088_v42 }
 0x21f   : > { %v6953_v26 = vpop.f32.mrb[104].mxu0  ;;  %v7064_v50 = vadd.f32 %v7063_v46, %v7062_v29  ;;  %v9392_v44 = vadd.f32 %v7061_v45, %v1858_v4  ;;  %v8089_v29 = vld [vmem:[#allocation6 + $0x368] sm:$0xff]  }
 0x220   : > { %v6954_v30 = vpop.f32.mrb[105].mxu0  ;;  %7360 = vmatpush3.bf16.msra.mxu1 %v8089_v29 }
 0x221   : > { %v6955_v6 = vadd.f32 %v6954_v30, %v6953_v26  ;;  %v6956_v33 = vpop.f32.mrb[106].mxu0  ;;  %v9394_v28 = vadd.f32 %v7064_v50, %v1861_v37 }
 0x222   : > { %v6957_v24 = vpop.f32.mrb[107].mxu0 }
 0x223   : > { %v1866_v40 = vadd.f32 %v6955_v6, %v9290_v53  ;;  %v6958_v52 = vadd.f32 %v6957_v24, %v6956_v33  ;;  %v7065_v59 = vpop.f32.mrb[104].mxu1 }
 0x224   : > { %v7066_v55 = vpop.f32.mrb[105].mxu1 }
 0x225   : > { %v1869_v51 = vadd.f32 %v6958_v52, %v9294_v11  ;;  %v7067_v27 = vadd.f32 %v7066_v55, %v7065_v59  ;;  %v7068_v7 = vpop.f32.mrb[106].mxu1 }
 0x226   : > { %v7069_v23 = vpop.f32.mrb[107].mxu1 }
 0x227   : > { %v6959_v1 = vpop.f32.mrb[108].mxu0  ;;  %v7070_v10 = vadd.f32 %v7069_v23, %v7068_v7  ;;  %v9398_v39 = vadd.f32 %v7067_v27, %v1866_v40 }
 0x228   : > { %v6960_v18 = vpop.f32.mrb[109].mxu0 }
 0x229   : > { %v6961_v12 = vadd.f32 %v6960_v18, %v6959_v1  ;;  %v6962_v41 = vpop.f32.mrb[110].mxu0  ;;  %v9400_v4 = vadd.f32 %v7070_v10, %v1869_v51 }
 0x22a   : > { %v6963_v54 = vpop.f32.mrb[111].mxu0 }
 0x22b   : > { %v1874_v53 = vadd.f32 %v6961_v12, %v9301_v8  ;;  %v6964_v5 = vadd.f32 %v6963_v54, %v6962_v41  ;;  %v7071_v19 = vpop.f32.mrb[108].mxu1 }
 0x22c   : > { %v7072_v37 = vpop.f32.mrb[109].mxu1 }
 0x22d   : > { %v1877_v11 = vadd.f32 %v6964_v5, %v9303_v56  ;;  %v7073_v14 = vadd.f32 %v7072_v37, %v7071_v19  ;;  %v7074_v45 = vpop.f32.mrb[110].mxu1  ;;  %v8092_v37 = vld [vmem:[#allocation6 + $0x3b0] sm:$0xff]  }
 0x22e   : > { %v7075_v43 = vpop.f32.mrb[111].mxu1  ;;  %7361 = vmatprep.subr.bf16.mxu1 %v8092_v37 }
 0x22f   : > { %v6965_v46 = vpop.f32.mrb[112].mxu0  ;;  %v7076_v26 = vadd.f32 %v7075_v43, %v7074_v45  ;;  %v9404_v30 = vadd.f32 %v7073_v14, %v1874_v53  ;;  %v8093_v45 = vld [vmem:[#allocation6 + $0x370] sm:$0xff]  }
 0x230   : > { %v6966_v50 = vpop.f32.mrb[113].mxu0  ;;  %7362 = vmatpush3.bf16.msra.mxu1 %v8093_v45 }
 0x231   : > { %v6967_v6 = vadd.f32 %v6966_v50, %v6965_v46  ;;  %v6968_v33 = vpop.f32.mrb[114].mxu0  ;;  %v9406_v24 = vadd.f32 %v7076_v26, %v1877_v11 }
 0x232   : > { %v6969_v8 = vpop.f32.mrb[115].mxu0 }
 0x233   : > { %v1882_v56 = vadd.f32 %v6967_v6, %v9307_v3  ;;  %v6970_v40 = vadd.f32 %v6969_v8, %v6968_v33  ;;  %v7077_v52 = vpop.f32.mrb[112].mxu1 }
 0x234   : > { %v7078_v51 = vpop.f32.mrb[113].mxu1 }
 0x235   : > { %v1885_v59 = vadd.f32 %v6970_v40, %v9309_v58  ;;  %v7079_v55 = vadd.f32 %v7078_v51, %v7077_v52  ;;  %v7080_v27 = vpop.f32.mrb[114].mxu1 }
 0x236   : > { %v7081_v7 = vpop.f32.mrb[115].mxu1 }
 0x237   : > { %v6971_v23 = vpop.f32.mrb[116].mxu0  ;;  %v7082_v1 = vadd.f32 %v7081_v7, %v7080_v27  ;;  %v9410_v18 = vadd.f32 %v7079_v55, %v1882_v56 }
 0x238   : > { %v6972_v10 = vpop.f32.mrb[117].mxu0 }
 0x239   : > { %v6973_v12 = vadd.f32 %v6972_v10, %v6971_v23  ;;  %v6974_v41 = vpop.f32.mrb[118].mxu0  ;;  %v9412_v53 = vadd.f32 %v7082_v1, %v1885_v59 }
 0x23a   : > { %v6975_v54 = vpop.f32.mrb[119].mxu0 }
 0x23b   : > { %v1890_v3 = vadd.f32 %v6973_v12, %v9313_v20  ;;  %v6976_v5 = vadd.f32 %v6975_v54, %v6974_v41  ;;  %v7083_v19 = vpop.f32.mrb[116].mxu1 }
 0x23c   : > { %v7084_v11 = vpop.f32.mrb[117].mxu1 }
 0x23d   : > { %v1893_v58 = vadd.f32 %v6976_v5, %v9315_v17  ;;  %v7085_v42 = vadd.f32 %v7084_v11, %v7083_v19  ;;  %v7086_v14 = vpop.f32.mrb[118].mxu1  ;;  %v8096_v11 = vld [vmem:[#allocation6 + $0x3b8] sm:$0xff]  }
 0x23e   : > { %v7087_v29 = vpop.f32.mrb[119].mxu1  ;;  %7363 = vmatprep.subr.bf16.mxu1 %v8096_v11 }
 0x23f   : > { %v6977_v43 = vpop.f32.mrb[120].mxu0  ;;  %v7088_v46 = vadd.f32 %v7087_v29, %v7086_v14  ;;  %v9416_v50 = vadd.f32 %v7085_v42, %v1890_v3  ;;  %v8097_v14 = vld [vmem:[#allocation6 + $0x378] sm:$0xff]  }
 0x240   : > { %v6978_v26 = vpop.f32.mrb[121].mxu0  ;;  %7364 = vmatpush3.bf16.msra.mxu1 %v8097_v14 }
 0x241   : > { %v6979_v6 = vadd.f32 %v6978_v26, %v6977_v43  ;;  %v6980_v33 = vpop.f32.mrb[122].mxu0  ;;  %v9418_v8 = vadd.f32 %v7088_v46, %v1893_v58 }
 0x242   : > { %v6981_v20 = vpop.f32.mrb[123].mxu0 }
 0x243   : > { %v1898_v17 = vadd.f32 %v6979_v6, %v9319_v25  ;;  %v6982_v56 = vadd.f32 %v6981_v20, %v6980_v33  ;;  %v7089_v40 = vpop.f32.mrb[120].mxu1 }
 0x244   : > { %v7090_v59 = vpop.f32.mrb[121].mxu1 }
 0x245   : > { %v1901_v52 = vadd.f32 %v6982_v56, %v9321_v22  ;;  %v7091_v51 = vadd.f32 %v7090_v59, %v7089_v40  ;;  %v7092_v55 = vpop.f32.mrb[122].mxu1 }
 0x246   : > { %v7093_v27 = vpop.f32.mrb[123].mxu1 }
 0x247   : > { %v6983_v7 = vpop.f32.mrb[124].mxu0  ;;  %v7094_v23 = vadd.f32 %v7093_v27, %v7092_v55  ;;  %v9422_v10 = vadd.f32 %v7091_v51, %v1898_v17  ;;  %v2515_v55 = vrot.slane %v9331_v63, 2 }
 0x248   : > { %v6984_v1 = vpop.f32.mrb[125].mxu0 }
 0x249   : > { %v6985_v12 = vadd.f32 %v6984_v1, %v6983_v7  ;;  %v6986_v41 = vpop.f32.mrb[126].mxu0  ;;  %v9424_v3 = vadd.f32 %v7094_v23, %v1901_v52 }
 0x24a   : > { %v6987_v54 = vpop.f32.mrb[127].mxu0 }
 0x24b   : > { %v1906_v25 = vadd.f32 %v6985_v12, %v9325_v21  ;;  %v6988_v5 = vadd.f32 %v6987_v54, %v6986_v41  ;;  %v7095_v19 = vpop.f32.mrb[124].mxu1 }
 0x24c   : > { %v7096_v58 = vpop.f32.mrb[125].mxu1 }
 0x24d   : > { %v1909_v22 = vadd.f32 %v6988_v5, %v9327_v60  ;;  %v7097_v37 = vadd.f32 %v7096_v58, %v7095_v19  ;;  %v7098_v42 = vpop.f32.mrb[126].mxu1 }
 0x24e   : > { %v7099_v45 = vpop.f32.mrb[127].mxu1 }
 0x24f   : > { %v7787_v29 = vpop.f32.mrb[128].mxu0  ;;  %v7100_v43 = vadd.f32 %v7099_v45, %v7098_v42  ;;  %v9429_v6 = vadd.f32 %v7097_v37, %v1906_v25 }
 0x250   : > { %v2116_v46 = vadd.f32 %v7787_v29, %v9344_v57  ;;  %v2107_v26 = vpop.f32.mrb[129].mxu0 }
 0x251   : > { %v2108_v21 = vadd.f32 %v2107_v26, %v9334_v13  ;;  %v7788_v33 = vpop.f32.mrb[130].mxu0  ;;  %v9433_v56 = vadd.f32 %v7100_v43, %v1909_v22  ;;  %v9437_v13 = vld [vmem:[#allocation2 + $0x198] sm:$0xff] }
 0x252   : > { %v2236_v20 = vmax.f32 %v2116_v46, 0.0  ;;  %v2119_v60 = vadd.f32 %v7788_v33, %v9346_v48  ;;  %v2110_v17 = vpop.f32.mrb[131].mxu0  ;;  %v2512_v27 = vrot.slane %v9437_v13, 2  ;;  %v8083_v33 = vld [vmem:[#allocation6 + $0x3c0] sm:$0xff]  }
 0x253   : > { %v2234_v40 = vmax.f32 %v2108_v21, 0.0  ;;  %v2111_v52 = vadd.f32 %v2110_v17, %v9338_v38 }
 0x254   : > { %2268 = vst [vmem:[#allocation2 + $0x31] sm:$0xff] %v2236_v20  ;;  %v2237_v59 = vmax.f32 %v2119_v60, 0.0  ;;  %v2516_v5 = vsel %vm645_vm1, %v2512_v27, %v2515_v55  ;;  %v9466_v20 = vld [vmem:[#allocation6 + $0x440] sm:$0xff]  }
 0x255   : > { %2266 = vst [vmem:[#allocation2 + $0x19] sm:$0xff] %v2234_v40  ;;  %v2235_v57 = vmax.f32 %v2111_v52, 0.0  ;;  %v2660_v11 = vpack.c.bf16 %v2516_v5, %v2512_v27  ;;  %7817 = vmatprep.subr.bf16.mxu1 %v9466_v20 }
 0x256   : > { %2269 = vst [vmem:[#allocation2 + $0x39] sm:$0xff] %v2237_v59 }
 0x257   : > { %2267 = vst [vmem:[#allocation2 + $0x21] sm:$0xff] %v2235_v57  ;;  %v7791_v51 = vpop.f32.mrb[132].mxu0  ;;  %v8086_v57 = vld [vmem:[#allocation6 + $0x408] sm:$0xff]  }
 0x258   : > { %v2132_v48 = vadd.f32 %v7791_v51, %v9356_v47  ;;  %v2123_v7 = vpop.f32.mrb[133].mxu0 }
 0x259   : > { %v2124_v23 = vadd.f32 %v2123_v7, %v9350_v31  ;;  %v7792_v1 = vpop.f32.mrb[134].mxu0 }
 0x25a   : > { %v2240_v38 = vmax.f32 %v2132_v48, 0.0  ;;  %v2135_v12 = vadd.f32 %v7792_v1, %v9358_v16  ;;  %v2126_v41 = vpop.f32.mrb[135].mxu0 }
 0x25b   : > { %v2238_v54 = vmax.f32 %v2124_v23, 0.0  ;;  %v2127_v25 = vadd.f32 %v2126_v41, %v9352_v34  ;;  %v9445_v63 = vld [vmem:[#allocation2 + $0x30] sm:$0xff] }
 0x25c   : > { %2272 = vst [vmem:[#allocation2 + $0x61] sm:$0xff] %v2240_v38  ;;  %v2241_v19 = vmax.f32 %v2135_v12, 0.0  ;;  %v9447_v22 = vld [vmem:[#allocation2 + $0x18] sm:$0xff]  ;;  %4762 = vst [vmem:[#allocation2 + $0x30] sm:$0xff] %v9437_v13  ;;  %v2410_v34 = vrot.slane %v9445_v63, 1 }
 0x25d   : > { %2270 = vst [vmem:[#allocation2 + $0x49] sm:$0xff] %v2238_v54  ;;  %v2239_v31 = vmax.f32 %v2127_v25, 0.0  ;;  %4760 = vst [vmem:[#allocation2 + $0x18] sm:$0xff] %v9437_v13  ;;  %v9451_v47 = vld [vmem:[#allocation2 + $0x38] sm:$0xff]  ;;  %v9453_v16 = vld [vmem:[#allocation2 + $0x40] sm:$0x3] }
 0x25e   : > { %2273 = vst [vmem:[#allocation2 + $0x69] sm:$0xff] %v2241_v19  ;;  %v2302_v58 = vld [vmem:[#allocation2 + $0x20] sm:$0xff]  ;;  %4763 = vst [vmem:[#allocation2 + $0x38] sm:$0x3] %v9437_v13  ;;  %v2303_v37 = vld [vmem:[#allocation2 + $0x28] sm:$0x3]  ;;  %v9464_v46 = vpack.c.bf16 %v9451_v47, %v9445_v63 }
 0x25f   : > { %v2405_v42 = vrot.slane %v9447_v22, 1  ;;  %v2411_v14 = vrot.slane %v9451_v47, 1  ;;  %v2413_v45 = vrot.slane %v9453_v16, 1  ;;  %2271 = vst [vmem:[#allocation2 + $0x51] sm:$0xff] %v2239_v31  ;;  %v7795_v29 = vpop.f32.mrb[136].mxu0  ;;  %v2661_v43 = vpack.c.bf16 %v2302_v58, %v9447_v22  ;;  %v8087_v25 = vld [vmem:[#allocation6 + $0x3c8] sm:$0xff]  }
 0x260   : > { %4761 = vst [vmem:[#allocation2 + $0x20] sm:$0x3] %v9437_v13  ;;  %v2406_v26 = vrot.slane %v2302_v58, 1  ;;  %v2408_v21 = vrot.slane %v2303_v37, 1  ;;  %v2148_v60 = vadd.f32 %v7795_v29, %v9368_v2  ;;  %v2139_v17 = vpop.f32.mrb[137].mxu0  ;;  %v2518_v59 = vrot.slane %v2302_v58, 2 }
 0x261   : > { %v2412_v40 = vsel %vm532_vm0, %v2410_v34, %v2411_v14  ;;  %v2414_v52 = vsel %vm532_vm0, %v2411_v14, %v2413_v45  ;;  %v2140_v51 = vadd.f32 %v2139_v17, %v9362_v32  ;;  %v7796_v55 = vpop.f32.mrb[138].mxu0  ;;  %3490 = vmatprep.mubr.bf16.mxu0 %v2661_v43  ;;  %v2520_v7 = vrot.slane %v2303_v37, 2 }
 0x262   : > { %v2407_v27 = vsel %vm532_vm0, %v2405_v42, %v2406_v26  ;;  %v2409_v48 = vsel %vm532_vm0, %v2406_v26, %v2408_v21  ;;  %v2244_v23 = vmax.f32 %v2148_v60, 0.0  ;;  %v2151_v1 = vadd.f32 %v7796_v55, %v9370_v0  ;;  %v2142_v2 = vpop.f32.mrb[139].mxu0  ;;  %3491 = vmatmul.mubr.bf16.vlgmr.msra.gmra.mrb[160].mxu0 %v2660_v11 }
 0x263   : > { %v9475_v38 = vpack.c.bf16 %v2409_v48, %v2407_v27  ;;  %v2242_v12 = vmax.f32 %v2140_v51, 0.0  ;;  %v2143_v41 = vadd.f32 %v2142_v2, %v9364_v9  ;;  %3498 = vmatprep.mubr.bf16.mxu0 %v9464_v46  ;;  %v2517_v32 = vrot.slane %v9447_v22, 2  ;;  %v9481_v54 = vld [vmem:[#allocation2 + $0x60] sm:$0xff]  ;;  %7462 = vmatpush3.bf16.msra.mxu0 %v8083_v33 }
 0x264   : > { %2276 = vst [vmem:[#allocation2 + $0x91] sm:$0xff] %v2244_v23  ;;  %v2245_v5 = vmax.f32 %v2151_v1, 0.0  ;;  %v9484_v0 = vpack.c.bf16 %v2414_v52, %v2412_v40  ;;  %v9486_v19 = vld [vmem:[#allocation2 + $0x48] sm:$0xff]  ;;  %4766 = vst [vmem:[#allocation2 + $0x60] sm:$0xff] %v9437_v13  ;;  %7463 = vmatprep.subr.bf16.mxu0 %v8086_v57  ;;  %v8090_v9 = vld [vmem:[#allocation6 + $0x410] sm:$0xff]   ;;  %v2521_v34 = vsel %vm645_vm1, %v2518_v59, %v2520_v7  ;;  %v2523_v60 = vrot.slane %v9451_v47, 2 }
 0x265   : > { %3337 = vmatprep.mubr.bf16.mxu1 %v9475_v38  ;;  %2274 = vst [vmem:[#allocation2 + $0x79] sm:$0xff] %v2242_v12  ;;  %v2243_v31 = vmax.f32 %v2143_v41, 0.0  ;;  %v2519_v22 = vsel %vm645_vm1, %v2517_v32, %v2518_v59  ;;  %4764 = vst [vmem:[#allocation2 + $0x48] sm:$0xff] %v9437_v13  ;;  %v9492_v58 = vld [vmem:[#allocation2 + $0x68] sm:$0xff]  ;;  %v2415_v14 = vrot.slane %v9486_v19, 1  ;;  %v2525_v17 = vrot.slane %v9453_v16, 2 }
 0x266   : > { %3338 = vmatmul.mubr.bf16.gmra.mrb[132].mxu1 %v2661_v43  ;;  %2277 = vst [vmem:[#allocation2 + $0x99] sm:$0xff] %v2245_v5  ;;  %v9495_v11 = vld [vmem:[#allocation2 + $0x50] sm:$0xff]  ;;  %v9497_v37 = vld [vmem:[#allocation2 + $0x58] sm:$0x3]  ;;  %4767 = vst [vmem:[#allocation2 + $0x68] sm:$0x3] %v9437_v13  ;;  %v9505_v33 = vpack.c.bf16 %v2521_v34, %v2519_v22 }
 0x267   : > { %3345 = vmatprep.mubr.bf16.mxu1 %v9484_v0  ;;  %2275 = vst [vmem:[#allocation2 + $0x81] sm:$0xff] %v2243_v31  ;;  %v7799_v42 = vpop.f32.mrb[140].mxu0  ;;  %4765 = vst [vmem:[#allocation2 + $0x50] sm:$0x3] %v9437_v13  ;;  %v2416_v45 = vrot.slane %v9495_v11, 1  ;;  %v2418_v29 = vrot.slane %v9497_v37, 1  ;;  %7464 = vmatpush3.bf16.msra.mxu0 %v8087_v25  ;;  %v9512_v57 = vpack.c.bf16 %v9495_v11, %v9486_v19 }
 0x268   : > { %v8091_v43 = vld [vmem:[#allocation6 + $0x3d0] sm:$0xff]   ;;  %v2164_v26 = vadd.f32 %v7799_v42, %v9380_v49  ;;  %v2155_v21 = vpop.f32.mrb[141].mxu0  ;;  %7465 = vmatprep.subr.bf16.mxu0 %v8090_v9  ;;  %v8094_v40 = vld [vmem:[#allocation6 + $0x418] sm:$0xff]   ;;  %v2522_v47 = vrot.slane %v9445_v63, 2  ;;  %v9519_v16 = vld [vmem:[#allocation2 + $0x70] sm:$0x3]  ;;  %v2526_v32 = vsel %vm645_vm1, %v2523_v60, %v2525_v17 }
 0x269   : > { %v2156_v52 = vadd.f32 %v2155_v21, %v9374_v62  ;;  %v7800_v59 = vpop.f32.mrb[142].mxu0  ;;  %v2417_v51 = vsel %vm532_vm0, %v2415_v14, %v2416_v45  ;;  %v2419_v49 = vsel %vm532_vm0, %v2416_v45, %v2418_v29  ;;  %v8095_v1 = vld [vmem:[#allocation6 + $0x3d8] sm:$0xff]   ;;  %v8098_v63 = vld [vmem:[#allocation6 + $0x420] sm:$0xff]   ;;  %v2421_v25 = vrot.slane %v9492_v58, 1  ;;  %v8100_v21 = vld [vmem:[#allocation6 + $0x428] sm:$0xff]  }
 0x26a   : > { %v2248_v55 = vmax.f32 %v2164_v26, 0.0  ;;  %v2167_v27 = vadd.f32 %v7800_v59, %v9382_v61  ;;  %v2158_v48 = vpop.f32.mrb[143].mxu0  ;;  %3499 = vmatmul.mubr.bf16.gmra.mrb[164].mxu0 %v9505_v33  ;;  %v9525_v12 = vpack.c.bf16 %v2419_v49, %v2417_v51  ;;  %v2524_v61 = vsel %vm645_vm1, %v2522_v47, %v2523_v60  ;;  %v8099_v42 = vld [vmem:[#allocation6 + $0x3e0] sm:$0xff]   ;;  %v8101_v47 = vld [vmem:[#allocation6 + $0x3e8] sm:$0xff]  }
 0x26b   : > { %v2246_v62 = vmax.f32 %v2156_v52, 0.0  ;;  %v2159_v7 = vadd.f32 %v2158_v48, %v9376_v35  ;;  %3506 = vmatprep.mubr.bf16.mxu0 %v9512_v57  ;;  %v9523_v23 = vld [vmem:[#allocation2 + $0x90] sm:$0xff]  ;;  %7466 = vmatpush3.bf16.msra.mxu0 %v8091_v43  ;;  %v2423_v5 = vrot.slane %v9519_v16, 1  ;;  %v2420_v34 = vrot.slane %v9481_v54, 1 }
 0x26c   : > { %2280 = vst [vmem:[#allocation2 + $0xc1] sm:$0xff] %v2248_v55  ;;  %v2249_v2 = vmax.f32 %v2167_v27, 0.0  ;;  %v9528_v41 = vld [vmem:[#allocation2 + $0x78] sm:$0xff]  ;;  %4770 = vst [vmem:[#allocation2 + $0x90] sm:$0xff] %v9437_v13  ;;  %7467 = vmatprep.subr.bf16.mxu0 %v8094_v40  ;;  %v9545_v29 = vpack.c.bf16 %v2526_v32, %v2524_v61  ;;  %v9549_v43 = vpack.c.bf16 %v9492_v58, %v9481_v54  ;;  %v2528_v26 = vrot.slane %v9495_v11, 2 }
 0x26d   : > { %2278 = vst [vmem:[#allocation2 + $0xa9] sm:$0xff] %v2246_v62  ;;  %v2247_v35 = vmax.f32 %v2159_v7, 0.0  ;;  %4768 = vst [vmem:[#allocation2 + $0x78] sm:$0xff] %v9437_v13  ;;  %v9536_v9 = vld [vmem:[#allocation2 + $0x98] sm:$0xff]  ;;  %v2422_v40 = vsel %vm532_vm0, %v2420_v34, %v2421_v25  ;;  %v2424_v52 = vsel %vm532_vm0, %v2421_v25, %v2423_v5  ;;  %v2527_v55 = vrot.slane %v9486_v19, 2  ;;  %v8102_v19 = vld [vmem:[#allocation6 + $0x430] sm:$0xff]  }
 0x26e   : > { %3346 = vmatmul.mubr.bf16.gmra.mrb[136].mxu1 %v9464_v46  ;;  %2281 = vst [vmem:[#allocation2 + $0xc9] sm:$0xff] %v2249_v2  ;;  %v9539_v31 = vld [vmem:[#allocation2 + $0x80] sm:$0xff]  ;;  %4771 = vst [vmem:[#allocation2 + $0x98] sm:$0x3] %v9437_v13  ;;  %v9559_v11 = vld [vmem:[#allocation2 + $0x88] sm:$0x3]  ;;  %v9565_v62 = vpack.c.bf16 %v2424_v52, %v2422_v40 }
 0x26f   : > { %3353 = vmatprep.mubr.bf16.mxu1 %v9525_v12  ;;  %2279 = vst [vmem:[#allocation2 + $0xb1] sm:$0xff] %v2247_v35  ;;  %v7803_v22 = vpop.f32.mrb[144].mxu0  ;;  %4769 = vst [vmem:[#allocation2 + $0x80] sm:$0x3] %v9437_v13  ;;  %7468 = vmatpush3.bf16.msra.mxu0 %v8095_v1  ;;  %v2426_v2 = vrot.slane %v9539_v31, 1  ;;  %v2428_v61 = vrot.slane %v9559_v11, 1 }
 0x270   : > { %v2180_v14 = vadd.f32 %v7803_v22, %v9392_v44  ;;  %v2171_v45 = vpop.f32.mrb[145].mxu0  ;;  %7469 = vmatprep.subr.bf16.mxu0 %v8098_v63  ;;  %v2530_v44 = vrot.slane %v9497_v37, 2  ;;  %v2425_v25 = vrot.slane %v9528_v41, 1  ;;  %v8103_v5 = vld [vmem:[#allocation6 + $0x3f0] sm:$0xff]  }
 0x271   : > { %v2172_v60 = vadd.f32 %v2171_v45, %v9386_v15  ;;  %v7804_v17 = vpop.f32.mrb[146].mxu0  ;;  %v2535_v45 = vrot.slane %v9519_v16, 2  ;;  %v9599_v16 = vld [vmem:[#allocation2 + $0xa0] sm:$0x3] }
 0x272   : > { %v2252_v59 = vmax.f32 %v2180_v14, 0.0  ;;  %v2183_v51 = vadd.f32 %v7804_v17, %v9394_v28  ;;  %v2174_v49 = vpop.f32.mrb[147].mxu0  ;;  %3507 = vmatmul.mubr.bf16.gmra.mrb[168].mxu0 %v9545_v29  ;;  %v2529_v28 = vsel %vm645_vm1, %v2527_v55, %v2528_v26  ;;  %v2531_v1 = vsel %vm645_vm1, %v2528_v26, %v2530_v44  ;;  %v8105_v26 = vld [vmem:[#allocation6 + $0x438] sm:$0xff]  }
 0x273   : > { %v2250_v27 = vmax.f32 %v2172_v60, 0.0  ;;  %v2175_v15 = vadd.f32 %v2174_v49, %v9388_v36  ;;  %3514 = vmatprep.mubr.bf16.mxu0 %v9549_v43  ;;  %v9563_v48 = vld [vmem:[#allocation2 + $0xc0] sm:$0xff]  ;;  %7470 = vmatpush3.bf16.msra.mxu0 %v8099_v42  ;;  %v9585_v42 = vpack.c.bf16 %v2531_v1, %v2529_v28  ;;  %v2533_v14 = vrot.slane %v9492_v58, 2  ;;  %v8106_v49 = vld [vmem:[#allocation6 + $0x3f8] sm:$0xff]  }
 0x274   : > { %2284 = vst [vmem:[#allocation2 + $0xf1] sm:$0xff] %v2252_v59  ;;  %v2253_v37 = vmax.f32 %v2183_v51, 0.0  ;;  %v9568_v7 = vld [vmem:[#allocation2 + $0xa8] sm:$0xff]  ;;  %4774 = vst [vmem:[#allocation2 + $0xc0] sm:$0xff] %v9437_v13  ;;  %7471 = vmatprep.subr.bf16.mxu0 %v8100_v21  ;;  %v9592_v17 = vpack.c.bf16 %v9539_v31, %v9528_v41  ;;  %v2427_v40 = vsel %vm532_vm0, %v2425_v25, %v2426_v2  ;;  %v2532_v58 = vrot.slane %v9481_v54, 2 }
 0x275   : > { %2282 = vst [vmem:[#allocation2 + $0xd9] sm:$0xff] %v2250_v27  ;;  %v2251_v36 = vmax.f32 %v2175_v15, 0.0  ;;  %4772 = vst [vmem:[#allocation2 + $0xa8] sm:$0xff] %v9437_v13  ;;  %v9576_v63 = vld [vmem:[#allocation2 + $0xc8] sm:$0xff]  ;;  %v2538_v25 = vrot.slane %v9539_v31, 2 }
 0x276   : > { %3354 = vmatmul.mubr.bf16.gmra.mrb[140].mxu1 %v9512_v57  ;;  %2285 = vst [vmem:[#allocation2 + $0xf9] sm:$0xff] %v2253_v37  ;;  %v9579_v35 = vld [vmem:[#allocation2 + $0xb0] sm:$0xff]  ;;  %4775 = vst [vmem:[#allocation2 + $0xc8] sm:$0x3] %v9437_v13  ;;  %v2433_v37 = vrot.slane %v9599_v16, 1 }
 0x277   : > { %3361 = vmatprep.mubr.bf16.mxu1 %v9565_v62  ;;  %2283 = vst [vmem:[#allocation2 + $0xe1] sm:$0xff] %v2251_v36  ;;  %v7807_v32 = vpop.f32.mrb[148].mxu0  ;;  %4773 = vst [vmem:[#allocation2 + $0xb0] sm:$0x3] %v9437_v13  ;;  %7472 = vmatpush3.bf16.msra.mxu0 %v8101_v47  ;;  %v2536_v47 = vsel %vm645_vm1, %v2533_v14, %v2535_v45  ;;  %v2430_v36 = vrot.slane %v9523_v23, 1 }
 0x278   : > { %v2196_v22 = vadd.f32 %v7807_v32, %v9404_v30  ;;  %v2187_v34 = vpop.f32.mrb[149].mxu0  ;;  %7473 = vmatprep.subr.bf16.mxu0 %v8102_v19  ;;  %v2429_v30 = vsel %vm532_vm0, %v2426_v2, %v2428_v61  ;;  %v9623_v32 = vpack.c.bf16 %v9536_v9, %v9523_v23 }
 0x279   : > { %v2188_v21 = vadd.f32 %v2187_v34, %v9398_v39  ;;  %v7808_v60 = vpop.f32.mrb[150].mxu0  ;;  %v9603_v27 = vpack.c.bf16 %v2429_v30, %v2427_v40 }
 0x27a   : > { %v2256_v52 = vmax.f32 %v2196_v22, 0.0  ;;  %v2199_v44 = vadd.f32 %v7808_v60, %v9406_v24  ;;  %v2190_v59 = vpop.f32.mrb[151].mxu0  ;;  %3515 = vmatmul.mubr.bf16.gmra.mrb[172].mxu0 %v9585_v42  ;;  %v2534_v24 = vsel %vm645_vm1, %v2532_v58, %v2533_v14  ;;  %v9633_v60 = vld [vmem:[#allocation2 + $0xb8] sm:$0x3] }
 0x27b   : > { %v2254_v39 = vmax.f32 %v2188_v21, 0.0  ;;  %v2191_v51 = vadd.f32 %v2190_v59, %v9400_v4  ;;  %3522 = vmatprep.mubr.bf16.mxu0 %v9592_v17  ;;  %7474 = vmatpush3.bf16.msra.mxu0 %v8103_v5  ;;  %v2431_v4 = vrot.slane %v9536_v9, 1  ;;  %v9619_v61 = vpack.c.bf16 %v2536_v47, %v2534_v24 }
 0x27c   : > { %2288 = vst [vmem:[#allocation2 + $0x121] sm:$0xff] %v2256_v52  ;;  %v2257_v55 = vmax.f32 %v2199_v44, 0.0  ;;  %v9606_v15 = vld [vmem:[#allocation2 + $0xd8] sm:$0xff]  ;;  %7475 = vmatprep.subr.bf16.mxu0 %v8105_v26  ;;  %v2537_v21 = vrot.slane %v9528_v41, 2  ;;  %v2436_v41 = vrot.slane %v9579_v35, 1  ;;  %v2438_v44 = vrot.slane %v9633_v60, 1 }
 0x27d   : > { %2286 = vst [vmem:[#allocation2 + $0x109] sm:$0xff] %v2254_v39  ;;  %v2255_v54 = vmax.f32 %v2191_v51, 0.0  ;;  %4776 = vst [vmem:[#allocation2 + $0xd8] sm:$0xff] %v9437_v13  ;;  %v2432_v34 = vsel %vm532_vm0, %v2430_v36, %v2431_v4  ;;  %v2434_v14 = vsel %vm532_vm0, %v2431_v4, %v2433_v37  ;;  %v2435_v59 = vrot.slane %v9568_v7, 1 }
 0x27e   : > { %3362 = vmatmul.mubr.bf16.gmra.mrb[144].mxu1 %v9549_v43  ;;  %2289 = vst [vmem:[#allocation2 + $0x129] sm:$0xff] %v2257_v55  ;;  %v9614_v28 = vld [vmem:[#allocation2 + $0xe0] sm:$0xff]  ;;  %v9637_v30 = vpack.c.bf16 %v2434_v14, %v2432_v34  ;;  %v2545_v55 = vrot.slane %v9599_v16, 2  ;;  %v9654_v47 = vpack.c.bf16 %v9579_v35, %v9568_v7  ;;  %v2439_v37 = vsel %vm532_vm0, %v2436_v41, %v2438_v44 }
 0x27f   : > { %3369 = vmatprep.mubr.bf16.mxu1 %v9603_v27  ;;  %2287 = vst [vmem:[#allocation2 + $0x111] sm:$0xff] %v2255_v54  ;;  %v7811_v19 = vpop.f32.mrb[152].mxu0  ;;  %4777 = vst [vmem:[#allocation2 + $0xe0] sm:$0x3] %v9437_v13  ;;  %7476 = vmatpush3.bf16.msra.mxu0 %v8106_v49  ;;  %v2540_v13 = vrot.slane %v9559_v11, 2  ;;  %v2539_v11 = vsel %vm645_vm1, %v2537_v21, %v2538_v25  ;;  %v2543_v49 = vrot.slane %v9536_v9, 2 }
 0x280   : > { %v2212_v1 = vadd.f32 %v7811_v19, %v9416_v50  ;;  %v2203_v2 = vpop.f32.mrb[153].mxu0  ;;  %v2437_v4 = vsel %vm532_vm0, %v2435_v59, %v2436_v41  ;;  %v9660_v9 = vld [vmem:[#allocation2 + $0xd0] sm:$0x3]  ;;  %v2550_v21 = vrot.slane %v9633_v60, 2  ;;  %v2445_v44 = vrot.slane %v9606_v15, 1 }
 0x281   : > { %v2204_v5 = vadd.f32 %v2203_v2, %v9410_v18  ;;  %v7812_v22 = vpop.f32.mrb[154].mxu0  ;;  %v2541_v52 = vsel %vm645_vm1, %v2538_v25, %v2540_v13  ;;  %v9665_v25 = vpack.c.bf16 %v2439_v37, %v2437_v4  ;;  %v2546_v34 = vsel %vm645_vm1, %v2543_v49, %v2545_v55  ;;  %v2329_v37 = vld [vmem:[#allocation2 + $0xf8] sm:$0xff] }
 0x282   : > { %v2260_v45 = vmax.f32 %v2212_v1, 0.0  ;;  %v2215_v50 = vadd.f32 %v7812_v22, %v9418_v8  ;;  %v2206_v26 = vpop.f32.mrb[155].mxu0  ;;  %3523 = vmatmul.mubr.bf16.gmra.mrb[176].mxu0 %v9619_v61  ;;  %v9647_v51 = vpack.c.bf16 %v2541_v52, %v2539_v11  ;;  %v2542_v1 = vrot.slane %v9523_v23, 2 }
 0x283   : > { %v2258_v31 = vmax.f32 %v2204_v5, 0.0  ;;  %v2207_v18 = vadd.f32 %v2206_v26, %v9412_v53  ;;  %3530 = vmatprep.mubr.bf16.mxu0 %v9623_v32  ;;  %v2441_v5 = vrot.slane %v9576_v63, 1  ;;  %v2440_v23 = vrot.slane %v9563_v48, 1 }
 0x284   : > { %2292 = vst [vmem:[#allocation2 + $0x151] sm:$0xff] %v2260_v45  ;;  %v2261_v40 = vmax.f32 %v2215_v50, 0.0  ;;  %v2544_v22 = vsel %vm645_vm1, %v2542_v1, %v2543_v49  ;;  %v9678_v13 = vpack.c.bf16 %v9576_v63, %v9563_v48  ;;  %v2548_v26 = vrot.slane %v9579_v35, 2 }
 0x285   : > { %2290 = vst [vmem:[#allocation2 + $0x139] sm:$0xff] %v2258_v31  ;;  %v2259_v8 = vmax.f32 %v2207_v18, 0.0  ;;  %v9674_v14 = vpack.c.bf16 %v2546_v34, %v2544_v22  ;;  %v2442_v45 = vsel %vm532_vm0, %v2440_v23, %v2441_v5  ;;  %v9685_v31 = vld [vmem:[#allocation2 + $0xe8] sm:$0x3]  ;;  %v2547_v18 = vrot.slane %v9568_v7, 2 }
 0x286   : > { %3370 = vmatmul.mubr.bf16.gmra.mrb[148].mxu1 %v9592_v17  ;;  %2293 = vst [vmem:[#allocation2 + $0x159] sm:$0xff] %v2261_v40  ;;  %v2446_v35 = vrot.slane %v9614_v28, 1  ;;  %v2448_v60 = vrot.slane %v9685_v31, 1 }
 0x287   : > { %3377 = vmatprep.mubr.bf16.mxu1 %v9637_v30  ;;  %2291 = vst [vmem:[#allocation2 + $0x141] sm:$0xff] %v2259_v8  ;;  %v7815_v53 = vpop.f32.mrb[156].mxu0  ;;  %v2549_v11 = vsel %vm645_vm1, %v2547_v18, %v2548_v26  ;;  %v2551_v8 = vsel %vm645_vm1, %v2548_v26, %v2550_v21 }
 0x288   : > { %v2228_v58 = vadd.f32 %v7815_v53, %v9429_v6  ;;  %v2219_v39 = vpop.f32.mrb[157].mxu0  ;;  %v2553_v53 = vrot.slane %v9576_v63, 2  ;;  %v2449_v4 = vsel %vm532_vm0, %v2446_v35, %v2448_v60  ;;  %v2332_v60 = vld [vmem:[#allocation2 + $0x110] sm:$0xff] }
 0x289   : > { %v2220_v24 = vadd.f32 %v2219_v39, %v9422_v10  ;;  %v7816_v54 = vpop.f32.mrb[158].mxu0  ;;  %v2555_v39 = vrot.slane %v9660_v9, 2 }
 0x28a   : > { %v2264_v19 = vmax.f32 %v2228_v58, 0.0  ;;  %v2231_v6 = vadd.f32 %v7816_v54, %v9433_v56  ;;  %v2222_v36 = vpop.f32.mrb[159].mxu0  ;;  %3531 = vmatmul.mubr.bf16.gmra.mrb[180].mxu0 %v9647_v51  ;;  %v9704_v58 = vpack.c.bf16 %v2551_v8, %v2549_v11  ;;  %v2447_v54 = vsel %vm532_vm0, %v2445_v44, %v2446_v35 }
 0x28b   : > { %v2262_v16 = vmax.f32 %v2220_v24, 0.0  ;;  %v2223_v10 = vadd.f32 %v2222_v36, %v9424_v3  ;;  %3538 = vmatprep.mubr.bf16.mxu0 %v9654_v47  ;;  %v2443_v3 = vrot.slane %v9660_v9, 1  ;;  %v9711_v24 = vpack.c.bf16 %v9614_v28, %v9606_v15 }
 0x28c   : > { %2296 = vst [vmem:[#allocation2 + $0x181] sm:$0xff] %v2264_v19  ;;  %v2265_v2 = vmax.f32 %v2231_v6, 0.0  ;;  %v2552_v19 = vrot.slane %v9563_v48, 2  ;;  %v2330_v6 = vld [vmem:[#allocation2 + $0x100] sm:$0x3]  ;;  %v9721_v1 = vpack.c.bf16 %v2449_v4, %v2447_v54  ;;  %v2556_v48 = vsel %vm645_vm1, %v2553_v53, %v2555_v39 }
 0x28d   : > { %2294 = vst [vmem:[#allocation2 + $0x169] sm:$0xff] %v2262_v16  ;;  %v2263_v56 = vmax.f32 %v2223_v10, 0.0  ;;  %v2444_v50 = vsel %vm532_vm0, %v2441_v5, %v2443_v3  ;;  %v2328_v5 = vld [vmem:[#allocation2 + $0xf0] sm:$0xff]  ;;  %v2453_v34 = vrot.slane %v2330_v6, 1  ;;  %v2558_v8 = vrot.slane %v9614_v28, 2 }
 0x28e   : > { %3378 = vmatmul.mubr.bf16.gmra.mrb[152].mxu1 %v9623_v32  ;;  %2297 = vst [vmem:[#allocation2 + $0x189] sm:$0xff] %v2265_v2  ;;  %v9689_v40 = vpack.c.bf16 %v2444_v50, %v2442_v45  ;;  %v2554_v2 = vsel %vm645_vm1, %v2552_v19, %v2553_v53  ;;  %v2450_v50 = vrot.slane %v2328_v5, 1  ;;  %v9735_v21 = vpack.c.bf16 %v2329_v37, %v2328_v5 }
 0x28f   : > { %3385 = vmatprep.mubr.bf16.mxu1 %v9665_v25  ;;  %2295 = vst [vmem:[#allocation2 + $0x171] sm:$0xff] %v2263_v56  ;;  %v2451_v56 = vrot.slane %v2329_v37, 1  ;;  %v9733_v26 = vpack.c.bf16 %v2556_v48, %v2554_v2  ;;  %v2560_v35 = vrot.slane %v9685_v31, 2  ;;  %v2557_v44 = vrot.slane %v9606_v15, 2 }
 0x290   : > { %v2456_v28 = vrot.slane %v2332_v60, 1  ;;  %v2563_v54 = vrot.slane %v2329_v37, 2 }
 0x291   : > { %v2452_v18 = vsel %vm532_vm0, %v2450_v50, %v2451_v56  ;;  %v2454_v11 = vsel %vm532_vm0, %v2451_v56, %v2453_v34  ;;  %v2559_v39 = vsel %vm645_vm1, %v2557_v44, %v2558_v8  ;;  %v2334_v56 = vld [vmem:[#allocation2 + $0x120] sm:$0xff] }
 0x292   : > { %3539 = vmatmul.mubr.bf16.gmra.mrb[184].mxu0 %v9674_v14  ;;  %v9744_v53 = vpack.c.bf16 %v2454_v11, %v2452_v18 }
 0x293   : > { %3546 = vmatprep.mubr.bf16.mxu0 %v9678_v13  ;;  %v9696_v52 = vld [vmem:[#allocation2 + $0x180] sm:$0xff] }
 0x294   : > { %v2627_v49 = vrot.slane %v9696_v52, 1  ;;  %v2634_v63 = vrot.slane %v9696_v52, 2 }
 0x295   : > { %v9698_v41 = vld [vmem:[#allocation2 + $0x188] sm:$0xff]  ;;  %v2348_v59 = vld [vmem:[#allocation2 + $0x190] sm:$0x3] }
 0x296   : > { %3386 = vmatmul.mubr.bf16.gmra.mrb[156].mxu1 %v9654_v47  ;;  %v2628_v7 = vrot.slane %v9698_v41, 1  ;;  %v2635_v55 = vrot.slane %v9698_v41, 2  ;;  %v2630_v9 = vrot.slane %v2348_v59, 1  ;;  %v2637_v10 = vrot.slane %v2348_v59, 2  ;;  %v2331_v59 = vld [vmem:[#allocation2 + $0x108] sm:$0xff] }
 0x297   : > { %3393 = vmatprep.mubr.bf16.mxu1 %v9689_v40  ;;  %v2455_v31 = vrot.slane %v2331_v59, 1 }
 0x298   : > { %v2629_v36 = vsel %vm532_vm0, %v2627_v49, %v2628_v7  ;;  %v2636_v16 = vsel %vm645_vm1, %v2634_v63, %v2635_v55  ;;  %v2631_v22 = vsel %vm532_vm0, %v2628_v7, %v2630_v9  ;;  %v2638_v23 = vsel %vm645_vm1, %v2635_v55, %v2637_v10  ;;  %v2333_v7 = vld [vmem:[#allocation2 + $0x118] sm:$0x3]  ;;  %v2335_v9 = vld [vmem:[#allocation2 + $0x128] sm:$0xff] }
 0x299   : > { %v9727_v3 = vpack.c.bf16 %v2631_v22, %v2629_v36  ;;  %v9731_v45 = vpack.c.bf16 %v2638_v23, %v2636_v16  ;;  %v2561_v49 = vsel %vm645_vm1, %v2558_v8, %v2560_v35  ;;  %v2458_v55 = vrot.slane %v2333_v7, 1  ;;  %v2336_v16 = vld [vmem:[#allocation2 + $0x130] sm:$0x3] }
 0x29a   : > { %3547 = vmatmul.mubr.bf16.gmra.mrb[188].mxu0 %v9704_v58  ;;  %v9750_v4 = vpack.c.bf16 %v2561_v49, %v2559_v39  ;;  %v9752_v63 = vpack.c.bf16 %v2332_v60, %v2331_v59  ;;  %v2457_v15 = vsel %vm532_vm0, %v2455_v31, %v2456_v28  ;;  %v2565_v36 = vrot.slane %v2330_v6, 2  ;;  %v2338_v39 = vld [vmem:[#allocation2 + $0x140] sm:$0xff]  ;;  %v2339_v49 = vld [vmem:[#allocation2 + $0x148] sm:$0x3] }
 0x29b   : > { %3554 = vmatprep.mubr.bf16.mxu0 %v9711_v24  ;;  %10647 = vst [vmem:[#allocation12_spill] sm:$0xff] %v9727_v3  ;;  %10648 = vst [vmem:[#allocation13_spill] sm:$0xff] %v9731_v45  ;;  %v2459_v19 = vsel %vm532_vm0, %v2456_v28, %v2458_v55  ;;  %v2562_v10 = vrot.slane %v2328_v5, 2  ;;  %v2461_v48 = vrot.slane %v2335_v9, 1  ;;  %v2463_v34 = vrot.slane %v2336_v16, 1  ;;  %v2343_v45 = vld [vmem:[#allocation2 + $0x168] sm:$0xff] }
 0x29c   : > { %v9758_v2 = vpack.c.bf16 %v2459_v19, %v2457_v15  ;;  %v2566_v22 = vsel %vm645_vm1, %v2563_v54, %v2565_v36  ;;  %v2460_v6 = vrot.slane %v2334_v56, 1  ;;  %v2568_v23 = vrot.slane %v2332_v60, 2  ;;  %v2337_v15 = vld [vmem:[#allocation2 + $0x138] sm:$0xff] }
 0x29d   : > { %v2564_v37 = vsel %vm645_vm1, %v2562_v10, %v2563_v54  ;;  %v9766_v18 = vpack.c.bf16 %v2335_v9, %v2334_v56  ;;  %v2464_v8 = vsel %vm532_vm0, %v2461_v48, %v2463_v34  ;;  %v2570_v35 = vrot.slane %v2333_v7, 2 }
 0x29e   : > { %3394 = vmatmul.mubr.bf16.gmra.mrb[160].mxu1 %v9678_v13  ;;  %v9764_v50 = vpack.c.bf16 %v2566_v22, %v2564_v37  ;;  %v2462_v11 = vsel %vm532_vm0, %v2460_v6, %v2461_v48  ;;  %v2567_v31 = vrot.slane %v2331_v59, 2  ;;  %v2466_v10 = vrot.slane %v2338_v39, 1 }
 0x29f   : > { %3401 = vmatprep.mubr.bf16.mxu1 %v9721_v1  ;;  %v9774_v54 = vpack.c.bf16 %v2464_v8, %v2462_v11  ;;  %v2571_v36 = vsel %vm645_vm1, %v2568_v23, %v2570_v35  ;;  %v2468_v37 = vrot.slane %v2339_v49, 1  ;;  %v2465_v22 = vrot.slane %v2337_v15, 1  ;;  %v2341_v8 = vld [vmem:[#allocation2 + $0x158] sm:$0xff] }
 0x2a0   : > { %v2569_v7 = vsel %vm645_vm1, %v2567_v31, %v2568_v23  ;;  %v2573_v59 = vrot.slane %v2335_v9, 2  ;;  %v9784_v34 = vpack.c.bf16 %v2338_v39, %v2337_v15  ;;  %v2575_v11 = vrot.slane %v2336_v16, 2 }
 0x2a1   : > { %v9782_v48 = vpack.c.bf16 %v2571_v36, %v2569_v7  ;;  %v2467_v6 = vsel %vm532_vm0, %v2465_v22, %v2466_v10  ;;  %v2572_v23 = vrot.slane %v2334_v56, 2  ;;  %v2578_v36 = vrot.slane %v2338_v39, 2 }
 0x2a2   : > { %3555 = vmatmul.mubr.bf16.gmra.mrb[192].mxu0 %v9733_v26  ;;  %v2576_v31 = vsel %vm645_vm1, %v2573_v59, %v2575_v11 }
 0x2a3   : > { %3562 = vmatprep.mubr.bf16.mxu0 %v9735_v21  ;;  %v2574_v9 = vsel %vm645_vm1, %v2572_v23, %v2573_v59  ;;  %v2345_v23 = vld [vmem:[#allocation2 + $0x178] sm:$0x3]  ;;  %v2577_v59 = vrot.slane %v2337_v15, 2 }
 0x2a5   : > { %v2579_v39 = vsel %vm645_vm1, %v2577_v59, %v2578_v36 }
 0x2a6   : > { %3402 = vmatmul.mubr.bf16.gmra.mrb[164].mxu1 %v9711_v24 }
 0x2a7   : > { %3409 = vmatprep.mubr.bf16.mxu1 %v9744_v53 }
 0x2aa   : > { %3563 = vmatmul.mubr.bf16.gmra.mrb[196].mxu0 %v9750_v4 }
 0x2ab   : > { %3570 = vmatprep.mubr.bf16.mxu0 %v9752_v63 }
 0x2ac   : > { %v7141_v5 = vpop.f32.mrb[128].mxu1 }
 0x2ad   : > { %v7142_v44 = vpop.f32.mrb[129].mxu1 }
 0x2ae   : > { %3410 = vmatmul.mubr.bf16.gmra.mrb[168].mxu1 %v9735_v21  ;;  %v9771_v28 = vadd.f32 %v7142_v44, %v7141_v5  ;;  %v7144_v55 = vpop.f32.mrb[130].mxu1  ;;  %v2469_v5 = vsel %vm532_vm0, %v2466_v10, %v2468_v37  ;;  %v2342_v44 = vld [vmem:[#allocation2 + $0x160] sm:$0x3]  ;;  %v9796_v10 = vpack.c.bf16 %v2576_v31, %v2574_v9 }
 0x2af   : > { %3417 = vmatprep.mubr.bf16.mxu1 %v9758_v2  ;;  %v7145_v60 = vpop.f32.mrb[131].mxu1  ;;  %v9790_v35 = vpack.c.bf16 %v2469_v5, %v2467_v6  ;;  %v2473_v7 = vrot.slane %v2342_v44, 1  ;;  %v2580_v6 = vrot.slane %v2339_v49, 2  ;;  %v2344_v5 = vld [vmem:[#allocation2 + $0x170] sm:$0xff]  ;;  %v2475_v49 = vrot.slane %v2343_v45, 1 }
 0x2b0   : > { %v9776_v19 = vadd.f32 %v7145_v60, %v7144_v55  ;;  %v2340_v55 = vld [vmem:[#allocation2 + $0x150] sm:$0xff]  ;;  %v2471_v60 = vrot.slane %v2341_v8, 1  ;;  %v2476_v31 = vrot.slane %v2344_v5, 1  ;;  %v9812_v15 = vpack.c.bf16 %v2344_v5, %v2343_v45 }
 0x2b1   : > { %v2470_v16 = vrot.slane %v2340_v55, 1  ;;  %v9798_v56 = vpack.c.bf16 %v2341_v8, %v2340_v55  ;;  %v2581_v9 = vsel %vm645_vm1, %v2578_v36, %v2580_v6  ;;  %v2585_v3 = vrot.slane %v2342_v44, 2 }
 0x2b2   : > { %3571 = vmatmul.mubr.bf16.gmra.mrb[200].mxu0 %v9764_v50  ;;  %v2474_v22 = vsel %vm532_vm0, %v2471_v60, %v2473_v7  ;;  %v9810_v7 = vpack.c.bf16 %v2581_v9, %v2579_v39  ;;  %v2582_v59 = vrot.slane %v2340_v55, 2  ;;  %v2588_v9 = vrot.slane %v2344_v5, 2 }
 0x2b3   : > { %3578 = vmatprep.mubr.bf16.mxu0 %v9766_v18  ;;  %v2472_v37 = vsel %vm532_vm0, %v2470_v16, %v2471_v60  ;;  %v2478_v16 = vrot.slane %v2345_v23, 1  ;;  %v2583_v60 = vrot.slane %v2341_v8, 2  ;;  %v9828_v44 = vpack.c.bf16 %v9698_v41, %v9696_v52  ;;  %v8107_v52 = vld [vmem:[#allocation6 + $0x448] sm:$0xff]   ;;  %v8108_v41 = vld [vmem:[#allocation6 + $0x450] sm:$0xff]  }
 0x2b4   : > { %v9804_v11 = vpack.c.bf16 %v2474_v22, %v2472_v37  ;;  %v2477_v37 = vsel %vm532_vm0, %v2475_v49, %v2476_v31  ;;  %v2590_v55 = vrot.slane %v2345_v23, 2 }
 0x2b5   : > { %v2479_v22 = vsel %vm532_vm0, %v2476_v31, %v2478_v16  ;;  %v2584_v8 = vsel %vm645_vm1, %v2582_v59, %v2583_v60  ;;  %v2586_v6 = vsel %vm645_vm1, %v2583_v60, %v2585_v3  ;;  %v2587_v31 = vrot.slane %v2343_v45, 2 }
 0x2b6   : > { %3418 = vmatmul.mubr.bf16.gmra.mrb[172].mxu1 %v9752_v63  ;;  %v9818_v36 = vpack.c.bf16 %v2479_v22, %v2477_v37  ;;  %v9824_v39 = vpack.c.bf16 %v2586_v6, %v2584_v8  ;;  %v2591_v3 = vsel %vm645_vm1, %v2588_v9, %v2590_v55  ;;  %v9913_v55 = vld [vmem:[#allocation2 + $0x1a8] sm:$0x3] }
 0x2b7   : > { %3425 = vmatprep.mubr.bf16.mxu1 %v9774_v54  ;;  %v2589_v16 = vsel %vm645_vm1, %v2587_v31, %v2588_v9 }
 0x2b8   : > { %v9836_v49 = vpack.c.bf16 %v2591_v3, %v2589_v16 }
 0x2ba   : > { %3579 = vmatmul.mubr.bf16.gmra.mrb[204].mxu0 %v9782_v48 }
 0x2bb   : > { %3586 = vmatprep.mubr.bf16.mxu0 %v9784_v34 }
 0x2be   : > { %3426 = vmatmul.mubr.bf16.gmra.mrb[176].mxu1 %v9766_v18 }
 0x2bf   : > { %3433 = vmatprep.mubr.bf16.mxu1 %v9790_v35 }
 0x2c2   : > { %3587 = vmatmul.mubr.bf16.gmra.mrb[208].mxu0 %v9796_v10 }
 0x2c3   : > { %3594 = vmatprep.mubr.bf16.mxu0 %v9798_v56 }
 0x2c6   : > { %3434 = vmatmul.mubr.bf16.gmra.mrb[180].mxu1 %v9784_v34 }
 0x2c7   : > { %3441 = vmatprep.mubr.bf16.mxu1 %v9804_v11 }
 0x2ca   : > { %3595 = vmatmul.mubr.bf16.gmra.mrb[212].mxu0 %v9810_v7 }
 0x2cb   : > { %3602 = vmatprep.mubr.bf16.mxu0 %v9812_v15 }
 0x2ce   : > { %3442 = vmatmul.mubr.bf16.gmra.mrb[184].mxu1 %v9798_v56 }
 0x2cf   : > { %3449 = vmatprep.mubr.bf16.mxu1 %v9818_v36 }
 0x2d2   : > { %3603 = vmatmul.mubr.bf16.gmra.mrb[216].mxu0 %v9824_v39 }
 0x2d3   : > { %3610 = vmatprep.mubr.bf16.mxu0 %v9828_v44 }
 0x2d6   : > { %3450 = vmatmul.mubr.bf16.gmra.mrb[188].mxu1 %v9812_v15 }
 0x2d7   : > { %3651 = vmatprep.mubr.bf16.mxu1 %v9505_v33  ;;  %v8109_v33 = vld [vmem:[#allocation6 + $0x458] sm:$0xff]  }
 0x2da   : > { %3611 = vmatmul.mubr.bf16.gmra.mrb[220].mxu0 %v9836_v49 }
 0x2db   : > { %3812 = vmatprep.mubr.bf16.mxu0 %v9484_v0 }
 0x2de   : > { %3652 = vmatmul.mubr.bf16.vlgmr.msra.gmra.mrb[192].mxu1 %v9475_v38  ;;  %v8110_v38 = vld [vmem:[#allocation6 + $0x460] sm:$0xff]  }
 0x2df   : > { %3659 = vmatprep.mubr.bf16.mxu1 %v9545_v29  ;;  %7818 = vmatpush3.bf16.msra.mxu1 %v9466_v20  ;;  %v8111_v20 = vld [vmem:[#allocation6 + $0x468] sm:$0xff]  }
 0x2e0   : > { %7819 = vmatprep.subr.bf16.mxu1 %v8107_v52 }
 0x2e2   : > { %3813 = vmatmul.mubr.bf16.vlgmr.msra.gmra.mrb[224].mxu0 %v9464_v46  ;;  %v8112_v46 = vld [vmem:[#allocation6 + $0x470] sm:$0xff]  }
 0x2e3   : > { %7820 = vmatpush3.bf16.msra.mxu1 %v8107_v52  ;;  %3820 = vmatprep.mubr.bf16.mxu0 %v9525_v12 }
 0x2e4   : > { %7821 = vmatprep.subr.bf16.mxu1 %v8108_v41 }
 0x2e6   : > { %3660 = vmatmul.mubr.bf16.gmra.mrb[196].mxu1 %v9484_v0  ;;  %v8113_v0 = vld [vmem:[#allocation6 + $0x478] sm:$0xff]  }
 0x2e7   : > { %3667 = vmatprep.mubr.bf16.mxu1 %v9585_v42  ;;  %7822 = vmatpush3.bf16.msra.mxu1 %v8108_v41 }
 0x2e8   : > { %7823 = vmatprep.subr.bf16.mxu1 %v8109_v33 }
 0x2ea   : > { %3821 = vmatmul.mubr.bf16.gmra.mrb[228].mxu0 %v9512_v57  ;;  %v9888_v57 = vld [vmem:[%s10604_s3 + $0x1] ss:$0 sm:$0xff] }
 0x2eb   : > { %7824 = vmatpush3.bf16.msra.mxu1 %v8109_v33  ;;  %3828 = vmatprep.mubr.bf16.mxu0 %v9565_v62  ;;  %v9917_v33 = vld [vmem:[#allocation2 + $0x198] sm:$0xff] }
 0x2ec   : > { %7825 = vmatprep.subr.bf16.mxu1 %v8110_v38 }
 0x2ee   : > { %3668 = vmatmul.mubr.bf16.gmra.mrb[200].mxu1 %v9525_v12 }
 0x2ef   : > { %3675 = vmatprep.mubr.bf16.mxu1 %v9619_v61  ;;  %7826 = vmatpush3.bf16.msra.mxu1 %v8110_v38  ;;  %v2644_v38 = vrot.slane %v9917_v33, 1 }
 0x2f0   : > { %7827 = vmatprep.subr.bf16.mxu1 %v8111_v20 }
 0x2f2   : > { %3829 = vmatmul.mubr.bf16.gmra.mrb[232].mxu0 %v9549_v43 }
 0x2f3   : > { %7828 = vmatpush3.bf16.msra.mxu1 %v8111_v20  ;;  %3836 = vmatprep.mubr.bf16.mxu0 %v9603_v27  ;;  %v2647_v20 = vrot.slane %v9913_v55, 1 }
 0x2f4   : > { %7829 = vmatprep.subr.bf16.mxu1 %v8112_v46 }
 0x2f6   : > { %3676 = vmatmul.mubr.bf16.gmra.mrb[204].mxu1 %v9565_v62  ;;  %v3332_v62 = vadd.f32 %v9771_v28, %v9888_v57 }
 0x2f7   : > { %3683 = vmatprep.mubr.bf16.mxu1 %v9647_v51  ;;  %7830 = vmatpush3.bf16.msra.mxu1 %v8112_v46 }
 0x2f8   : > { %7831 = vmatprep.subr.bf16.mxu1 %v8113_v0 }
 0x2fa   : > { %3837 = vmatmul.mubr.bf16.gmra.mrb[236].mxu0 %v9592_v17 }
 0x2fb   : > { %7832 = vmatpush3.bf16.msra.mxu1 %v8113_v0  ;;  %3844 = vmatprep.mubr.bf16.mxu0 %v9637_v30 }
 0x2fe   : > { %3684 = vmatmul.mubr.bf16.gmra.mrb[208].mxu1 %v9603_v27 }
 0x2ff   : > { %3691 = vmatprep.mubr.bf16.mxu1 %v9674_v14 }
 0x302   : > { %3845 = vmatmul.mubr.bf16.gmra.mrb[240].mxu0 %v9623_v32 }
 0x303   : > { %3852 = vmatprep.mubr.bf16.mxu0 %v9665_v25 }
 0x306   : > { %3692 = vmatmul.mubr.bf16.gmra.mrb[212].mxu1 %v9637_v30 }
 0x307   : > { %3699 = vmatprep.mubr.bf16.mxu1 %v9704_v58 }
 0x30a   : > { %3853 = vmatmul.mubr.bf16.gmra.mrb[244].mxu0 %v9654_v47  ;;  %v3335_v47 = vadd.f32 %v9776_v19, %v9888_v57 }
 0x30b   : > { %3860 = vmatprep.mubr.bf16.mxu0 %v9689_v40 }
 0x30e   : > { %3700 = vmatmul.mubr.bf16.gmra.mrb[216].mxu1 %v9665_v25 }
 0x30f   : > { %3707 = vmatprep.mubr.bf16.mxu1 %v9733_v26 }
 0x312   : > { %3861 = vmatmul.mubr.bf16.gmra.mrb[248].mxu0 %v9678_v13 }
 0x313   : > { %3868 = vmatprep.mubr.bf16.mxu0 %v9721_v1 }
 0x316   : > { %3708 = vmatmul.mubr.bf16.gmra.mrb[220].mxu1 %v9689_v40 }
 0x317   : > { %3715 = vmatprep.mubr.bf16.mxu1 %v9750_v4 }
 0x31a   : > { %3869 = vmatmul.mubr.bf16.gmra.mrb[252].mxu0 %v9711_v24 }
 0x31b   : > { %3876 = vmatprep.mubr.bf16.mxu0 %v9744_v53 }
 0x31e   : > { %3716 = vmatmul.mubr.bf16.gmra.mrb[224].mxu1 %v9721_v1 }
 0x31f   : > { %3723 = vmatprep.mubr.bf16.mxu1 %v9764_v50 }
 0x322   : > { %3877 = vmatmul.mubr.bf16.gmra.mrb[0].mxu0 %v9735_v21 }
 0x323   : > { %3884 = vmatprep.mubr.bf16.mxu0 %v9758_v2 }
 0x326   : > { %3724 = vmatmul.mubr.bf16.gmra.mrb[228].mxu1 %v9744_v53 }
 0x327   : > { %3731 = vmatprep.mubr.bf16.mxu1 %v9782_v48 }
 0x32a   : > { %3885 = vmatmul.mubr.bf16.gmra.mrb[4].mxu0 %v9752_v63 }
 0x32b   : > { %3892 = vmatprep.mubr.bf16.mxu0 %v9774_v54 }
 0x32e   : > { %3732 = vmatmul.mubr.bf16.gmra.mrb[232].mxu1 %v9758_v2 }
 0x32f   : > { %3739 = vmatprep.mubr.bf16.mxu1 %v9796_v10 }
 0x332   : > { %3893 = vmatmul.mubr.bf16.gmra.mrb[8].mxu0 %v9766_v18 }
 0x333   : > { %3900 = vmatprep.mubr.bf16.mxu0 %v9790_v35 }
 0x335   : > { %v7253_v12 = vpop.f32.mrb[160].mxu0 }
 0x336   : > { %3740 = vmatmul.mubr.bf16.gmra.mrb[236].mxu1 %v9774_v54  ;;  %v7254_v43 = vpop.f32.mrb[161].mxu0 }
 0x337   : > { %3747 = vmatprep.mubr.bf16.mxu1 %v9810_v7  ;;  %v7255_v17 = vadd.f32 %v7254_v43, %v7253_v12  ;;  %v7256_v27 = vpop.f32.mrb[162].mxu0 }
 0x338   : > { %v7257_v30 = vpop.f32.mrb[163].mxu0 }
 0x339   : > { %v7147_v32 = vpop.f32.mrb[132].mxu1  ;;  %v9896_v25 = vadd.f32 %v7255_v17, %v3332_v62  ;;  %v7258_v13 = vadd.f32 %v7257_v30, %v7256_v27 }
 0x33a   : > { %v7148_v40 = vpop.f32.mrb[133].mxu1  ;;  %3901 = vmatmul.mubr.bf16.gmra.mrb[12].mxu0 %v9784_v34 }
 0x33b   : > { %v7149_v24 = vadd.f32 %v7148_v40, %v7147_v32  ;;  %v7150_v1 = vpop.f32.mrb[134].mxu1  ;;  %v9899_v45 = vadd.f32 %v7258_v13, %v3335_v47  ;;  %3908 = vmatprep.mubr.bf16.mxu0 %v9804_v11  ;;  %v10649_v32 = vld [vmem:[#allocation12_spill] sm:$0xff]  ;;  %v2648_v47 = vsel %vm532_vm0, %v2644_v38, %v2647_v20 }
 0x33c   : > { %v7151_v21 = vpop.f32.mrb[135].mxu1 }
 0x33d   : > { %v7152_v53 = vadd.f32 %v7151_v21, %v7150_v1  ;;  %v7259_v63 = vpop.f32.mrb[164].mxu0  ;;  %v3340_v18 = vadd.f32 %v7149_v24, %v9888_v57  ;;  %v10650_v24 = vld [vmem:[#allocation13_spill] sm:$0xff] }
 0x33e   : > { %3748 = vmatmul.mubr.bf16.gmra.mrb[240].mxu1 %v9790_v35  ;;  %v7260_v2 = vpop.f32.mrb[165].mxu0 }
 0x33f   : > { %3755 = vmatprep.mubr.bf16.mxu1 %v9824_v39  ;;  %v7261_v28 = vadd.f32 %v7260_v2, %v7259_v63  ;;  %v7262_v54 = vpop.f32.mrb[166].mxu0  ;;  %v3343_v34 = vadd.f32 %v7152_v53, %v9888_v57  ;;  %v2710_v63 = vpack.c.bf16 %v2648_v47, %v2644_v38 }
 0x340   : > { %v7263_v5 = vpop.f32.mrb[167].mxu0 }
 0x341   : > { %v7153_v19 = vpop.f32.mrb[136].mxu1  ;;  %v9906_v23 = vadd.f32 %v7261_v28, %v3340_v18  ;;  %v7264_v60 = vadd.f32 %v7263_v5, %v7262_v54 }
 0x342   : > { %v7154_v37 = vpop.f32.mrb[137].mxu1  ;;  %3909 = vmatmul.mubr.bf16.gmra.mrb[16].mxu0 %v9798_v56 }
 0x343   : > { %v7155_v22 = vadd.f32 %v7154_v37, %v7153_v19  ;;  %v7156_v59 = vpop.f32.mrb[138].mxu1  ;;  %v9909_v35 = vadd.f32 %v7264_v60, %v3343_v34  ;;  %3916 = vmatprep.mubr.bf16.mxu0 %v9818_v36 }
 0x344   : > { %v7157_v8 = vpop.f32.mrb[139].mxu1 }
 0x345   : > { %v7158_v6 = vadd.f32 %v7157_v8, %v7156_v59  ;;  %v7265_v9 = vpop.f32.mrb[168].mxu0  ;;  %v3348_v16 = vadd.f32 %v7155_v22, %v9888_v57  ;;  %v2709_v8 = vpack.c.bf16 %v9917_v33, %v9917_v33 }
 0x346   : > { %3756 = vmatmul.mubr.bf16.gmra.mrb[244].mxu1 %v9804_v11  ;;  %v7266_v31 = vpop.f32.mrb[169].mxu0 }
 0x347   : > { %3763 = vmatprep.mubr.bf16.mxu1 %v9836_v49  ;;  %v7267_v3 = vadd.f32 %v7266_v31, %v7265_v9  ;;  %v7268_v52 = vpop.f32.mrb[170].mxu0  ;;  %v3351_v46 = vadd.f32 %v7158_v6, %v9888_v57 }
 0x348   : > { %v7269_v56 = vpop.f32.mrb[171].mxu0 }
 0x349   : > { %v7159_v41 = vpop.f32.mrb[140].mxu1  ;;  %v9922_v11 = vadd.f32 %v7267_v3, %v3348_v16  ;;  %v7270_v0 = vadd.f32 %v7269_v56, %v7268_v52 }
 0x34a   : > { %v7160_v12 = vpop.f32.mrb[141].mxu1  ;;  %3917 = vmatmul.mubr.bf16.gmra.mrb[20].mxu0 %v9812_v15 }
 0x34b   : > { %v7161_v43 = vadd.f32 %v7160_v12, %v7159_v41  ;;  %v7162_v62 = vpop.f32.mrb[142].mxu1  ;;  %v9925_v17 = vadd.f32 %v7270_v0, %v3351_v46  ;;  %3924 = vmatprep.mubr.bf16.mxu0 %v10649_v32 }
 0x34c   : > { %v7163_v27 = vpop.f32.mrb[143].mxu1 }
 0x34d   : > { %v7164_v30 = vadd.f32 %v7163_v27, %v7162_v62  ;;  %v7271_v13 = vpop.f32.mrb[172].mxu0  ;;  %v3356_v1 = vadd.f32 %v7161_v43, %v9888_v57 }
 0x34e   : > { %3764 = vmatmul.mubr.bf16.gmra.mrb[248].mxu1 %v9818_v36  ;;  %v7272_v40 = vpop.f32.mrb[173].mxu0 }
 0x34f   : > { %3771 = vmatprep.mubr.bf16.mxu1 %v10650_v24  ;;  %v7273_v21 = vadd.f32 %v7272_v40, %v7271_v13  ;;  %v7274_v53 = vpop.f32.mrb[174].mxu0  ;;  %v3359_v18 = vadd.f32 %v7164_v30, %v9888_v57 }
 0x350   : > { %v7275_v2 = vpop.f32.mrb[175].mxu0 }
 0x351   : > { %v7165_v15 = vpop.f32.mrb[144].mxu1  ;;  %v9933_v28 = vadd.f32 %v7273_v21, %v3356_v1  ;;  %v7276_v54 = vadd.f32 %v7275_v2, %v7274_v53 }
 0x352   : > { %v7166_v19 = vpop.f32.mrb[145].mxu1  ;;  %3925 = vmatmul.mubr.bf16.gmra.mrb[24].mxu0 %v9828_v44 }
 0x353   : > { %v7167_v5 = vadd.f32 %v7166_v19, %v7165_v15  ;;  %v7168_v34 = vpop.f32.mrb[146].mxu1  ;;  %v9936_v36 = vadd.f32 %v7276_v54, %v3359_v18  ;;  %3932 = vmatprep.mubr.bf16.mxu0 %v2710_v63 }
 0x354   : > { %v7169_v60 = vpop.f32.mrb[147].mxu1 }
 0x355   : > { %v7170_v37 = vadd.f32 %v7169_v60, %v7168_v34  ;;  %v7277_v22 = vpop.f32.mrb[176].mxu0  ;;  %v3364_v6 = vadd.f32 %v7167_v5, %v9888_v57 }
 0x356   : > { %3772 = vmatmul.mubr.bf16.gmra.mrb[252].mxu1 %v10649_v32  ;;  %v7278_v59 = vpop.f32.mrb[177].mxu0 }
 0x357   : > { %7833 = vmatprep.mubr.bf16.mxu1 %v9545_v29  ;;  %v7279_v9 = vadd.f32 %v7278_v59, %v7277_v22  ;;  %v7280_v31 = vpop.f32.mrb[178].mxu0  ;;  %v3367_v3 = vadd.f32 %v7170_v37, %v9888_v57 }
 0x358   : > { %v7281_v44 = vpop.f32.mrb[179].mxu0 }
 0x359   : > { %v7171_v16 = vpop.f32.mrb[148].mxu1  ;;  %v9944_v52 = vadd.f32 %v7279_v9, %v3364_v6  ;;  %v7282_v41 = vadd.f32 %v7281_v44, %v7280_v31 }
 0x35a   : > { %v7172_v56 = vpop.f32.mrb[149].mxu1  ;;  %3933 = vmatmul.mubr.bf16.gmra.mrb[28].mxu0 %v2709_v8 }
 0x35b   : > { %v7173_v38 = vadd.f32 %v7172_v56, %v7171_v16  ;;  %v7174_v20 = vpop.f32.mrb[150].mxu1  ;;  %v9946_v46 = vadd.f32 %v7282_v41, %v3367_v3 }
 0x35c   : > { %v7175_v29 = vpop.f32.mrb[151].mxu1 }
 0x35d   : > { %v7176_v0 = vadd.f32 %v7175_v29, %v7174_v20  ;;  %v7283_v12 = vpop.f32.mrb[180].mxu0  ;;  %v3372_v62 = vadd.f32 %v7173_v38, %v9888_v57 }
 0x35e   : > { %7834 = vmatmul.mubr.bf16.vlgmr.msra.gmra.mrb[0].mxu1 %v9585_v42  ;;  %v7284_v43 = vpop.f32.mrb[181].mxu0 }
 0x35f   : > { %7837 = vmatprep.mubr.bf16.mxu1 %v9619_v61  ;;  %v7285_v27 = vadd.f32 %v7284_v43, %v7283_v12  ;;  %v7286_v32 = vpop.f32.mrb[182].mxu0  ;;  %v3375_v13 = vadd.f32 %v7176_v0, %v9888_v57 }
 0x360   : > { %v7287_v47 = vpop.f32.mrb[183].mxu0 }
 0x361   : > { %v7177_v30 = vpop.f32.mrb[152].mxu1  ;;  %v9952_v40 = vadd.f32 %v7285_v27, %v3372_v62  ;;  %v7288_v1 = vadd.f32 %v7287_v47, %v7286_v32 }
 0x362   : > { %v7178_v21 = vpop.f32.mrb[153].mxu1 }
 0x363   : > { %v7179_v53 = vadd.f32 %v7178_v21, %v7177_v30  ;;  %v7180_v63 = vpop.f32.mrb[154].mxu1  ;;  %v9954_v15 = vadd.f32 %v7288_v1, %v3375_v13  ;;  %v8114_v13 = vld [vmem:[#allocation6 + $0x4c0] sm:$0xff]  }
 0x364   : > { %v7181_v42 = vpop.f32.mrb[155].mxu1  ;;  %v8115_v1 = vld [vmem:[#allocation6 + $0x480] sm:$0xff]   ;;  %7597 = vmatprep.subr.bf16.mxu0 %v8114_v13 }
 0x365   : > { %v7182_v2 = vadd.f32 %v7181_v42, %v7180_v63  ;;  %v7289_v18 = vpop.f32.mrb[184].mxu0  ;;  %v3380_v54 = vadd.f32 %v7179_v53, %v9888_v57  ;;  %7598 = vmatpush3.bf16.msra.mxu0 %v8115_v1 }
 0x366   : > { %7838 = vmatmul.mubr.bf16.gmra.mrb[4].mxu1 %v9647_v51  ;;  %v7290_v61 = vpop.f32.mrb[185].mxu0 }
 0x367   : > { %7841 = vmatprep.mubr.bf16.mxu1 %v9674_v14  ;;  %v7291_v19 = vadd.f32 %v7290_v61, %v7289_v18  ;;  %v7292_v5 = vpop.f32.mrb[186].mxu0  ;;  %v3383_v37 = vadd.f32 %v7182_v2, %v9888_v57 }
 0x368   : > { %v7293_v60 = vpop.f32.mrb[187].mxu0 }
 0x369   : > { %v7183_v34 = vpop.f32.mrb[156].mxu1  ;;  %v9960_v22 = vadd.f32 %v7291_v19, %v3380_v54  ;;  %v7294_v59 = vadd.f32 %v7293_v60, %v7292_v5 }
 0x36a   : > { %v7184_v8 = vpop.f32.mrb[157].mxu1 }
 0x36b   : > { %v7185_v6 = vadd.f32 %v7184_v8, %v7183_v34  ;;  %v7186_v9 = vpop.f32.mrb[158].mxu1  ;;  %v9962_v31 = vadd.f32 %v7294_v59, %v3383_v37 }
 0x36c   : > { %v7187_v51 = vpop.f32.mrb[159].mxu1 }
 0x36d   : > { %v7188_v16 = vadd.f32 %v7187_v51, %v7186_v9  ;;  %v7295_v44 = vpop.f32.mrb[188].mxu0  ;;  %v3388_v3 = vadd.f32 %v7185_v6, %v9888_v57 }
 0x36e   : > { %7842 = vmatmul.mubr.bf16.gmra.mrb[8].mxu1 %v9704_v58  ;;  %v7296_v14 = vpop.f32.mrb[189].mxu0 }
 0x36f   : > { %7845 = vmatprep.mubr.bf16.mxu1 %v9733_v26  ;;  %v7297_v41 = vadd.f32 %v7296_v14, %v7295_v44  ;;  %v7298_v56 = vpop.f32.mrb[190].mxu0  ;;  %v3391_v29 = vadd.f32 %v7188_v16, %v9888_v57 }
 0x370   : > { %v7299_v20 = vpop.f32.mrb[191].mxu0 }
 0x371   : > { %v7189_v38 = vpop.f32.mrb[160].mxu1  ;;  %v9968_v0 = vadd.f32 %v7297_v41, %v3388_v3  ;;  %v7300_v12 = vadd.f32 %v7299_v20, %v7298_v56 }
 0x372   : > { %v7190_v43 = vpop.f32.mrb[161].mxu1 }
 0x373   : > { %v7191_v62 = vadd.f32 %v7190_v43, %v7189_v38  ;;  %v7192_v27 = vpop.f32.mrb[162].mxu1  ;;  %v9970_v32 = vadd.f32 %v7300_v12, %v3391_v29  ;;  %v8116_v43 = vld [vmem:[#allocation6 + $0x4c8] sm:$0xff]  }
 0x374   : > { %v7193_v58 = vpop.f32.mrb[163].mxu1  ;;  %7599 = vmatprep.subr.bf16.mxu0 %v8116_v43 }
 0x375   : > { %v7194_v30 = vadd.f32 %v7193_v58, %v7192_v27  ;;  %v7301_v47 = vpop.f32.mrb[192].mxu0  ;;  %v3396_v21 = vadd.f32 %v7191_v62, %v9888_v57  ;;  %v8117_v62 = vld [vmem:[#allocation6 + $0x488] sm:$0xff]  }
 0x376   : > { %7846 = vmatmul.mubr.bf16.gmra.mrb[12].mxu1 %v9750_v4  ;;  %v7302_v26 = vpop.f32.mrb[193].mxu0  ;;  %7600 = vmatpush3.bf16.msra.mxu0 %v8117_v62 }
 0x377   : > { %7849 = vmatprep.mubr.bf16.mxu1 %v9764_v50  ;;  %v7303_v53 = vadd.f32 %v7302_v26, %v7301_v47  ;;  %v7304_v63 = vpop.f32.mrb[194].mxu0  ;;  %v3399_v18 = vadd.f32 %v7194_v30, %v9888_v57 }
 0x378   : > { %v7305_v2 = vpop.f32.mrb[195].mxu0 }
 0x379   : > { %v7195_v42 = vpop.f32.mrb[164].mxu1  ;;  %v9976_v61 = vadd.f32 %v7303_v53, %v3396_v21  ;;  %v7306_v54 = vadd.f32 %v7305_v2, %v7304_v63 }
 0x37a   : > { %v7196_v19 = vpop.f32.mrb[165].mxu1 }
 0x37b   : > { %v7197_v4 = vadd.f32 %v7196_v19, %v7195_v42  ;;  %v7198_v5 = vpop.f32.mrb[166].mxu1  ;;  %v9978_v34 = vadd.f32 %v7306_v54, %v3399_v18 }
 0x37c   : > { %v7199_v50 = vpop.f32.mrb[167].mxu1 }
 0x37d   : > { %v7200_v60 = vadd.f32 %v7199_v50, %v7198_v5  ;;  %v7307_v37 = vpop.f32.mrb[196].mxu0  ;;  %v3404_v8 = vadd.f32 %v7197_v4, %v9888_v57 }
 0x37e   : > { %7850 = vmatmul.mubr.bf16.gmra.mrb[16].mxu1 %v9782_v48  ;;  %v7308_v59 = vpop.f32.mrb[197].mxu0 }
 0x37f   : > { %7853 = vmatprep.mubr.bf16.mxu1 %v9796_v10  ;;  %v7309_v6 = vadd.f32 %v7308_v59, %v7307_v37  ;;  %v7310_v9 = vpop.f32.mrb[198].mxu0  ;;  %v3407_v44 = vadd.f32 %v7200_v60, %v9888_v57 }
 0x380   : > { %v7311_v16 = vpop.f32.mrb[199].mxu0 }
 0x381   : > { %v7201_v51 = vpop.f32.mrb[168].mxu1  ;;  %v9984_v14 = vadd.f32 %v7309_v6, %v3404_v8  ;;  %v7312_v3 = vadd.f32 %v7311_v16, %v7310_v9 }
 0x382   : > { %v7202_v41 = vpop.f32.mrb[169].mxu1 }
 0x383   : > { %v7203_v56 = vadd.f32 %v7202_v41, %v7201_v51  ;;  %v7204_v38 = vpop.f32.mrb[170].mxu1  ;;  %v9986_v20 = vadd.f32 %v7312_v3, %v3407_v44 }
 0x384   : > { %v7205_v48 = vpop.f32.mrb[171].mxu1 }
 0x385   : > { %v7206_v29 = vadd.f32 %v7205_v48, %v7204_v38  ;;  %v7313_v12 = vpop.f32.mrb[200].mxu0  ;;  %v3412_v27 = vadd.f32 %v7203_v56, %v9888_v57  ;;  %v8118_v38 = vld [vmem:[#allocation6 + $0x4d0] sm:$0xff]  }
 0x386   : > { %7854 = vmatmul.mubr.bf16.gmra.mrb[20].mxu1 %v9810_v7  ;;  %v7314_v10 = vpop.f32.mrb[201].mxu0  ;;  %v2651_v7 = vrot.slane %v9917_v33, 2  ;;  %v8119_v48 = vld [vmem:[#allocation6 + $0x490] sm:$0xff]   ;;  %7601 = vmatprep.subr.bf16.mxu0 %v8118_v38 }
 0x387   : > { %7857 = vmatprep.mubr.bf16.mxu1 %v9824_v39  ;;  %v7315_v58 = vadd.f32 %v7314_v10, %v7313_v12  ;;  %v7316_v30 = vpop.f32.mrb[202].mxu0  ;;  %v3415_v13 = vadd.f32 %v7206_v29, %v9888_v57  ;;  %v2654_v39 = vrot.slane %v9913_v55, 2  ;;  %7602 = vmatpush3.bf16.msra.mxu0 %v8119_v48 }
 0x388   : > { %v7317_v26 = vpop.f32.mrb[203].mxu0 }
 0x389   : > { %v7207_v47 = vpop.f32.mrb[172].mxu1  ;;  %v9992_v1 = vadd.f32 %v7315_v58, %v3412_v27  ;;  %v7318_v21 = vadd.f32 %v7317_v26, %v7316_v30  ;;  %v2655_v4 = vsel %vm645_vm1, %v2651_v7, %v2654_v39 }
 0x38a   : > { %v7208_v53 = vpop.f32.mrb[173].mxu1  ;;  %v2711_v59 = vpack.c.bf16 %v2655_v4, %v2651_v7 }
 0x38b   : > { %v7209_v63 = vadd.f32 %v7208_v53, %v7207_v47  ;;  %v7210_v42 = vpop.f32.mrb[174].mxu1  ;;  %v9996_v2 = vadd.f32 %v7318_v21, %v3415_v13 }
 0x38c   : > { %v7211_v18 = vpop.f32.mrb[175].mxu1 }
 0x38d   : > { %v7212_v54 = vadd.f32 %v7211_v18, %v7210_v42  ;;  %v7319_v19 = vpop.f32.mrb[204].mxu0  ;;  %v3420_v50 = vadd.f32 %v7209_v63, %v9888_v57 }
 0x38e   : > { %7858 = vmatmul.mubr.bf16.gmra.mrb[24].mxu1 %v9836_v49  ;;  %v7320_v5 = vpop.f32.mrb[205].mxu0 }
 0x38f   : > { %7861 = vmatprep.mubr.bf16.mxu1 %v10650_v24  ;;  %v7321_v60 = vadd.f32 %v7320_v5, %v7319_v19  ;;  %v7322_v33 = vpop.f32.mrb[206].mxu0  ;;  %v3423_v8 = vadd.f32 %v7212_v54, %v9888_v57 }
 0x390   : > { %v7323_v55 = vpop.f32.mrb[207].mxu0 }
 0x391   : > { %v7213_v37 = vpop.f32.mrb[176].mxu1  ;;  %v10003_v6 = vadd.f32 %v7321_v60, %v3420_v50  ;;  %v7324_v9 = vadd.f32 %v7323_v55, %v7322_v33 }
 0x392   : > { %v7214_v51 = vpop.f32.mrb[177].mxu1 }
 0x393   : > { %v7215_v16 = vadd.f32 %v7214_v51, %v7213_v37  ;;  %v7216_v49 = vpop.f32.mrb[178].mxu1  ;;  %v10005_v44 = vadd.f32 %v7324_v9, %v3423_v8 }
 0x394   : > { %v7217_v3 = vpop.f32.mrb[179].mxu1 }
 0x395   : > { %v7218_v41 = vadd.f32 %v7217_v3, %v7216_v49  ;;  %v7325_v24 = vpop.f32.mrb[208].mxu0  ;;  %v3428_v29 = vadd.f32 %v7215_v16, %v9888_v57  ;;  %v8120_v49 = vld [vmem:[#allocation6 + $0x4d8] sm:$0xff]  }
 0x396   : > { %7862 = vmatmul.mubr.bf16.gmra.mrb[28].mxu1 %v2711_v59  ;;  %v7326_v56 = vpop.f32.mrb[209].mxu0  ;;  %v8121_v3 = vld [vmem:[#allocation6 + $0x498] sm:$0xff]   ;;  %7603 = vmatprep.subr.bf16.mxu0 %v8120_v49 }
 0x397   : > { %v7327_v12 = vadd.f32 %v7326_v56, %v7325_v24  ;;  %v7328_v10 = vpop.f32.mrb[210].mxu0  ;;  %v3431_v27 = vadd.f32 %v7218_v41, %v9888_v57  ;;  %7604 = vmatpush3.bf16.msra.mxu0 %v8121_v3 }
 0x398   : > { %v7329_v62 = vpop.f32.mrb[211].mxu0 }
 0x399   : > { %v7219_v43 = vpop.f32.mrb[180].mxu1  ;;  %v10009_v58 = vadd.f32 %v7327_v12, %v3428_v29  ;;  %v7330_v30 = vadd.f32 %v7329_v62, %v7328_v10 }
 0x39a   : > { %v7220_v47 = vpop.f32.mrb[181].mxu1 }
 0x39b   : > { %v7221_v26 = vadd.f32 %v7220_v47, %v7219_v43  ;;  %v7222_v13 = vpop.f32.mrb[182].mxu1  ;;  %v10011_v21 = vadd.f32 %v7330_v30, %v3431_v27 }
 0x39c   : > { %v7223_v53 = vpop.f32.mrb[183].mxu1 }
 0x39d   : > { %v7224_v7 = vadd.f32 %v7223_v53, %v7222_v13  ;;  %v7331_v39 = vpop.f32.mrb[212].mxu0  ;;  %v3436_v42 = vadd.f32 %v7221_v26, %v9888_v57 }
 0x39e   : > { %v7332_v63 = vpop.f32.mrb[213].mxu0 }
 0x39f   : > { %v7333_v18 = vadd.f32 %v7332_v63, %v7331_v39  ;;  %v7334_v54 = vpop.f32.mrb[214].mxu0  ;;  %v3439_v5 = vadd.f32 %v7224_v7, %v9888_v57 }
 0x3a0   : > { %v7335_v4 = vpop.f32.mrb[215].mxu0 }
 0x3a1   : > { %v7225_v19 = vpop.f32.mrb[184].mxu1  ;;  %v10015_v50 = vadd.f32 %v7333_v18, %v3436_v42  ;;  %v7336_v60 = vadd.f32 %v7335_v4, %v7334_v54 }
 0x3a2   : > { %v7226_v33 = vpop.f32.mrb[185].mxu1 }
 0x3a3   : > { %v7227_v37 = vadd.f32 %v7226_v33, %v7225_v19  ;;  %v7228_v55 = vpop.f32.mrb[186].mxu1  ;;  %v10017_v59 = vadd.f32 %v7336_v60, %v3439_v5 }
 0x3a4   : > { %v7229_v8 = vpop.f32.mrb[187].mxu1 }
 0x3a5   : > { %v7230_v9 = vadd.f32 %v7229_v8, %v7228_v55  ;;  %v7337_v51 = vpop.f32.mrb[216].mxu0  ;;  %v3444_v41 = vadd.f32 %v7227_v37, %v9888_v57 }
 0x3a6   : > { %v7338_v16 = vpop.f32.mrb[217].mxu0 }
 0x3a7   : > { %v7339_v24 = vadd.f32 %v7338_v16, %v7337_v51  ;;  %v7340_v56 = vpop.f32.mrb[218].mxu0  ;;  %v3447_v29 = vadd.f32 %v7230_v9, %v9888_v57 }
 0x3a8   : > { %v7341_v48 = vpop.f32.mrb[219].mxu0 }
 0x3a9   : > { %v7231_v38 = vpop.f32.mrb[188].mxu1  ;;  %v10021_v12 = vadd.f32 %v7339_v24, %v3444_v41  ;;  %v7342_v10 = vadd.f32 %v7341_v48, %v7340_v56 }
 0x3aa   : > { %v7232_v43 = vpop.f32.mrb[189].mxu1 }
 0x3ab   : > { %v7233_v62 = vadd.f32 %v7232_v43, %v7231_v38  ;;  %v7234_v27 = vpop.f32.mrb[190].mxu1  ;;  %v10023_v30 = vadd.f32 %v7342_v10, %v3447_v29 }
 0x3ac   : > { %v7235_v47 = vpop.f32.mrb[191].mxu1 }
 0x3ad   : > { %v7236_v26 = vadd.f32 %v7235_v47, %v7234_v27  ;;  %v7343_v13 = vpop.f32.mrb[220].mxu0  ;;  %v3452_v7 = vadd.f32 %v7233_v62, %v9888_v57 }
 0x3ae   : > { %v7344_v53 = vpop.f32.mrb[221].mxu0 }
 0x3af   : > { %v7345_v39 = vadd.f32 %v7344_v53, %v7343_v13  ;;  %v7346_v63 = vpop.f32.mrb[222].mxu0  ;;  %v3455_v54 = vadd.f32 %v7236_v26, %v9888_v57 }
 0x3b0   : > { %v7347_v42 = vpop.f32.mrb[223].mxu0 }
 0x3b1   : > { %v7365_v18 = vpop.f32.mrb[192].mxu1  ;;  %v10027_v19 = vadd.f32 %v7345_v39, %v3452_v7  ;;  %v7348_v4 = vadd.f32 %v7347_v42, %v7346_v63 }
 0x3b2   : > { %v7366_v5 = vpop.f32.mrb[193].mxu1 }
 0x3b3   : > { %v7367_v60 = vadd.f32 %v7366_v5, %v7365_v18  ;;  %v7368_v33 = vpop.f32.mrb[194].mxu1  ;;  %v10029_v37 = vadd.f32 %v7348_v4, %v3455_v54 }
 0x3b4   : > { %v7369_v55 = vpop.f32.mrb[195].mxu1 }
 0x3b5   : > { %v3654_v8 = vadd.f32 %v7367_v60, %v9896_v25  ;;  %v7370_v9 = vadd.f32 %v7369_v55, %v7368_v33  ;;  %v7477_v51 = vpop.f32.mrb[224].mxu0  ;;  %v8123_v55 = vld [vmem:[#allocation6 + $0x540] sm:$0xff]  }
 0x3b6   : > { %v7478_v49 = vpop.f32.mrb[225].mxu0  ;;  %7637 = vmatprep.subr.bf16.mxu1 %v8123_v55 }
 0x3b7   : > { %v3657_v16 = vadd.f32 %v7370_v9, %v9899_v45  ;;  %v7479_v3 = vadd.f32 %v7478_v49, %v7477_v51  ;;  %v7480_v41 = vpop.f32.mrb[226].mxu0 }
 0x3b8   : > { %v7481_v57 = vpop.f32.mrb[227].mxu0 }
 0x3b9   : > { %v7371_v24 = vpop.f32.mrb[196].mxu1  ;;  %v7482_v56 = vadd.f32 %v7481_v57, %v7480_v41  ;;  %v10033_v48 = vadd.f32 %v7479_v3, %v3654_v8 }
 0x3ba   : > { %v7372_v38 = vpop.f32.mrb[197].mxu1 }
 0x3bb   : > { %v7373_v29 = vadd.f32 %v7372_v38, %v7371_v24  ;;  %v7374_v10 = vpop.f32.mrb[198].mxu1  ;;  %v10035_v62 = vadd.f32 %v7482_v56, %v3657_v16  ;;  %v8126_v24 = vld [vmem:[#allocation6 + $0x548] sm:$0xff]   ;;  %v8122_v38 = vld [vmem:[#allocation6 + $0x4e0] sm:$0xff]  }
 0x3bc   : > { %v7375_v43 = vpop.f32.mrb[199].mxu1  ;;  %7605 = vmatprep.subr.bf16.mxu0 %v8122_v38 }
 0x3bd   : > { %v3662_v25 = vadd.f32 %v7373_v29, %v9906_v23  ;;  %v7376_v27 = vadd.f32 %v7375_v43, %v7374_v10  ;;  %v7483_v47 = vpop.f32.mrb[228].mxu0  ;;  %v8124_v29 = vld [vmem:[#allocation6 + $0x4a0] sm:$0xff]  }
 0x3be   : > { %v7484_v26 = vpop.f32.mrb[229].mxu0  ;;  %7606 = vmatpush3.bf16.msra.mxu0 %v8124_v29 }
 0x3bf   : > { %v3665_v45 = vadd.f32 %v7376_v27, %v9909_v35  ;;  %v7485_v13 = vadd.f32 %v7484_v26, %v7483_v47  ;;  %v7486_v53 = vpop.f32.mrb[230].mxu0  ;;  %v8125_v35 = vld [vmem:[#allocation6 + $0x500] sm:$0xff]  }
 0x3c0   : > { %v7487_v39 = vpop.f32.mrb[231].mxu0  ;;  %7638 = vmatpush3.bf16.msra.mxu1 %v8125_v35 }
 0x3c1   : > { %v7377_v7 = vpop.f32.mrb[200].mxu1  ;;  %v7488_v63 = vadd.f32 %v7487_v39, %v7486_v53  ;;  %v10039_v18 = vadd.f32 %v7485_v13, %v3662_v25  ;;  %7639 = vmatprep.subr.bf16.mxu1 %v8126_v24 }
 0x3c2   : > { %v7378_v42 = vpop.f32.mrb[201].mxu1 }
 0x3c3   : > { %v7379_v54 = vadd.f32 %v7378_v42, %v7377_v7  ;;  %v7380_v4 = vpop.f32.mrb[202].mxu1  ;;  %v10041_v60 = vadd.f32 %v7488_v63, %v3665_v45  ;;  %v8129_v7 = vld [vmem:[#allocation6 + $0x550] sm:$0xff]  }
 0x3c4   : > { %v7381_v5 = vpop.f32.mrb[203].mxu1  ;;  %v8131_v42 = vld [vmem:[#allocation6 + $0x510] sm:$0xff]  }
 0x3c5   : > { %v3670_v23 = vadd.f32 %v7379_v54, %v9922_v11  ;;  %v7382_v33 = vadd.f32 %v7381_v5, %v7380_v4  ;;  %v7489_v8 = vpop.f32.mrb[232].mxu0  ;;  %v8127_v11 = vld [vmem:[#allocation6 + $0x508] sm:$0xff]  }
 0x3c6   : > { %v7490_v51 = vpop.f32.mrb[233].mxu0  ;;  %7640 = vmatpush3.bf16.msra.mxu1 %v8127_v11 }
 0x3c7   : > { %v3673_v9 = vadd.f32 %v7382_v33, %v9925_v17  ;;  %v7491_v16 = vadd.f32 %v7490_v51, %v7489_v8  ;;  %v7492_v49 = vpop.f32.mrb[234].mxu0  ;;  %7641 = vmatprep.subr.bf16.mxu1 %v8129_v7  ;;  %v8132_v8 = vld [vmem:[#allocation6 + $0x558] sm:$0xff]  }
 0x3c8   : > { %v7493_v41 = vpop.f32.mrb[235].mxu0 }
 0x3c9   : > { %v7383_v3 = vpop.f32.mrb[204].mxu1  ;;  %v7494_v57 = vadd.f32 %v7493_v41, %v7492_v49  ;;  %v10045_v10 = vadd.f32 %v7491_v16, %v3670_v23  ;;  %v8128_v49 = vld [vmem:[#allocation6 + $0x4e8] sm:$0xff]  }
 0x3ca   : > { %v7384_v56 = vpop.f32.mrb[205].mxu1  ;;  %7642 = vmatpush3.bf16.msra.mxu1 %v8131_v42  ;;  %7607 = vmatprep.subr.bf16.mxu0 %v8128_v49 }
 0x3cb   : > { %v7385_v43 = vadd.f32 %v7384_v56, %v7383_v3  ;;  %v7386_v25 = vpop.f32.mrb[206].mxu1  ;;  %v10047_v17 = vadd.f32 %v7494_v57, %v3673_v9  ;;  %7643 = vmatprep.subr.bf16.mxu1 %v8132_v8  ;;  %v8133_v3 = vld [vmem:[#allocation6 + $0x518] sm:$0xff]   ;;  %v8130_v57 = vld [vmem:[#allocation6 + $0x4a8] sm:$0xff]  }
 0x3cc   : > { %v7387_v27 = vpop.f32.mrb[207].mxu1  ;;  %7608 = vmatpush3.bf16.msra.mxu0 %v8130_v57  ;;  %v8138_v8 = vld [vmem:[#allocation6 + $0x568] sm:$0xff]  }
 0x3cd   : > { %v3678_v47 = vadd.f32 %v7385_v43, %v9933_v28  ;;  %v7388_v45 = vadd.f32 %v7387_v27, %v7386_v25  ;;  %v7495_v26 = vpop.f32.mrb[236].mxu0 }
 0x3ce   : > { %v7496_v53 = vpop.f32.mrb[237].mxu0  ;;  %7644 = vmatpush3.bf16.msra.mxu1 %v8133_v3 }
 0x3cf   : > { %v3681_v13 = vadd.f32 %v7388_v45, %v9936_v36  ;;  %v7497_v39 = vadd.f32 %v7496_v53, %v7495_v26  ;;  %v7498_v63 = vpop.f32.mrb[238].mxu0  ;;  %v8134_v53 = vld [vmem:[#allocation6 + $0x560] sm:$0xff]  }
 0x3d0   : > { %v7499_v4 = vpop.f32.mrb[239].mxu0  ;;  %7645 = vmatprep.subr.bf16.mxu1 %v8134_v53  ;;  %v8140_v53 = vld [vmem:[#allocation6 + $0x4f8] sm:$0xff]  }
 0x3d1   : > { %v7389_v54 = vpop.f32.mrb[208].mxu1  ;;  %v7500_v5 = vadd.f32 %v7499_v4, %v7498_v63  ;;  %v10051_v33 = vadd.f32 %v7497_v39, %v3678_v47  ;;  %v8135_v39 = vld [vmem:[#allocation6 + $0x520] sm:$0xff]  }
 0x3d2   : > { %v7390_v23 = vpop.f32.mrb[209].mxu1  ;;  %7646 = vmatpush3.bf16.msra.mxu1 %v8135_v39 }
 0x3d3   : > { %v7391_v55 = vadd.f32 %v7390_v23, %v7389_v54  ;;  %v7392_v28 = vpop.f32.mrb[210].mxu1  ;;  %v10053_v9 = vadd.f32 %v7500_v5, %v3681_v13  ;;  %v8136_v5 = vld [vmem:[#allocation6 + $0x4f0] sm:$0xff]   ;;  %7647 = vmatprep.subr.bf16.mxu1 %v8138_v8 }
 0x3d4   : > { %v7393_v35 = vpop.f32.mrb[211].mxu1  ;;  %7609 = vmatprep.subr.bf16.mxu0 %v8136_v5 }
 0x3d5   : > { %v3686_v36 = vadd.f32 %v7391_v55, %v9944_v52  ;;  %v7394_v51 = vadd.f32 %v7393_v35, %v7392_v28  ;;  %v7501_v16 = vpop.f32.mrb[240].mxu0  ;;  %v8137_v28 = vld [vmem:[#allocation6 + $0x4b0] sm:$0xff]  }
 0x3d6   : > { %v7502_v24 = vpop.f32.mrb[241].mxu0  ;;  %7610 = vmatpush3.bf16.msra.mxu0 %v8137_v28 }
 0x3d7   : > { %v3689_v41 = vadd.f32 %v7394_v51, %v9946_v46  ;;  %v7503_v56 = vadd.f32 %v7502_v24, %v7501_v16  ;;  %v7504_v38 = vpop.f32.mrb[242].mxu0  ;;  %7611 = vmatprep.subr.bf16.mxu0 %v8140_v53 }
 0x3d8   : > { %v7505_v11 = vpop.f32.mrb[243].mxu0 }
 0x3d9   : > { %v7395_v29 = vpop.f32.mrb[212].mxu1  ;;  %v7506_v43 = vadd.f32 %v7505_v11, %v7504_v38  ;;  %v10057_v27 = vadd.f32 %v7503_v56, %v3686_v36 }
 0x3da   : > { %v7396_v25 = vpop.f32.mrb[213].mxu1 }
 0x3db   : > { %v7397_v52 = vadd.f32 %v7396_v25, %v7395_v29  ;;  %v7398_v47 = vpop.f32.mrb[214].mxu1  ;;  %v10059_v26 = vadd.f32 %v7506_v43, %v3689_v41 }
 0x3dc   : > { %v7399_v45 = vpop.f32.mrb[215].mxu1 }
 0x3dd   : > { %v3694_v46 = vadd.f32 %v7397_v52, %v9952_v40  ;;  %v7400_v13 = vadd.f32 %v7399_v45, %v7398_v47  ;;  %v7507_v7 = vpop.f32.mrb[244].mxu0  ;;  %v8139_v40 = vld [vmem:[#allocation6 + $0x528] sm:$0xff]  }
 0x3de   : > { %v7508_v42 = vpop.f32.mrb[245].mxu0  ;;  %7648 = vmatpush3.bf16.msra.mxu1 %v8139_v40 }
 0x3df   : > { %v3697_v63 = vadd.f32 %v7400_v13, %v9954_v15  ;;  %v7509_v54 = vadd.f32 %v7508_v42, %v7507_v7  ;;  %v7510_v4 = vpop.f32.mrb[246].mxu0 }
 0x3e0   : > { %v7511_v55 = vpop.f32.mrb[247].mxu0 }
 0x3e1   : > { %v7401_v23 = vpop.f32.mrb[216].mxu1  ;;  %v7512_v35 = vadd.f32 %v7511_v55, %v7510_v4  ;;  %v10063_v51 = vadd.f32 %v7509_v54, %v3694_v46  ;;  %v8143_v54 = vld [vmem:[#allocation6 + $0x530] sm:$0xff]  }
 0x3e2   : > { %v7402_v36 = vpop.f32.mrb[217].mxu1 }
 0x3e3   : > { %v7403_v16 = vadd.f32 %v7402_v36, %v7401_v23  ;;  %v7404_v49 = vpop.f32.mrb[218].mxu1  ;;  %v10065_v3 = vadd.f32 %v7512_v35, %v3697_v63  ;;  %v8142_v63 = vld [vmem:[#allocation6 + $0x570] sm:$0xff]  }
 0x3e4   : > { %v7405_v15 = vpop.f32.mrb[219].mxu1  ;;  %7649 = vmatprep.subr.bf16.mxu1 %v8142_v63 }
 0x3e5   : > { %v3702_v41 = vadd.f32 %v7403_v16, %v9960_v22  ;;  %v7406_v24 = vadd.f32 %v7405_v15, %v7404_v49  ;;  %v7513_v57 = vpop.f32.mrb[248].mxu0  ;;  %v8141_v22 = vld [vmem:[#allocation6 + $0x4b8] sm:$0xff]   ;;  %7650 = vmatpush3.bf16.msra.mxu1 %v8143_v54 }
 0x3e6   : > { %v7514_v38 = vpop.f32.mrb[249].mxu0  ;;  %7612 = vmatpush3.bf16.msra.mxu0 %v8141_v22 }
 0x3e7   : > { %v3705_v56 = vadd.f32 %v7406_v24, %v9962_v31  ;;  %v7515_v29 = vadd.f32 %v7514_v38, %v7513_v57  ;;  %v7516_v11 = vpop.f32.mrb[250].mxu0 }
 0x3e8   : > { %v7517_v25 = vpop.f32.mrb[251].mxu0 }
 0x3e9   : > { %v7407_v43 = vpop.f32.mrb[220].mxu1  ;;  %v7518_v52 = vadd.f32 %v7517_v25, %v7516_v11  ;;  %v10069_v45 = vadd.f32 %v7515_v29, %v3702_v41  ;;  %v8144_v29 = vld [vmem:[#allocation6 + $0x578] sm:$0xff]  }
 0x3ea   : > { %v7408_v47 = vpop.f32.mrb[221].mxu1  ;;  %v8145_v25 = vld [vmem:[#allocation6 + $0x538] sm:$0xff]   ;;  %7651 = vmatprep.subr.bf16.mxu1 %v8144_v29 }
 0x3eb   : > { %v7409_v46 = vadd.f32 %v7408_v47, %v7407_v43  ;;  %v7410_v13 = vpop.f32.mrb[222].mxu1  ;;  %v10071_v39 = vadd.f32 %v7518_v52, %v3705_v56  ;;  %7652 = vmatpush3.bf16.msra.mxu1 %v8145_v25 }
 0x3ec   : > { %v7411_v7 = vpop.f32.mrb[223].mxu1 }
 0x3ed   : > { %v3710_v42 = vadd.f32 %v7409_v46, %v9968_v0  ;;  %v7412_v31 = vadd.f32 %v7411_v7, %v7410_v13  ;;  %v7519_v4 = vpop.f32.mrb[252].mxu0 }
 0x3ee   : > { %v7520_v23 = vpop.f32.mrb[253].mxu0 }
 0x3ef   : > { %v3713_v5 = vadd.f32 %v7412_v31, %v9970_v32  ;;  %v7521_v55 = vadd.f32 %v7520_v23, %v7519_v4  ;;  %v7522_v28 = vpop.f32.mrb[254].mxu0 }
 0x3f0   : > { %v7523_v35 = vpop.f32.mrb[255].mxu0 }
 0x3f1   : > { %v7413_v8 = vpop.f32.mrb[224].mxu1  ;;  %v7524_v36 = vadd.f32 %v7523_v35, %v7522_v28  ;;  %v10075_v16 = vadd.f32 %v7521_v55, %v3710_v42 }
 0x3f2   : > { %v7414_v40 = vpop.f32.mrb[225].mxu1 }
 0x3f3   : > { %v7415_v49 = vadd.f32 %v7414_v40, %v7413_v8  ;;  %v7416_v0 = vpop.f32.mrb[226].mxu1  ;;  %v10077_v41 = vadd.f32 %v7524_v36, %v3713_v5 }
 0x3f4   : > { %v7417_v15 = vpop.f32.mrb[227].mxu1 }
 0x3f5   : > { %v3718_v24 = vadd.f32 %v7415_v49, %v9976_v61  ;;  %v7418_v57 = vadd.f32 %v7417_v15, %v7416_v0  ;;  %v7525_v56 = vpop.f32.mrb[0].mxu0 }
 0x3f6   : > { %v7526_v38 = vpop.f32.mrb[1].mxu0 }
 0x3f7   : > { %v3721_v32 = vadd.f32 %v7418_v57, %v9978_v34  ;;  %v7527_v11 = vadd.f32 %v7526_v38, %v7525_v56  ;;  %v7528_v43 = vpop.f32.mrb[2].mxu0 }
 0x3f8   : > { %v7529_v47 = vpop.f32.mrb[3].mxu0 }
 0x3f9   : > { %v7419_v52 = vpop.f32.mrb[228].mxu1  ;;  %v7530_v46 = vadd.f32 %v7529_v47, %v7528_v43  ;;  %v10081_v53 = vadd.f32 %v7527_v11, %v3718_v24 }
 0x3fa   : > { %v7420_v13 = vpop.f32.mrb[229].mxu1 }
 0x3fb   : > { %v7421_v7 = vadd.f32 %v7420_v13, %v7419_v52  ;;  %v7422_v22 = vpop.f32.mrb[230].mxu1  ;;  %v10083_v63 = vadd.f32 %v7530_v46, %v3721_v32 }
 0x3fc   : > { %v7423_v61 = vpop.f32.mrb[231].mxu1 }
 0x3fd   : > { %v3726_v34 = vadd.f32 %v7421_v7, %v9984_v14  ;;  %v7424_v42 = vadd.f32 %v7423_v61, %v7422_v22  ;;  %v7531_v31 = vpop.f32.mrb[4].mxu0 }
 0x3fe   : > { %v7532_v4 = vpop.f32.mrb[5].mxu0 }
 0x3ff   : > { %v3729_v54 = vadd.f32 %v7424_v42, %v9986_v20  ;;  %v7533_v5 = vadd.f32 %v7532_v4, %v7531_v31  ;;  %v7534_v23 = vpop.f32.mrb[6].mxu0 }
 0x400   : > { %v7535_v28 = vpop.f32.mrb[7].mxu0 }
 0x401   : > { %v7425_v55 = vpop.f32.mrb[232].mxu1  ;;  %v7536_v8 = vadd.f32 %v7535_v28, %v7534_v23  ;;  %v10087_v36 = vadd.f32 %v7533_v5, %v3726_v34 }
 0x402   : > { %v7426_v35 = vpop.f32.mrb[233].mxu1 }
 0x403   : > { %v7427_v40 = vadd.f32 %v7426_v35, %v7425_v55  ;;  %v7428_v49 = vpop.f32.mrb[234].mxu1  ;;  %v10089_v15 = vadd.f32 %v7536_v8, %v3729_v54 }
 0x404   : > { %v7429_v0 = vpop.f32.mrb[235].mxu1 }
 0x405   : > { %v3734_v14 = vadd.f32 %v7427_v40, %v9992_v1  ;;  %v7430_v24 = vadd.f32 %v7429_v0, %v7428_v49  ;;  %v7537_v57 = vpop.f32.mrb[8].mxu0 }
 0x406   : > { %v7538_v56 = vpop.f32.mrb[9].mxu0 }
 0x407   : > { %v3737_v20 = vadd.f32 %v7430_v24, %v9996_v2  ;;  %v7539_v32 = vadd.f32 %v7538_v56, %v7537_v57  ;;  %v7540_v38 = vpop.f32.mrb[10].mxu0 }
 0x408   : > { %v7541_v11 = vpop.f32.mrb[11].mxu0 }
 0x409   : > { %v7431_v29 = vpop.f32.mrb[236].mxu1  ;;  %v7542_v43 = vadd.f32 %v7541_v11, %v7540_v38  ;;  %v10093_v52 = vadd.f32 %v7539_v32, %v3734_v14 }
 0x40a   : > { %v7432_v25 = vpop.f32.mrb[237].mxu1 }
 0x40b   : > { %v7433_v47 = vadd.f32 %v7432_v25, %v7431_v29  ;;  %v7434_v46 = vpop.f32.mrb[238].mxu1  ;;  %v10095_v7 = vadd.f32 %v7542_v43, %v3737_v20 }
 0x40c   : > { %v7435_v13 = vpop.f32.mrb[239].mxu1 }
 0x40d   : > { %v3742_v1 = vadd.f32 %v7433_v47, %v10003_v6  ;;  %v7436_v22 = vadd.f32 %v7435_v13, %v7434_v46  ;;  %v7543_v61 = vpop.f32.mrb[12].mxu0 }
 0x40e   : > { %v7544_v34 = vpop.f32.mrb[13].mxu0 }
 0x40f   : > { %v3745_v2 = vadd.f32 %v7436_v22, %v10005_v44  ;;  %v7545_v42 = vadd.f32 %v7544_v34, %v7543_v61  ;;  %v7546_v31 = vpop.f32.mrb[14].mxu0 }
 0x410   : > { %v7547_v4 = vpop.f32.mrb[15].mxu0 }
 0x411   : > { %v7437_v54 = vpop.f32.mrb[240].mxu1  ;;  %v7548_v5 = vadd.f32 %v7547_v4, %v7546_v31  ;;  %v10099_v55 = vadd.f32 %v7545_v42, %v3742_v1  ;;  %v8146_v1 = vld [vmem:[#allocation6 + $0x5c0] sm:$0xff]  }
 0x412   : > { %v7438_v23 = vpop.f32.mrb[241].mxu1  ;;  %7677 = vmatprep.subr.bf16.mxu0 %v8146_v1 }
 0x413   : > { %v7439_v28 = vadd.f32 %v7438_v23, %v7437_v54  ;;  %v7440_v8 = vpop.f32.mrb[242].mxu1  ;;  %v10101_v40 = vadd.f32 %v7548_v5, %v3745_v2 }
 0x414   : > { %v7441_v35 = vpop.f32.mrb[243].mxu1 }
 0x415   : > { %v3750_v6 = vadd.f32 %v7439_v28, %v10009_v58  ;;  %v7442_v49 = vadd.f32 %v7441_v35, %v7440_v8  ;;  %v7549_v0 = vpop.f32.mrb[16].mxu0  ;;  %v8150_v28 = vld [vmem:[#allocation6 + $0x640] sm:$0xff]  }
 0x416   : > { %v7550_v14 = vpop.f32.mrb[17].mxu0  ;;  %7717 = vmatprep.subr.bf16.mxu1 %v8150_v28 }
 0x417   : > { %v3753_v44 = vadd.f32 %v7442_v49, %v10011_v21  ;;  %v7551_v24 = vadd.f32 %v7550_v14, %v7549_v0  ;;  %v7552_v57 = vpop.f32.mrb[18].mxu0 }
 0x418   : > { %v7553_v56 = vpop.f32.mrb[19].mxu0 }
 0x419   : > { %v7443_v20 = vpop.f32.mrb[244].mxu1  ;;  %v7554_v32 = vadd.f32 %v7553_v56, %v7552_v57  ;;  %v10105_v29 = vadd.f32 %v7551_v24, %v3750_v6 }
 0x41a   : > { %v7444_v38 = vpop.f32.mrb[245].mxu1 }
 0x41b   : > { %v7445_v11 = vadd.f32 %v7444_v38, %v7443_v20  ;;  %v7446_v43 = vpop.f32.mrb[246].mxu1  ;;  %v10107_v47 = vadd.f32 %v7554_v32, %v3753_v44 }
 0x41c   : > { %v7447_v25 = vpop.f32.mrb[247].mxu1 }
 0x41d   : > { %v3758_v58 = vadd.f32 %v7445_v11, %v10015_v50  ;;  %v7448_v46 = vadd.f32 %v7447_v25, %v7446_v43  ;;  %v7555_v13 = vpop.f32.mrb[20].mxu0 }
 0x41e   : > { %v7556_v22 = vpop.f32.mrb[21].mxu0 }
 0x41f   : > { %v3761_v21 = vadd.f32 %v7448_v46, %v10017_v59  ;;  %v7557_v61 = vadd.f32 %v7556_v22, %v7555_v13  ;;  %v7558_v2 = vpop.f32.mrb[22].mxu0  ;;  %v8329_v46 = vmov 1983009808  }
 0x420   : > { %v7559_v42 = vpop.f32.mrb[23].mxu0  ;;  %v4168_v13 = vunpack.c.l.s4 %v8329_v46 }
 0x421   : > { %v7449_v34 = vpop.f32.mrb[248].mxu1  ;;  %v7560_v31 = vadd.f32 %v7559_v42, %v7558_v2  ;;  %v10111_v4 = vadd.f32 %v7557_v61, %v3758_v58 }
 0x422   : > { %v7450_v54 = vpop.f32.mrb[249].mxu1 }
 0x423   : > { %v7451_v5 = vadd.f32 %v7450_v54, %v7449_v34  ;;  %v7452_v23 = vpop.f32.mrb[250].mxu1  ;;  %v10113_v50 = vadd.f32 %v7560_v31, %v3761_v21  ;;  %v4169_v31 = vunpack.c.0.s8 %v4168_v13 }
 0x424   : > { %v7453_v8 = vpop.f32.mrb[251].mxu1 }
 0x425   : > { %v3766_v35 = vadd.f32 %v7451_v5, %v10021_v12  ;;  %v7454_v6 = vadd.f32 %v7453_v8, %v7452_v23  ;;  %v7561_v59 = vpop.f32.mrb[24].mxu0 }
 0x426   : > { %v7562_v0 = vpop.f32.mrb[25].mxu0 }
 0x427   : > { %v3769_v49 = vadd.f32 %v7454_v6, %v10023_v30  ;;  %v7563_v44 = vadd.f32 %v7562_v0, %v7561_v59  ;;  %v7564_v14 = vpop.f32.mrb[26].mxu0  ;;  %v4170_v30 = vlaneseq }
 0x428   : > { %v7565_v57 = vpop.f32.mrb[27].mxu0 }
 0x429   : > { %v7455_v24 = vpop.f32.mrb[252].mxu1  ;;  %v7566_v20 = vadd.f32 %v7565_v57, %v7564_v14  ;;  %v10117_v32 = vadd.f32 %v7563_v44, %v3766_v35  ;;  %v4171_v54 = vshrl.u32 %v4170_v30, 7 }
 0x42a   : > { %v7456_v56 = vpop.f32.mrb[253].mxu1 }
 0x42b   : > { %v7457_v38 = vadd.f32 %v7456_v56, %v7455_v24  ;;  %v7458_v11 = vpop.f32.mrb[254].mxu1  ;;  %v10119_v25 = vadd.f32 %v7566_v20, %v3769_v49  ;;  %v10130_v44 = vsub.s32 %v4169_v31, %v4171_v54  ;;  %v10133_v20 = vld [vmem:[#allocation2 + $0x8] sm:$0x3]  ;;  %v10135_v56 = vsub.s32 0, %v4171_v54 }
 0x42c   : > { %v7459_v43 = vpop.f32.mrb[255].mxu1  ;;  %v5214_v46 = vrot.slane %v10133_v20, 1  ;;  %v5246_v30 = vrot.slane %v10133_v20, 2 }
 0x42d   : > { %v3774_v12 = vadd.f32 %v7457_v38, %v10027_v19  ;;  %v7460_v58 = vadd.f32 %v7459_v43, %v7458_v11  ;;  %v7567_v1 = vpop.f32.mrb[28].mxu0  ;;  %v10138_v43 = vld [vmem:[#allocation2 + $0x198] sm:$0xff] }
 0x42e   : > { %v7568_v22 = vpop.f32.mrb[29].mxu0  ;;  %v5245_v13 = vrot.slane %v10138_v43, 2 }
 0x42f   : > { %v3777_v21 = vadd.f32 %v7460_v58, %v10029_v37  ;;  %v7569_v61 = vadd.f32 %v7568_v22, %v7567_v1  ;;  %v7570_v2 = vpop.f32.mrb[30].mxu0 }
 0x430   : > { %v7571_v34 = vpop.f32.mrb[31].mxu0 }
 0x431   : > { %v7835_v42 = vpop.f32.mrb[0].mxu1  ;;  %v7572_v5 = vadd.f32 %v7571_v34, %v7570_v2  ;;  %v10124_v8 = vadd.f32 %v7569_v61, %v3774_v12  ;;  %v5213_v12 = vrot.slane %v10138_v43, 1 }
 0x432   : > { %v3984_v23 = vadd.f32 %v7835_v42, %v10039_v18  ;;  %v3975_v28 = vpop.f32.mrb[1].mxu1 }
 0x433   : > { %v3976_v19 = vadd.f32 %v3975_v28, %v10033_v48  ;;  %v7836_v35 = vpop.f32.mrb[2].mxu1  ;;  %v10128_v49 = vadd.f32 %v7572_v5, %v3777_v21 }
 0x434   : > { %v4104_v6 = vmax.f32 %v3984_v23, 0.0  ;;  %v3987_v59 = vadd.f32 %v7836_v35, %v10041_v60  ;;  %v3978_v37 = vpop.f32.mrb[3].mxu1 }
 0x435   : > { %v4102_v0 = vmax.f32 %v3976_v19, 0.0  ;;  %v3979_v14 = vadd.f32 %v3978_v37, %v10035_v62 }
 0x436   : > { %v4105_v24 = vmax.f32 %v3987_v59, 0.0 }
 0x437   : > { %v4134_v57 = vmax.f32 %v4102_v0, %v4104_v6  ;;  %v4103_v18 = vmax.f32 %v3979_v14, 0.0 }
 0x439   : > { %v4166_v48 = vcombine.high %v4134_v57, %v4134_v57  ;;  %v4173_v38 = vrot.slane %v4134_v57, %v10130_v44  ;;  %v4135_v60 = vmax.f32 %v4103_v18, %v4105_v24  ;;  %v7839_v11 = vpop.f32.mrb[4].mxu1 }
 0x43a   : > { %v4000_v62 = vadd.f32 %v7839_v11, %v10051_v33  ;;  %v3991_v58 = vpop.f32.mrb[5].mxu1 }
 0x43b   : > { %v4180_v1 = vrot.slane %v4166_v48, %v10130_v44  ;;  %v4181_v21 = vcombine.high %v4173_v38, %v4173_v38  ;;  %v6508_v22 = vrot.slane %v4173_v38, 9  ;;  %v4183_v61 = vcombine.high %v4135_v60, %v4135_v60  ;;  %v7840_v2 = vpop.f32.mrb[6].mxu1 }
 0x43c   : > { %v4190_v34 = vrot.slane %v4135_v60, %v10130_v44  ;;  %v4108_v42 = vmax.f32 %v4000_v62, 0.0  ;;  %v3992_v33 = vadd.f32 %v3991_v58, %v10045_v10  ;;  %v10149_v31 = vadd.f32 %v7840_v2, %v10053_v9  ;;  %v3994_v54 = vpop.f32.mrb[7].mxu1 }
 0x43d   : > { %v4182_v5 = vcombine.high %v4180_v1, %v4180_v1  ;;  %v6509_v23 = vrot.slane %v4181_v21, 9  ;;  %v6510_v28 = vrot.slane %v4180_v1, 9  ;;  %v4694_v19 = vmax.f32 %v4173_v38, %v6508_v22 }
 0x43e   : > { %v4197_v35 = vrot.slane %v4183_v61, %v10130_v44  ;;  %v4198_v6 = vcombine.high %v4190_v34, %v4190_v34  ;;  %v6512_v59 = vrot.slane %v4190_v34, 9  ;;  %v4106_v37 = vmax.f32 %v3992_v33, 0.0 }
 0x43f   : > { %v6511_v0 = vrot.slane %v4182_v5, 9  ;;  %v4695_v14 = vmax.f32 %v4181_v21, %v6509_v23  ;;  %v4696_v24 = vmax.f32 %v4180_v1, %v6510_v28  ;;  %v4845_v10 = vrot.slane %v4694_v19, %v10135_v56 }
 0x440   : > { %v4199_v57 = vcombine.high %v4197_v35, %v4197_v35  ;;  %v6513_v9 = vrot.slane %v4198_v6, 9  ;;  %v6514_v18 = vrot.slane %v4197_v35, 9  ;;  %v4698_v48 = vmax.f32 %v4190_v34, %v6512_v59 }
 0x441   : > { %v4697_v60 = vmax.f32 %v4182_v5, %v6511_v0  ;;  %v4849_v11 = vrot.slane %v4695_v14, %v10135_v56  ;;  %v4853_v38 = vrot.slane %v4696_v24, %v10135_v56  ;;  %v4136_v62 = vmax.f32 %v4106_v37, %v4108_v42  ;;  %v7843_v58 = vpop.f32.mrb[8].mxu1 }
 0x442   : > { %v6515_v22 = vrot.slane %v4199_v57, 9  ;;  %v4699_v61 = vmax.f32 %v4198_v6, %v6513_v9  ;;  %v4700_v2 = vmax.f32 %v4197_v35, %v6514_v18  ;;  %v4861_v33 = vrot.slane %v4698_v48, %v10135_v56  ;;  %v4007_v21 = vpop.f32.mrb[9].mxu1 }
 0x443   : > { %v4857_v1 = vrot.slane %v4697_v60, %v10135_v56  ;;  %v5099_v23 = vsel %vm5098_vm2, %v4849_v11, %v4845_v10  ;;  %v4200_v28 = vcombine.high %v4136_v62, %v4136_v62  ;;  %v4207_v34 = vrot.slane %v4136_v62, %v10130_v44  ;;  %v7844_v5 = vpop.f32.mrb[10].mxu1 }
 0x444   : > { %v5101_v19 = vsel %vm5100_vm3, %v4853_v38, %v5099_v23  ;;  %v4701_v59 = vmax.f32 %v4199_v57, %v6515_v22  ;;  %v4865_v42 = vrot.slane %v4699_v61, %v10135_v56  ;;  %v4869_v37 = vrot.slane %v4700_v2, %v10135_v56  ;;  %v4010_v6 = vpop.f32.mrb[11].mxu1 }
 0x445   : > { %v5103_v35 = vsel %vm5102_vm4, %v4857_v1, %v5101_v19  ;;  %v4214_v0 = vrot.slane %v4200_v28, %v10130_v44  ;;  %v4215_v14 = vcombine.high %v4207_v34, %v4207_v34  ;;  %v6516_v24 = vrot.slane %v4207_v34, 9 }
 0x446   : > { %v4873_v10 = vrot.slane %v4701_v59, %v10135_v56  ;;  %v5105_v9 = vsel %vm5104_vm5, %v4861_v33, %v5103_v35  ;;  %v4109_v18 = vmax.f32 %v10149_v31, 0.0  ;;  %v3995_v48 = vadd.f32 %v3994_v54, %v10047_v17 }
 0x447   : > { %v5107_v57 = vsel %vm5106_vm6, %v4865_v42, %v5105_v9  ;;  %v4216_v60 = vcombine.high %v4214_v0, %v4214_v0  ;;  %v6517_v11 = vrot.slane %v4215_v14, 9  ;;  %v6518_v38 = vrot.slane %v4214_v0, 9 }
 0x448   : > { %v5109_v62 = vsel %vm5108_vm7, %v4869_v37, %v5107_v57  ;;  %v4702_v22 = vmax.f32 %v4207_v34, %v6516_v24  ;;  %v4107_v61 = vmax.f32 %v3995_v48, 0.0  ;;  %v4016_v2 = vadd.f32 %v7843_v58, %v10063_v51 }
 0x449   : > { %v5111_v1 = vsel %vm5110_vm8, %v4873_v10, %v5109_v62  ;;  %v6519_v23 = vrot.slane %v4216_v60, 9  ;;  %v4703_v28 = vmax.f32 %v4215_v14, %v6517_v11  ;;  %v4704_v33 = vmax.f32 %v4214_v0, %v6518_v38  ;;  %v7847_v19 = vpop.f32.mrb[12].mxu1 }
 0x44a   : > { %5169 = vst [vmem:[#allocation2 + $0x19] sm:$0xff] %v5111_v1  ;;  %v4877_v17 = vrot.slane %v4702_v22, %v10135_v56  ;;  %v4137_v31 = vmax.f32 %v4107_v61, %v4109_v18  ;;  %v4112_v54 = vmax.f32 %v4016_v2, 0.0  ;;  %v4008_v59 = vadd.f32 %v4007_v21, %v10057_v27  ;;  %v4023_v42 = vpop.f32.mrb[13].mxu1 }
 0x44b   : > { %v4705_v35 = vmax.f32 %v4216_v60, %v6519_v23  ;;  %v4881_v34 = vrot.slane %v4703_v28, %v10135_v56  ;;  %v4885_v37 = vrot.slane %v4704_v33, %v10135_v56  ;;  %v4019_v51 = vadd.f32 %v7844_v5, %v10065_v3  ;;  %v10177_v58 = vpop.f32.mrb[14].mxu1 }
 0x44c   : > { %v4217_v14 = vcombine.high %v4137_v31, %v4137_v31  ;;  %v4224_v0 = vrot.slane %v4137_v31, %v10130_v44  ;;  %v4110_v24 = vmax.f32 %v4008_v59, 0.0  ;;  %v4011_v10 = vadd.f32 %v4010_v6, %v10059_v26  ;;  %v10181_v9 = vpop.f32.mrb[15].mxu1 }
 0x44d   : > { %v4889_v27 = vrot.slane %v4705_v35, %v10135_v56  ;;  %v5112_v21 = vsel %vm5098_vm2, %v4881_v34, %v4877_v17  ;;  %v4113_v18 = vmax.f32 %v4019_v51, 0.0  ;;  %v10186_v48 = vadd.f32 %v7847_v19, %v10075_v16 }
 0x44e   : > { %v5113_v3 = vsel %vm5100_vm3, %v4885_v37, %v5112_v21  ;;  %v4231_v5 = vrot.slane %v4217_v14, %v10130_v44  ;;  %v4232_v57 = vcombine.high %v4224_v0, %v4224_v0  ;;  %v6520_v60 = vrot.slane %v4224_v0, 9 }
 0x44f   : > { %v5114_v11 = vsel %vm5102_vm4, %v4889_v27, %v5113_v3  ;;  %v4138_v38 = vmax.f32 %v4110_v24, %v4112_v54  ;;  %v4111_v26 = vmax.f32 %v4011_v10, 0.0  ;;  %v4116_v6 = vmax.f32 %v10186_v48, 0.0 }
 0x450   : > { %v4233_v62 = vcombine.high %v4231_v5, %v4231_v5  ;;  %v6521_v22 = vrot.slane %v4232_v57, 9  ;;  %v6522_v61 = vrot.slane %v4231_v5, 9  ;;  %v4706_v2 = vmax.f32 %v4224_v0, %v6520_v60 }
 0x451   : > { %v4234_v1 = vcombine.high %v4138_v38, %v4138_v38  ;;  %v4241_v16 = vrot.slane %v4138_v38, %v10130_v44  ;;  %v4139_v23 = vmax.f32 %v4111_v26, %v4113_v18  ;;  %v4024_v28 = vadd.f32 %v4023_v42, %v10069_v45  ;;  %v10194_v33 = vpop.f32.mrb[16].mxu1 }
 0x452   : > { %v6523_v19 = vrot.slane %v4233_v62, 9  ;;  %v4707_v17 = vmax.f32 %v4232_v57, %v6521_v22  ;;  %v4708_v31 = vmax.f32 %v4231_v5, %v6522_v61  ;;  %v4893_v54 = vrot.slane %v4706_v2, %v10135_v56  ;;  %v4039_v59 = vpop.f32.mrb[17].mxu1 }
 0x453   : > { %v4248_v35 = vrot.slane %v4234_v1, %v10130_v44  ;;  %v4249_v34 = vcombine.high %v4241_v16, %v4241_v16  ;;  %v6524_v37 = vrot.slane %v4241_v16, 9  ;;  %v4251_v51 = vcombine.high %v4139_v23, %v4139_v23  ;;  %v7852_v14 = vpop.f32.mrb[18].mxu1 }
 0x454   : > { %v4709_v0 = vmax.f32 %v4233_v62, %v6523_v19  ;;  %v4897_v24 = vrot.slane %v4707_v17, %v10135_v56  ;;  %v4901_v10 = vrot.slane %v4708_v31, %v10135_v56  ;;  %v5115_v45 = vsel %vm5104_vm5, %v4893_v54, %v5114_v11  ;;  %v10201_v42 = vpop.f32.mrb[19].mxu1 }
 0x455   : > { %v4250_v27 = vcombine.high %v4248_v35, %v4248_v35  ;;  %v6525_v21 = vrot.slane %v4249_v34, 9  ;;  %v6526_v18 = vrot.slane %v4248_v35, 9  ;;  %v4710_v3 = vmax.f32 %v4241_v16, %v6524_v37 }
 0x456   : > { %v4905_v5 = vrot.slane %v4709_v0, %v10135_v56  ;;  %v5116_v57 = vsel %vm5106_vm6, %v4897_v24, %v5115_v45  ;;  %v4258_v60 = vrot.slane %v4139_v23, %v10130_v44  ;;  %v4265_v38 = vrot.slane %v4251_v51, %v10130_v44 }
 0x457   : > { %v5117_v26 = vsel %vm5108_vm7, %v4901_v10, %v5116_v57  ;;  %v6527_v62 = vrot.slane %v4250_v27, 9  ;;  %v4711_v22 = vmax.f32 %v4249_v34, %v6525_v21  ;;  %v4712_v61 = vmax.f32 %v4248_v35, %v6526_v18 }
 0x458   : > { %v5118_v11 = vsel %vm5110_vm8, %v4905_v5, %v5117_v26  ;;  %v4909_v2 = vrot.slane %v4710_v3, %v10135_v56  ;;  %v4266_v1 = vcombine.high %v4258_v60, %v4258_v60  ;;  %v4267_v19 = vcombine.high %v4265_v38, %v4265_v38 }
 0x459   : > { %5170 = vst [vmem:[#allocation2 + $0x31] sm:$0xff] %v5118_v11  ;;  %v4713_v16 = vmax.f32 %v4250_v27, %v6527_v62  ;;  %v4913_v17 = vrot.slane %v4711_v22, %v10135_v56  ;;  %v4917_v31 = vrot.slane %v4712_v61, %v10135_v56  ;;  %v6528_v23 = vrot.slane %v4258_v60, 9  ;;  %v10212_v54 = vpop.f32.mrb[20].mxu1 }
 0x45a   : > { %v6529_v37 = vrot.slane %v4266_v1, 9  ;;  %v6530_v51 = vrot.slane %v4265_v38, 9  ;;  %v6531_v0 = vrot.slane %v4267_v19, 9  ;;  %v4114_v34 = vmax.f32 %v4024_v28, 0.0  ;;  %v10214_v35 = vpop.f32.mrb[21].mxu1 }
 0x45b   : > { %v4921_v24 = vrot.slane %v4713_v16, %v10135_v56  ;;  %v5119_v10 = vsel %vm5098_vm2, %v4913_v17, %v4909_v2  ;;  %v4714_v45 = vmax.f32 %v4258_v60, %v6528_v23  ;;  %v4035_v27 = vadd.f32 %v10177_v58, %v10077_v41  ;;  %v10220_v21 = vpop.f32.mrb[22].mxu1 }
 0x45c   : > { %v5120_v18 = vsel %vm5100_vm3, %v4917_v31, %v5119_v10  ;;  %v4715_v3 = vmax.f32 %v4266_v1, %v6529_v37  ;;  %v4716_v5 = vmax.f32 %v4265_v38, %v6530_v51  ;;  %v4717_v57 = vmax.f32 %v4267_v19, %v6531_v0  ;;  %v10223_v26 = vpop.f32.mrb[23].mxu1 }
 0x45d   : > { %v4925_v28 = vrot.slane %v4714_v45, %v10135_v56  ;;  %v5121_v62 = vsel %vm5102_vm4, %v4921_v24, %v5120_v18  ;;  %v4140_v22 = vmax.f32 %v4114_v34, %v4116_v6  ;;  %v4117_v60 = vmax.f32 %v4035_v27, 0.0 }
 0x45e   : > { %v4929_v61 = vrot.slane %v4715_v3, %v10135_v56  ;;  %v4933_v41 = vrot.slane %v4716_v5, %v10135_v56  ;;  %v4937_v58 = vrot.slane %v4717_v57, %v10135_v56  ;;  %v4027_v38 = vadd.f32 %v10181_v9, %v10071_v39 }
 0x45f   : > { %v5122_v11 = vsel %vm5104_vm5, %v4925_v28, %v5121_v62  ;;  %v4268_v2 = vcombine.high %v4140_v22, %v4140_v22  ;;  %v4275_v1 = vrot.slane %v4140_v22, %v10130_v44  ;;  %v4048_v19 = vadd.f32 %v10194_v33, %v10087_v36 }
 0x460   : > { %v5123_v48 = vsel %vm5106_vm6, %v4929_v61, %v5122_v11  ;;  %v4115_v6 = vmax.f32 %v4027_v38, 0.0  ;;  %v4040_v16 = vadd.f32 %v4039_v59, %v10081_v53  ;;  %v10241_v17 = vadd.f32 %v7852_v14, %v10089_v15 }
 0x461   : > { %v5124_v31 = vsel %vm5108_vm7, %v4933_v41, %v5123_v48  ;;  %v4282_v39 = vrot.slane %v4268_v2, %v10130_v44  ;;  %v4283_v9 = vcombine.high %v4275_v1, %v4275_v1  ;;  %v6532_v23 = vrot.slane %v4275_v1, 9  ;;  %v10245_v37 = vpop.f32.mrb[24].mxu1 }
 0x462   : > { %v5125_v51 = vsel %vm5110_vm8, %v4937_v58, %v5124_v31  ;;  %v4141_v0 = vmax.f32 %v4115_v6, %v4117_v60  ;;  %v4120_v36 = vmax.f32 %v4048_v19, 0.0  ;;  %v4118_v33 = vmax.f32 %v4040_v16, 0.0  ;;  %v10248_v34 = vpop.f32.mrb[25].mxu1 }
 0x463   : > { %5171 = vst [vmem:[#allocation2 + $0x49] sm:$0xff] %v5125_v51  ;;  %v4284_v53 = vcombine.high %v4282_v39, %v4282_v39  ;;  %v6533_v59 = vrot.slane %v4283_v9, 9  ;;  %v6534_v15 = vrot.slane %v4282_v39, 9  ;;  %v4718_v14 = vmax.f32 %v4275_v1, %v6532_v23  ;;  %v10250_v24 = vpop.f32.mrb[26].mxu1 }
 0x464   : > { %v4285_v10 = vcombine.high %v4141_v0, %v4141_v0  ;;  %v4292_v45 = vrot.slane %v4141_v0, %v10130_v44  ;;  %v4142_v27 = vmax.f32 %v4118_v33, %v4120_v36  ;;  %v4121_v18 = vmax.f32 %v10241_v17, 0.0  ;;  %v10254_v3 = vpop.f32.mrb[27].mxu1 }
 0x465   : > { %v6535_v5 = vrot.slane %v4284_v53, 9  ;;  %v4719_v57 = vmax.f32 %v4283_v9, %v6533_v59  ;;  %v4720_v28 = vmax.f32 %v4282_v39, %v6534_v15  ;;  %v4941_v62 = vrot.slane %v4718_v14, %v10135_v56 }
 0x466   : > { %v4299_v22 = vrot.slane %v4285_v10, %v10130_v44  ;;  %v4300_v60 = vcombine.high %v4292_v45, %v4292_v45  ;;  %v6536_v61 = vrot.slane %v4292_v45, 9  ;;  %v4302_v41 = vcombine.high %v4142_v27, %v4142_v27 }
 0x467   : > { %v4721_v58 = vmax.f32 %v4284_v53, %v6535_v5  ;;  %v4945_v38 = vrot.slane %v4719_v57, %v10135_v56  ;;  %v4949_v11 = vrot.slane %v4720_v28, %v10135_v56  ;;  %v4309_v2 = vrot.slane %v4142_v27, %v10130_v44 }
 0x468   : > { %v4301_v1 = vcombine.high %v4299_v22, %v4299_v22  ;;  %v6537_v19 = vrot.slane %v4300_v60, 9  ;;  %v6538_v48 = vrot.slane %v4299_v22, 9  ;;  %v4722_v6 = vmax.f32 %v4292_v45, %v6536_v61 }
 0x469   : > { %v4953_v16 = vrot.slane %v4721_v58, %v10135_v56  ;;  %v5126_v31 = vsel %vm5098_vm2, %v4945_v38, %v4941_v62  ;;  %v4316_v39 = vrot.slane %v4302_v41, %v10130_v44  ;;  %v4317_v9 = vcombine.high %v4309_v2, %v4309_v2  ;;  %v10264_v23 = vpop.f32.mrb[28].mxu1  ;;  %v10278_v58 = vld [vmem:[#allocation2 + $0x18] sm:$0xff] }
 0x46a   : > { %v5127_v51 = vsel %vm5100_vm3, %v4949_v11, %v5126_v31  ;;  %v6539_v0 = vrot.slane %v4301_v1, 9  ;;  %v4723_v36 = vmax.f32 %v4300_v60, %v6537_v19  ;;  %v4724_v33 = vmax.f32 %v4299_v22, %v6538_v48  ;;  %v10267_v53 = vpop.f32.mrb[29].mxu1  ;;  %v5180_v48 = vld [vmem:[#allocation2 + $0x20] sm:$0x3] }
 0x46b   : > { %v4957_v59 = vrot.slane %v4722_v6, %v10135_v56  ;;  %v5128_v15 = vsel %vm5102_vm4, %v4953_v16, %v5127_v51  ;;  %v4318_v14 = vcombine.high %v4316_v39, %v4316_v39  ;;  %v6540_v10 = vrot.slane %v4309_v2, 9  ;;  %v10271_v45 = vpop.f32.mrb[30].mxu1 }
 0x46c   : > { %v4725_v27 = vmax.f32 %v4301_v1, %v6539_v0  ;;  %v4961_v5 = vrot.slane %v4723_v36, %v10135_v56  ;;  %v4965_v57 = vrot.slane %v4724_v33, %v10135_v56  ;;  %v6541_v28 = vrot.slane %v4317_v9, 9  ;;  %v10275_v62 = vpop.f32.mrb[31].mxu1 }
 0x46d   : > { %v5129_v22 = vsel %vm5104_vm5, %v4957_v59, %v5128_v15  ;;  %v6542_v60 = vrot.slane %v4316_v39, 9  ;;  %v6543_v61 = vrot.slane %v4318_v14, 9  ;;  %v4726_v41 = vmax.f32 %v4309_v2, %v6540_v10 }
 0x46e   : > { %v4969_v38 = vrot.slane %v4725_v27, %v10135_v56  ;;  %v5130_v11 = vsel %vm5106_vm6, %v4961_v5, %v5129_v22  ;;  %v4727_v19 = vmax.f32 %v4317_v9, %v6541_v28  ;;  %v4043_v1 = vadd.f32 %v10201_v42, %v10083_v63 }
 0x46f   : > { %v5131_v6 = vsel %vm5108_vm7, %v4965_v57, %v5130_v11  ;;  %v4728_v16 = vmax.f32 %v4316_v39, %v6542_v60  ;;  %v4729_v31 = vmax.f32 %v4318_v14, %v6543_v61  ;;  %v4973_v51 = vrot.slane %v4726_v41, %v10135_v56 }
 0x470   : > { %v5132_v0 = vsel %vm5110_vm8, %v4969_v38, %v5131_v6  ;;  %v4977_v2 = vrot.slane %v4727_v19, %v10135_v56  ;;  %v4119_v36 = vmax.f32 %v4043_v1, 0.0  ;;  %v5216_v33 = vrot.slane %v10278_v58, 1  ;;  %v8148_v38 = vld [vmem:[#allocation6 + $0x5c8] sm:$0xff]  }
 0x471   : > { %5172 = vst [vmem:[#allocation2 + $0x61] sm:$0xff] %v5132_v0  ;;  %v4981_v9 = vrot.slane %v4728_v16, %v10135_v56  ;;  %v5215_v63 = vsel %vm532_vm0, %v5213_v12, %v5214_v46  ;;  %v5217_v42 = vrot.slane %v5180_v48, 1  ;;  %v4985_v39 = vrot.slane %v4729_v31, %v10135_v56 }
 0x472   : > { %v5133_v59 = vsel %vm5098_vm2, %v4977_v2, %v4973_v51  ;;  %v4143_v15 = vmax.f32 %v4119_v36, %v4121_v18  ;;  %v5248_v14 = vrot.slane %v10278_v58, 2  ;;  %v5249_v27 = vrot.slane %v5180_v48, 2  ;;  %v8149_v2 = vld [vmem:[#allocation6 + $0x588] sm:$0xff]  }
 0x473   : > { %v10301_v10 = vsel %vm532_vm0, %v5216_v33, %v5217_v42  ;;  %v4064_v5 = vadd.f32 %v10212_v54, %v10099_v55  ;;  %v4056_v46 = vadd.f32 %v10214_v35, %v10093_v52  ;;  %v5134_v57 = vsel %vm5100_vm3, %v4981_v9, %v5133_v59  ;;  %v8147_v52 = vld [vmem:[#allocation6 + $0x580] sm:$0xff]   ;;  %v8152_v42 = vld [vmem:[#allocation6 + $0x5d0] sm:$0xff]  }
 0x474   : > { %v4319_v28 = vcombine.high %v4143_v15, %v4143_v15  ;;  %v4326_v22 = vrot.slane %v4143_v15, %v10130_v44  ;;  %v10314_v17 = vsel %vm645_vm1, %v5245_v13, %v5246_v30  ;;  %v5297_v18 = vpack.c.bf16 %v10278_v58, %v10138_v43 }
 0x475   : > { %v5298_v55 = vpack.c.bf16 %v10301_v10, %v5215_v63  ;;  %v4124_v54 = vmax.f32 %v4064_v5, 0.0  ;;  %v4122_v60 = vmax.f32 %v4056_v46, 0.0  ;;  %v4067_v20 = vadd.f32 %v10220_v21, %v10101_v40 }
 0x476   : > { %v4333_v35 = vrot.slane %v4319_v28, %v10130_v44  ;;  %v4334_v61 = vcombine.high %v4326_v22, %v4326_v22  ;;  %v6544_v41 = vrot.slane %v4326_v22, 9  ;;  %v5135_v11 = vsel %vm5102_vm4, %v4985_v39, %v5134_v57 }
 0x477   : > { %v10324_v30 = vsel %vm645_vm1, %v5248_v14, %v5249_v27  ;;  %5941 = vmatprep.mubr.bf16.mxu0 %v5298_v55  ;;  %v4144_v19 = vmax.f32 %v4122_v60, %v4124_v54  ;;  %v4059_v1 = vadd.f32 %v10223_v26, %v10095_v7  ;;  %v4125_v40 = vmax.f32 %v4067_v20, 0.0 }
 0x478   : > { %v4335_v48 = vcombine.high %v4333_v35, %v4333_v35  ;;  %v6545_v6 = vrot.slane %v4334_v61, 9  ;;  %v6546_v16 = vrot.slane %v4333_v35, 9  ;;  %v4730_v31 = vmax.f32 %v4326_v22, %v6544_v41  ;;  %5942 = vmatmul.mubr.bf16.vlgmr.msra.gmra.mrb[32].mxu0 %v5297_v18  ;;  %v8153_v18 = vld [vmem:[#allocation6 + $0x590] sm:$0xff]  }
 0x479   : > { %v4336_v51 = vcombine.high %v4144_v19, %v4144_v19  ;;  %v4343_v0 = vrot.slane %v4144_v19, %v10130_v44  ;;  %v4123_v21 = vmax.f32 %v4059_v1, 0.0  ;;  %7678 = vmatpush3.bf16.msra.mxu0 %v8147_v52 }
 0x47a   : > { %v6547_v36 = vrot.slane %v4335_v48, 9  ;;  %v4731_v33 = vmax.f32 %v4334_v61, %v6545_v6  ;;  %v4732_v9 = vmax.f32 %v4333_v35, %v6546_v16  ;;  %v4989_v63 = vrot.slane %v4730_v31, %v10135_v56  ;;  %7679 = vmatprep.subr.bf16.mxu0 %v8148_v38  ;;  %v8156_v35 = vld [vmem:[#allocation6 + $0x5d8] sm:$0xff]  }
 0x47b   : > { %v4350_v7 = vrot.slane %v4336_v51, %v10130_v44  ;;  %v4351_v26 = vcombine.high %v4343_v0, %v4343_v0  ;;  %v6548_v39 = vrot.slane %v4343_v0, 9  ;;  %v4145_v59 = vmax.f32 %v4123_v21, %v4125_v40 }
 0x47c   : > { %v4733_v15 = vmax.f32 %v4335_v48, %v6547_v36  ;;  %v4993_v14 = vrot.slane %v4731_v33, %v10135_v56  ;;  %v4997_v27 = vrot.slane %v4732_v9, %v10135_v56  ;;  %v5136_v5 = vsel %vm5104_vm5, %v4989_v63, %v5135_v11  ;;  %v10338_v11 = vld [vmem:[#allocation2 + $0x30] sm:$0xff] }
 0x47d   : > { %v4352_v46 = vcombine.high %v4350_v7, %v4350_v7  ;;  %v6549_v57 = vrot.slane %v4351_v26, 9  ;;  %v6550_v28 = vrot.slane %v4350_v7, 9  ;;  %v4734_v22 = vmax.f32 %v4343_v0, %v6548_v39  ;;  %7680 = vmatpush3.bf16.msra.mxu0 %v8149_v2  ;;  %v8151_v33 = vld [vmem:[#allocation6 + $0x600] sm:$0xff]   ;;  %v8157_v39 = vld [vmem:[#allocation6 + $0x598] sm:$0xff]  }
 0x47e   : > { %v5001_v55 = vrot.slane %v4733_v15, %v10135_v56  ;;  %v5137_v54 = vsel %vm5106_vm6, %v4993_v14, %v5136_v5  ;;  %v4353_v60 = vcombine.high %v4145_v59, %v4145_v59  ;;  %v4360_v52 = vrot.slane %v4145_v59, %v10130_v44  ;;  %7681 = vmatprep.subr.bf16.mxu0 %v8152_v42  ;;  %v8160_v5 = vld [vmem:[#allocation6 + $0x5e0] sm:$0xff]  }
 0x47f   : > { %v5138_v61 = vsel %vm5108_vm7, %v4997_v27, %v5137_v54  ;;  %v6551_v41 = vrot.slane %v4352_v46, 9  ;;  %v4735_v20 = vmax.f32 %v4351_v26, %v6549_v57  ;;  %v4736_v38 = vmax.f32 %v4350_v7, %v6550_v28  ;;  %v8154_v26 = vld [vmem:[#allocation6 + $0x648] sm:$0xff]  }
 0x480   : > { %v5139_v19 = vsel %vm5110_vm8, %v5001_v55, %v5138_v61  ;;  %v5005_v1 = vrot.slane %v4734_v22, %v10135_v56  ;;  %v4367_v48 = vrot.slane %v4353_v60, %v10130_v44  ;;  %v4368_v6 = vcombine.high %v4360_v52, %v4360_v52  ;;  %v10362_v54 = vld [vmem:[#allocation2 + $0x38] sm:$0x3]  ;;  %v8158_v61 = vld [vmem:[#allocation6 + $0x650] sm:$0xff]  }
 0x481   : > { %5173 = vst [vmem:[#allocation2 + $0x79] sm:$0xff] %v5139_v19  ;;  %v4737_v16 = vmax.f32 %v4352_v46, %v6551_v41  ;;  %v5009_v31 = vrot.slane %v4735_v20, %v10135_v56  ;;  %v5013_v51 = vrot.slane %v4736_v38, %v10135_v56  ;;  %v6552_v0 = vrot.slane %v4360_v52, 9  ;;  %7682 = vmatpush3.bf16.msra.mxu0 %v8153_v18  ;;  %v8155_v60 = vld [vmem:[#allocation6 + $0x608] sm:$0xff]   ;;  %v8161_v38 = vld [vmem:[#allocation6 + $0x5a0] sm:$0xff]  }
 0x482   : > { %v4369_v40 = vcombine.high %v4367_v48, %v4367_v48  ;;  %v6553_v21 = vrot.slane %v4368_v6, 9  ;;  %v6554_v2 = vrot.slane %v4367_v48, 9  ;;  %v5300_v36 = vpack.c.bf16 %v10338_v11, %v10278_v58  ;;  %7683 = vmatprep.subr.bf16.mxu0 %v8156_v35  ;;  %v10365_v35 = vld [vmem:[#allocation2 + $0x48] sm:$0xff] }
 0x483   : > { %v5299_v9 = vpack.c.bf16 %v10324_v30, %v10314_v17  ;;  %v5017_v63 = vrot.slane %v4737_v16, %v10135_v56  ;;  %v5140_v42 = vsel %vm5098_vm2, %v5009_v31, %v5005_v1  ;;  %v4738_v7 = vmax.f32 %v4360_v52, %v6552_v0 }
 0x484   : > { %v5141_v59 = vsel %vm5100_vm3, %v5013_v51, %v5140_v42  ;;  %v6555_v15 = vrot.slane %v4369_v40, 9  ;;  %v4739_v14 = vmax.f32 %v4368_v6, %v6553_v21  ;;  %v4740_v27 = vmax.f32 %v4367_v48, %v6554_v2  ;;  %6006 = vmatprep.mubr.bf16.mxu1 %v5300_v36  ;;  %v8159_v51 = vld [vmem:[#allocation6 + $0x610] sm:$0xff]   ;;  %v8162_v36 = vld [vmem:[#allocation6 + $0x658] sm:$0xff]  }
 0x485   : > { %v5021_v58 = vrot.slane %v4738_v7, %v10135_v56  ;;  %v5142_v46 = vsel %vm5102_vm4, %v5017_v63, %v5141_v59  ;;  %6007 = vmatmul.mubr.bf16.vlgmr.msra.gmra.mrb[32].mxu1 %v5299_v9  ;;  %v4080_v17 = vadd.f32 %v10245_v37, %v10111_v4  ;;  %v4072_v57 = vadd.f32 %v10248_v34, %v10105_v29  ;;  %v10369_v34 = vld [vmem:[#allocation2 + $0x50] sm:$0x3]  ;;  %v8165_v7 = vld [vmem:[#allocation6 + $0x5a8] sm:$0xff]  }
 0x486   : > { %v4741_v28 = vmax.f32 %v4369_v40, %v6555_v15  ;;  %v5025_v22 = vrot.slane %v4739_v14, %v10135_v56  ;;  %v5029_v18 = vrot.slane %v4740_v27, %v10135_v56  ;;  %v4083_v55 = vadd.f32 %v10250_v24, %v10113_v50  ;;  %7718 = vmatpush3.bf16.msra.mxu1 %v8151_v33  ;;  %v8168_v14 = vld [vmem:[#allocation6 + $0x5f0] sm:$0xff]  }
 0x487   : > { %v5143_v52 = vsel %vm5104_vm5, %v5021_v58, %v5142_v46  ;;  %v4128_v4 = vmax.f32 %v4080_v17, 0.0  ;;  %v4126_v37 = vmax.f32 %v4072_v57, 0.0  ;;  %v4075_v29 = vadd.f32 %v10254_v3, %v10107_v47  ;;  %7719 = vmatprep.subr.bf16.mxu1 %v8154_v26  ;;  %7684 = vmatpush3.bf16.msra.mxu0 %v8157_v39  ;;  %v8164_v3 = vld [vmem:[#allocation6 + $0x5e8] sm:$0xff]   ;;  %v8163_v17 = vld [vmem:[#allocation6 + $0x618] sm:$0xff]  }
 0x488   : > { %v5033_v50 = vrot.slane %v4741_v28, %v10135_v56  ;;  %v5144_v24 = vsel %vm5106_vm6, %v5025_v22, %v5143_v52  ;;  %v4129_v41 = vmax.f32 %v4083_v55, 0.0  ;;  %v5219_v20 = vrot.slane %v10338_v11, 1  ;;  %7685 = vmatprep.subr.bf16.mxu0 %v8160_v5  ;;  %v8166_v55 = vld [vmem:[#allocation6 + $0x660] sm:$0xff]  }
 0x489   : > { %v5145_v19 = vsel %vm5108_vm7, %v5029_v18, %v5144_v24  ;;  %v4146_v1 = vmax.f32 %v4126_v37, %v4128_v4  ;;  %v4127_v48 = vmax.f32 %v4075_v29, 0.0  ;;  %v5220_v47 = vrot.slane %v10362_v54, 1  ;;  %v8169_v29 = vld [vmem:[#allocation6 + $0x5b0] sm:$0xff]  }
 0x48a   : > { %v5146_v6 = vsel %vm5110_vm8, %v5033_v50, %v5145_v19  ;;  %v5222_v16 = vrot.slane %v10365_v35, 1  ;;  %v5223_v31 = vrot.slane %v10369_v34, 1  ;;  %7720 = vmatpush3.bf16.msra.mxu1 %v8155_v60  ;;  %v5251_v0 = vrot.slane %v10338_v11, 2  ;;  %v8172_v50 = vld [vmem:[#allocation6 + $0x5f8] sm:$0xff]  }
 0x48b   : > { %5174 = vst [vmem:[#allocation2 + $0x91] sm:$0xff] %v5146_v6  ;;  %v4370_v40 = vcombine.high %v4146_v1, %v4146_v1  ;;  %v4377_v21 = vrot.slane %v4146_v1, %v10130_v44  ;;  %v4147_v2 = vmax.f32 %v4127_v48, %v4129_v41  ;;  %7721 = vmatprep.subr.bf16.mxu1 %v8158_v61  ;;  %v5254_v33 = vrot.slane %v10365_v35, 2 }
 0x48c   : > { %v10383_v9 = vsel %vm532_vm0, %v5219_v20, %v5220_v47  ;;  %v10386_v63 = vsel %vm532_vm0, %v5222_v16, %v5223_v31  ;;  %v5255_v42 = vrot.slane %v10369_v34, 2  ;;  %7686 = vmatpush3.bf16.msra.mxu0 %v8161_v38  ;;  %v10392_v27 = vpack.c.bf16 %v10365_v35, %v10338_v11 }
 0x48d   : > { %v4384_v26 = vrot.slane %v4370_v40, %v10130_v44  ;;  %v4385_v39 = vcombine.high %v4377_v21, %v4377_v21  ;;  %v6556_v59 = vrot.slane %v4377_v21, 9  ;;  %v4387_v15 = vcombine.high %v4147_v2, %v4147_v2  ;;  %7687 = vmatprep.subr.bf16.mxu0 %v8164_v3  ;;  %v8170_v3 = vld [vmem:[#allocation6 + $0x668] sm:$0xff]   ;;  %v8173_v40 = vld [vmem:[#allocation6 + $0x5b8] sm:$0xff]  }
 0x48e   : > { %v4394_v5 = vrot.slane %v4147_v2, %v10130_v44  ;;  %v10397_v58 = vpack.c.bf16 %v10386_v63, %v10383_v9  ;;  %v10401_v46 = vadd.f32 %v10264_v23, %v10124_v8  ;;  %7722 = vmatpush3.bf16.msra.mxu1 %v8159_v51  ;;  %v5252_v37 = vrot.slane %v10362_v54, 2  ;;  %v8167_v54 = vld [vmem:[#allocation6 + $0x620] sm:$0xff]  }
 0x48f   : > { %v4386_v57 = vcombine.high %v4384_v26, %v4384_v26  ;;  %v6557_v28 = vrot.slane %v4385_v39, 9  ;;  %v6558_v22 = vrot.slane %v4384_v26, 9  ;;  %v4742_v18 = vmax.f32 %v4377_v21, %v6556_v59  ;;  %7723 = vmatprep.subr.bf16.mxu1 %v8162_v36 }
 0x490   : > { %v4401_v60 = vrot.slane %v4387_v15, %v10130_v44  ;;  %v4402_v52 = vcombine.high %v4394_v5, %v4394_v5  ;;  %v6560_v4 = vrot.slane %v4394_v5, 9  ;;  %5949 = vmatprep.mubr.bf16.mxu0 %v10397_v58  ;;  %7688 = vmatpush3.bf16.msra.mxu0 %v8165_v7  ;;  %v10407_v61 = vsel %vm645_vm1, %v5254_v33, %v5255_v42  ;;  %v10420_v42 = vld [vmem:[#allocation6 + $0x680] sm:$0xff]   ;;  %v10425_v15 = vld [vmem:[#allocation2 + $0x60] sm:$0xff] }
 0x491   : > { %v6559_v8 = vrot.slane %v4386_v57, 9  ;;  %v4743_v23 = vmax.f32 %v4385_v39, %v6557_v28  ;;  %v4744_v34 = vmax.f32 %v4384_v26, %v6558_v22  ;;  %5950 = vmatmul.mubr.bf16.gmra.mrb[36].mxu0 %v10392_v27  ;;  %7689 = vmatprep.subr.bf16.mxu0 %v8168_v14  ;;  %v5037_v1 = vrot.slane %v4742_v18, %v10135_v56  ;;  %v8171_v14 = vld [vmem:[#allocation6 + $0x628] sm:$0xff]   ;;  %v8174_v22 = vld [vmem:[#allocation6 + $0x670] sm:$0xff]  }
 0x492   : > { %v4403_v24 = vcombine.high %v4401_v60, %v4401_v60  ;;  %v6561_v41 = vrot.slane %v4402_v52, 9  ;;  %v6562_v20 = vrot.slane %v4401_v60, 9  ;;  %v4746_v38 = vmax.f32 %v4394_v5, %v6560_v4  ;;  %7724 = vmatpush3.bf16.msra.mxu1 %v8163_v17 }
 0x493   : > { %v4745_v19 = vmax.f32 %v4386_v57, %v6559_v8  ;;  %v5041_v48 = vrot.slane %v4743_v23, %v10135_v56  ;;  %v5045_v47 = vrot.slane %v4744_v34, %v10135_v56  ;;  %7725 = vmatprep.subr.bf16.mxu1 %v8166_v55  ;;  %v4132_v51 = vmax.f32 %v10401_v46, 0.0 }
 0x494   : > { %v6563_v6 = vrot.slane %v4403_v24, 9  ;;  %v4747_v16 = vmax.f32 %v4402_v52, %v6561_v41  ;;  %v4748_v31 = vmax.f32 %v4401_v60, %v6562_v20  ;;  %7690 = vmatpush3.bf16.msra.mxu0 %v8169_v29  ;;  %v4088_v36 = vadd.f32 %v10267_v53, %v10117_v32  ;;  %v5188_v52 = vld [vmem:[#allocation2 + $0x80] sm:$0x3] }
 0x495   : > { %v5049_v21 = vrot.slane %v4745_v19, %v10135_v56  ;;  %v5147_v2 = vsel %vm5098_vm2, %v5041_v48, %v5037_v1  ;;  %v4099_v33 = vadd.f32 %v10271_v45, %v10128_v49  ;;  %7691 = vmatprep.subr.bf16.mxu0 %v8172_v50  ;;  %v5053_v39 = vrot.slane %v4746_v38, %v10135_v56  ;;  %v10430_v45 = vld [vmem:[#allocation2 + $0x68] sm:$0x3]  ;;  %v8175_v29 = vld [vmem:[#allocation6 + $0x630] sm:$0xff]  }
 0x496   : > { %v5148_v7 = vsel %vm5100_vm3, %v5045_v47, %v5147_v2  ;;  %v4749_v26 = vmax.f32 %v4403_v24, %v6563_v6  ;;  %v5057_v59 = vrot.slane %v4747_v16, %v10135_v56  ;;  %7726 = vmatpush3.bf16.msra.mxu1 %v8167_v54  ;;  %v4130_v32 = vmax.f32 %v4088_v36, 0.0  ;;  %v8177_v50 = vld [vmem:[#allocation6 + $0x678] sm:$0xff]  }
 0x497   : > { %v5149_v5 = vsel %vm5102_vm4, %v5049_v21, %v5148_v7  ;;  %v4133_v53 = vmax.f32 %v4099_v33, 0.0  ;;  %v4091_v49 = vadd.f32 %v10275_v62, %v10119_v25  ;;  %7727 = vmatprep.subr.bf16.mxu1 %v8170_v3  ;;  %v5061_v46 = vrot.slane %v4748_v31, %v10135_v56  ;;  %v10441_v62 = vld [vmem:[#allocation2 + $0x78] sm:$0xff]  ;;  %v8178_v16 = vld [vmem:[#allocation6 + $0x638] sm:$0xff]  }
 0x498   : > { %v5065_v17 = vrot.slane %v4749_v26, %v10135_v56  ;;  %v5150_v57 = vsel %vm5104_vm5, %v5053_v39, %v5149_v5  ;;  %v10438_v28 = vsel %vm645_vm1, %v5251_v0, %v5252_v37  ;;  %7692 = vmatpush3.bf16.msra.mxu0 %v8173_v40  ;;  %v4148_v55 = vmax.f32 %v4130_v32, %v4132_v51 }
 0x499   : > { %v5151_v18 = vsel %vm5106_vm6, %v5057_v59, %v5150_v57  ;;  %v4131_v25 = vmax.f32 %v4091_v49, 0.0  ;;  %v5306_v60 = vpack.c.bf16 %v10425_v15, %v10365_v35  ;;  %7865 = vmatprep.subr.bf16.mxu0 %v10420_v42  ;;  %v10449_v11 = vpack.c.bf16 %v10407_v61, %v10438_v28 }
 0x49a   : > { %v5152_v4 = vsel %vm5108_vm7, %v5061_v46, %v5151_v18  ;;  %v5225_v0 = vrot.slane %v10425_v15, 1  ;;  %v5226_v37 = vrot.slane %v10430_v45, 1  ;;  %7728 = vmatpush3.bf16.msra.mxu1 %v8171_v14  ;;  %v4404_v23 = vcombine.high %v4148_v55, %v4148_v55 }
 0x49b   : > { %v5153_v8 = vsel %vm5110_vm8, %v5065_v17, %v5152_v4  ;;  %v4411_v35 = vrot.slane %v4148_v55, %v10130_v44  ;;  %v4149_v34 = vmax.f32 %v4131_v25, %v4133_v53  ;;  %6014 = vmatprep.mubr.bf16.mxu1 %v5306_v60  ;;  %v5257_v24 = vrot.slane %v10425_v15, 2  ;;  %7729 = vmatprep.subr.bf16.mxu1 %v8174_v22  ;;  %v5189_v25 = vld [vmem:[#allocation2 + $0x90] sm:$0xff] }
 0x49c   : > { %5175 = vst [vmem:[#allocation2 + $0xa9] sm:$0xff] %v5153_v8  ;;  %6015 = vmatmul.mubr.bf16.gmra.mrb[36].mxu1 %v10449_v11  ;;  %v5228_v41 = vrot.slane %v10441_v62, 1  ;;  %v5229_v20 = vrot.slane %v5188_v52, 1  ;;  %v4418_v38 = vrot.slane %v4404_v23, %v10130_v44  ;;  %v5260_v47 = vrot.slane %v10441_v62, 2 }
 0x49d   : > { %v4419_v54 = vcombine.high %v4411_v35, %v4411_v35  ;;  %v6564_v19 = vrot.slane %v4411_v35, 9  ;;  %v4421_v1 = vcombine.high %v4149_v34, %v4149_v34  ;;  %v4428_v48 = vrot.slane %v4149_v34, %v10130_v44  ;;  %v5190_v34 = vld [vmem:[#allocation2 + $0x98] sm:$0x3] }
 0x49e   : > { %v10462_v3 = vsel %vm532_vm0, %v5225_v0, %v5226_v37  ;;  %v5258_v6 = vrot.slane %v10430_v45, 2  ;;  %7730 = vmatpush3.bf16.msra.mxu1 %v8175_v29  ;;  %v4420_v31 = vcombine.high %v4418_v38, %v4418_v38  ;;  %v6566_v40 = vrot.slane %v4418_v38, 9 }
 0x49f   : > { %v6565_v51 = vrot.slane %v4419_v54, 9  ;;  %v4750_v21 = vmax.f32 %v4411_v35, %v6564_v19  ;;  %7731 = vmatprep.subr.bf16.mxu1 %v8177_v50  ;;  %v4435_v2 = vrot.slane %v4421_v1, %v10130_v44  ;;  %v4436_v36 = vcombine.high %v4428_v48, %v4428_v48 }
 0x4a0   : > { %v6568_v33 = vrot.slane %v4428_v48, 9  ;;  %v5261_v7 = vrot.slane %v5188_v52, 2  ;;  %v6567_v26 = vrot.slane %v4420_v31, 9  ;;  %v4752_v59 = vmax.f32 %v4418_v38, %v6566_v40 }
 0x4a1   : > { %v4751_v39 = vmax.f32 %v4419_v54, %v6565_v51  ;;  %v10467_v14 = vsel %vm532_vm0, %v5228_v41, %v5229_v20  ;;  %v4437_v5 = vcombine.high %v4435_v2, %v4435_v2  ;;  %v6569_v32 = vrot.slane %v4436_v36, 9 }
 0x4a2   : > { %v6570_v53 = vrot.slane %v4435_v2, 9  ;;  %v4754_v49 = vmax.f32 %v4428_v48, %v6568_v33  ;;  %7732 = vmatpush3.bf16.msra.mxu1 %v8178_v16  ;;  %v4753_v45 = vmax.f32 %v4420_v31, %v6567_v26  ;;  %v5069_v46 = vrot.slane %v4750_v21, %v10135_v56 }
 0x4a3   : > { %v5073_v17 = vrot.slane %v4751_v39, %v10135_v56  ;;  %v5077_v44 = vrot.slane %v4752_v59, %v10135_v56  ;;  %7889 = vmatprep.subr.bf16.mxu1 %v10420_v42  ;;  %v6571_v57 = vrot.slane %v4437_v5, 9  ;;  %v4755_v22 = vmax.f32 %v4436_v36, %v6569_v32  ;;  %v5191_v35 = vld [vmem:[#allocation2 + $0xa8] sm:$0xff]  ;;  %v5192_v50 = vld [vmem:[#allocation2 + $0xb0] sm:$0x3] }
 0x4a4   : > { %v4756_v18 = vmax.f32 %v4435_v2, %v6570_v53  ;;  %v10474_v55 = vsel %vm645_vm1, %v5260_v47, %v5261_v7  ;;  %v5081_v60 = vrot.slane %v4753_v45, %v10135_v56  ;;  %v10480_v4 = vpack.c.bf16 %v10441_v62, %v10425_v15  ;;  %v8180_v45 = vld [vmem:[#allocation6 + $0x690] sm:$0xff]  }
 0x4a5   : > { %v5154_v52 = vsel %vm5098_vm2, %v5073_v17, %v5069_v46  ;;  %v5310_v0 = vpack.c.bf16 %v10467_v14, %v10462_v3  ;;  %v4757_v29 = vmax.f32 %v4437_v5, %v6571_v57  ;;  %v5085_v8 = vrot.slane %v4754_v49, %v10135_v56  ;;  %v5196_v57 = vld [vmem:[#allocation2 + $0xe0] sm:$0x3] }
 0x4a6   : > { %v5155_v37 = vsel %vm5100_vm3, %v5077_v44, %v5154_v52  ;;  %v5259_v23 = vsel %vm645_vm1, %v5257_v24, %v5258_v6  ;;  %v5089_v41 = vrot.slane %v4755_v22, %v10135_v56  ;;  %v5312_v38 = vpack.c.bf16 %v5189_v25, %v10441_v62  ;;  %v8182_v44 = vld [vmem:[#allocation6 + $0x6a0] sm:$0xff]  }
 0x4a7   : > { %v5156_v20 = vsel %vm5102_vm4, %v5081_v60, %v5155_v37  ;;  %v10490_v15 = vpack.c.bf16 %v10474_v55, %v5259_v23  ;;  %5957 = vmatprep.mubr.bf16.mxu0 %v5310_v0  ;;  %v5093_v54 = vrot.slane %v4756_v18, %v10135_v56  ;;  %v5097_v19 = vrot.slane %v4757_v29, %v10135_v56  ;;  %v8184_v60 = vld [vmem:[#allocation6 + $0x6b0] sm:$0xff]  }
 0x4a8   : > { %v5157_v1 = vsel %vm5104_vm5, %v5085_v8, %v5156_v20  ;;  %5958 = vmatmul.mubr.bf16.gmra.mrb[40].mxu0 %v10480_v4  ;;  %v5231_v24 = vrot.slane %v5189_v25, 1  ;;  %6022 = vmatprep.mubr.bf16.mxu1 %v5312_v38  ;;  %v5232_v47 = vrot.slane %v5190_v34, 1  ;;  %v5234_v6 = vrot.slane %v5191_v35, 1  ;;  %v6573_v38 = vld [vmem:[%s10604_s3 + $0x2] ss:$0 sm:$0xff] }
 0x4a9   : > { %v5158_v48 = vsel %vm5106_vm6, %v5089_v41, %v5157_v1  ;;  %v5235_v16 = vrot.slane %v5192_v50, 1  ;;  %6023 = vmatmul.mubr.bf16.gmra.mrb[40].mxu1 %v10490_v15  ;;  %v5266_v21 = vrot.slane %v5191_v35, 2  ;;  %v10506_v2 = vpack.c.bf16 %v5191_v35, %v5189_v25 }
 0x4aa   : > { %v5159_v31 = vsel %vm5108_vm7, %v5093_v54, %v5158_v48  ;;  %v5233_v51 = vsel %vm532_vm0, %v5231_v24, %v5232_v47  ;;  %v5267_v36 = vrot.slane %v5192_v50, 2  ;;  %v5302_v33 = vpack.c.bf16 %v10438_v28, %v10324_v30  ;;  %v8179_v30 = vld [vmem:[#allocation6 + $0x688] sm:$0xff]  }
 0x4ab   : > { %v5160_v62 = vsel %vm5110_vm8, %v5097_v19, %v5159_v31  ;;  %v10503_v56 = vsel %vm532_vm0, %v5234_v6, %v5235_v16  ;;  %v5263_v7 = vrot.slane %v5189_v25, 2  ;;  %v5264_v26 = vrot.slane %v5190_v34, 2 }
 0x4ac   : > { %5176 = vst [vmem:[#allocation2 + $0xc1] sm:$0xff] %v5160_v62  ;;  %v5316_v40 = vpack.c.bf16 %v10503_v56, %v5233_v51  ;;  %v5268_v39 = vsel %vm645_vm1, %v5266_v21, %v5267_v36  ;;  %v5301_v49 = vpack.c.bf16 %v10383_v9, %v10301_v10  ;;  %v5308_v28 = vpack.c.bf16 %v5259_v23, %v10407_v61  ;;  %v8181_v9 = vld [vmem:[#allocation6 + $0x698] sm:$0xff]  }
 0x4ad   : > { %v5265_v5 = vsel %vm645_vm1, %v5263_v7, %v5264_v26  ;;  %v5307_v10 = vpack.c.bf16 %v10462_v3, %v10386_v63  ;;  %v5290_v18 = vrot.slane %v5196_v57, 1  ;;  %v5294_v29 = vrot.slane %v5196_v57, 2 }
 0x4ae   : > { %5965 = vmatprep.mubr.bf16.mxu0 %v5316_v40  ;;  %v10516_v53 = vpack.c.bf16 %v5268_v39, %v5265_v5 }
 0x4af   : > { %v5295_v8 = vsel %vm645_vm1, %v5245_v13, %v5294_v29 }
 0x4b0   : > { %5966 = vmatmul.mubr.bf16.gmra.mrb[44].mxu0 %v10506_v2 }
 0x4b1   : > { %6071 = vmatprep.mubr.bf16.mxu0 %v5302_v33 }
 0x4b3   : > { %v10512_v59 = vld [vmem:[#allocation2 + $0xc0] sm:$0xff]  ;;  %v5194_v46 = vld [vmem:[#allocation2 + $0xc8] sm:$0x3] }
 0x4b4   : > { %v5318_v32 = vpack.c.bf16 %v10512_v59, %v5191_v35  ;;  %v5283_v61 = vrot.slane %v10512_v59, 2  ;;  %v5284_v17 = vrot.slane %v5194_v46, 2  ;;  %v5279_v3 = vrot.slane %v10512_v59, 1 }
 0x4b5   : > { %v5280_v22 = vrot.slane %v5194_v46, 1 }
 0x4b6   : > { %6030 = vmatprep.mubr.bf16.mxu1 %v5318_v32  ;;  %v5285_v63 = vsel %vm645_vm1, %v5283_v61, %v5284_v17 }
 0x4b7   : > { %6031 = vmatmul.mubr.bf16.gmra.mrb[44].mxu1 %v10516_v53  ;;  %v5281_v25 = vsel %vm532_vm0, %v5279_v3, %v5280_v22 }
 0x4b8   : > { %6136 = vmatprep.mubr.bf16.mxu1 %v10397_v58  ;;  %6072 = vmatmul.mubr.bf16.vlgmr.msra.gmra.mrb[48].mxu0 %v5301_v49  ;;  %v5314_v58 = vpack.c.bf16 %v5265_v5, %v10474_v55  ;;  %v5320_v55 = vpack.c.bf16 %v5285_v63, %v5268_v39 }
 0x4b9   : > { %6079 = vmatprep.mubr.bf16.mxu0 %v5308_v28  ;;  %7866 = vmatpush3.bf16.msra.mxu0 %v10420_v42 }
 0x4ba   : > { %7867 = vmatprep.subr.bf16.mxu0 %v8179_v30 }
 0x4bd   : > { %7868 = vmatpush3.bf16.msra.mxu0 %v8179_v30 }
 0x4be   : > { %7869 = vmatprep.subr.bf16.mxu0 %v8180_v45 }
 0x4bf   : > { %6137 = vmatmul.mubr.bf16.vlgmr.msra.gmra.mrb[48].mxu1 %v10392_v27  ;;  %v5313_v27 = vpack.c.bf16 %v5233_v51, %v10467_v14  ;;  %v5291_v14 = vsel %vm532_vm0, %v5213_v12, %v5290_v18  ;;  %v8190_v12 = vld [vmem:[#allocation2 + $0x198] sm:$0xff] }
 0x4c0   : > { %6144 = vmatprep.mubr.bf16.mxu1 %v5310_v0  ;;  %7897 = vmatpush3.bf16.msra.mxu1 %v10420_v42  ;;  %v8183_v42 = vld [vmem:[#allocation6 + $0x6a8] sm:$0xff]   ;;  %v5322_v52 = vpack.c.bf16 %v5291_v14, %v5281_v25  ;;  %v8185_v0 = vld [vmem:[#allocation6 + $0x6b8] sm:$0xff]   ;;  %v5321_v37 = vpack.c.bf16 %v8190_v12, %v10512_v59 }
 0x4c1   : > { %6080 = vmatmul.mubr.bf16.gmra.mrb[52].mxu0 %v5307_v10  ;;  %7890 = vmatprep.subr.bf16.mxu1 %v8179_v30 }
 0x4c2   : > { %6087 = vmatprep.mubr.bf16.mxu0 %v5314_v58  ;;  %7870 = vmatpush3.bf16.msra.mxu0 %v8180_v45 }
 0x4c3   : > { %7871 = vmatprep.subr.bf16.mxu0 %v8181_v9 }
 0x4c4   : > { %7898 = vmatpush3.bf16.msra.mxu1 %v8179_v30 }
 0x4c5   : > { %7891 = vmatprep.subr.bf16.mxu1 %v8180_v45 }
 0x4c6   : > { %7872 = vmatpush3.bf16.msra.mxu0 %v8181_v9 }
 0x4c7   : > { %6145 = vmatmul.mubr.bf16.gmra.mrb[52].mxu1 %v10480_v4  ;;  %7873 = vmatprep.subr.bf16.mxu0 %v8182_v44  ;;  %v5319_v4 = vpack.c.bf16 %v5281_v25, %v10503_v56 }
 0x4c8   : > { %6152 = vmatprep.mubr.bf16.mxu1 %v5316_v40  ;;  %7899 = vmatpush3.bf16.msra.mxu1 %v8180_v45 }
 0x4c9   : > { %6088 = vmatmul.mubr.bf16.gmra.mrb[56].mxu0 %v5313_v27  ;;  %7892 = vmatprep.subr.bf16.mxu1 %v8181_v9 }
 0x4ca   : > { %6095 = vmatprep.mubr.bf16.mxu0 %v5320_v55  ;;  %7874 = vmatpush3.bf16.msra.mxu0 %v8182_v44 }
 0x4cb   : > { %7875 = vmatprep.subr.bf16.mxu0 %v8183_v42 }
 0x4cc   : > { %7900 = vmatpush3.bf16.msra.mxu1 %v8181_v9 }
 0x4cd   : > { %7893 = vmatprep.subr.bf16.mxu1 %v8182_v44 }
 0x4ce   : > { %7876 = vmatpush3.bf16.msra.mxu0 %v8183_v42 }
 0x4cf   : > { %6153 = vmatmul.mubr.bf16.gmra.mrb[56].mxu1 %v10506_v2  ;;  %7877 = vmatprep.subr.bf16.mxu0 %v8184_v60 }
 0x4d0   : > { %6160 = vmatprep.mubr.bf16.mxu1 %v5322_v52  ;;  %7901 = vmatpush3.bf16.msra.mxu1 %v8182_v44 }
 0x4d1   : > { %6096 = vmatmul.mubr.bf16.gmra.mrb[60].mxu0 %v5319_v4  ;;  %7894 = vmatprep.subr.bf16.mxu1 %v8183_v42 }
 0x4d2   : > { %7878 = vmatpush3.bf16.msra.mxu0 %v8184_v60  ;;  %7881 = vmatprep.mubr.bf16.mxu0 %v10449_v11  ;;  %v5323_v11 = vpack.c.bf16 %v5295_v8, %v5285_v63 }
 0x4d3   : > { %7879 = vmatprep.subr.bf16.mxu0 %v8185_v0 }
 0x4d4   : > { %7902 = vmatpush3.bf16.msra.mxu1 %v8183_v42 }
 0x4d5   : > { %7895 = vmatprep.subr.bf16.mxu1 %v8184_v60 }
 0x4d6   : > { %7880 = vmatpush3.bf16.msra.mxu0 %v8185_v0 }
 0x4d7   : > { %6161 = vmatmul.mubr.bf16.gmra.mrb[60].mxu1 %v5321_v37 }
 0x4d8   : > { %7903 = vmatpush3.bf16.msra.mxu1 %v8184_v60  ;;  %7885 = vmatprep.mubr.bf16.mxu1 %v10516_v53 }
 0x4d9   : > { %7882 = vmatmul.mubr.bf16.vlgmr.msra.gmra.mrb[64].mxu0 %v10490_v15  ;;  %7896 = vmatprep.subr.bf16.mxu1 %v8185_v0 }
 0x4dc   : > { %7904 = vmatpush3.bf16.msra.mxu1 %v8185_v0 }
 0x4df   : > { %7886 = vmatmul.mubr.bf16.vlgmr.msra.gmra.mrb[64].mxu1 %v5323_v11 }
 0x54b   : > { %v7613_v23 = vpop.f32.mrb[32].mxu0 }
 0x54c   : > { %v7614_v35 = vpop.f32.mrb[33].mxu0 }
 0x54d   : > { %v7615_v34 = vadd.f32 %v7614_v35, %v7613_v23  ;;  %v7616_v50 = vpop.f32.mrb[34].mxu0 }
 0x54e   : > { %v7617_v41 = vpop.f32.mrb[35].mxu0 }
 0x54f   : > { %v7618_v20 = vadd.f32 %v7617_v41, %v7616_v50  ;;  %v5944_v19 = vadd.f32 %v7615_v34, %v6573_v38 }
 0x551   : > { %v5947_v13 = vadd.f32 %v7618_v20, %v6573_v38 }
 0x558   : > { %v7653_v54 = vpop.f32.mrb[32].mxu1 }
 0x559   : > { %v7654_v15 = vpop.f32.mrb[33].mxu1 }
 0x55a   : > { %v7655_v1 = vadd.f32 %v7654_v15, %v7653_v54  ;;  %v7656_v43 = vpop.f32.mrb[34].mxu1 }
 0x55b   : > { %v7657_v24 = vpop.f32.mrb[35].mxu1 }
 0x55c   : > { %v6009_v48 = vadd.f32 %v7655_v1, %v5944_v19  ;;  %v7658_v47 = vadd.f32 %v7657_v24, %v7656_v43 }
 0x55e   : > { %v6012_v6 = vadd.f32 %v7658_v47, %v5947_v13 }
 0x564   : > { %v7619_v16 = vpop.f32.mrb[36].mxu0 }
 0x565   : > { %v7620_v31 = vpop.f32.mrb[37].mxu0 }
 0x566   : > { %v7621_v62 = vadd.f32 %v7620_v31, %v7619_v16  ;;  %v7622_v51 = vpop.f32.mrb[38].mxu0 }
 0x567   : > { %v7623_v56 = vpop.f32.mrb[39].mxu0 }
 0x568   : > { %v7624_v40 = vadd.f32 %v7623_v56, %v7622_v51  ;;  %v5952_v36 = vadd.f32 %v7621_v62, %v6573_v38 }
 0x56a   : > { %v5955_v39 = vadd.f32 %v7624_v40, %v6573_v38 }
 0x56f   : > { %v7659_v21 = vpop.f32.mrb[36].mxu1 }
 0x570   : > { %v7660_v2 = vpop.f32.mrb[37].mxu1 }
 0x571   : > { %v7661_v33 = vadd.f32 %v7660_v2, %v7659_v21  ;;  %v7662_v7 = vpop.f32.mrb[38].mxu1 }
 0x572   : > { %v7663_v26 = vpop.f32.mrb[39].mxu1 }
 0x573   : > { %v6017_v59 = vadd.f32 %v7661_v33, %v5952_v36  ;;  %v7664_v5 = vadd.f32 %v7663_v26, %v7662_v7 }
 0x575   : > { %v6020_v32 = vadd.f32 %v7664_v5, %v5955_v39 }
 0x57b   : > { %v7625_v53 = vpop.f32.mrb[40].mxu0 }
 0x57c   : > { %v7626_v49 = vpop.f32.mrb[41].mxu0  ;;  %v7665_v45 = vpop.f32.mrb[40].mxu1 }
 0x57d   : > { %v7627_v30 = vadd.f32 %v7626_v49, %v7625_v53  ;;  %v7628_v28 = vpop.f32.mrb[42].mxu0  ;;  %v7666_v10 = vpop.f32.mrb[41].mxu1 }
 0x57e   : > { %v7629_v46 = vpop.f32.mrb[43].mxu0  ;;  %v7667_v61 = vadd.f32 %v7666_v10, %v7665_v45  ;;  %v7668_v17 = vpop.f32.mrb[42].mxu1 }
 0x57f   : > { %v5960_v9 = vadd.f32 %v7627_v30, %v6573_v38  ;;  %v7630_v58 = vadd.f32 %v7629_v46, %v7628_v28  ;;  %v7669_v44 = vpop.f32.mrb[43].mxu1 }
 0x580   : > { %v7670_v27 = vadd.f32 %v7669_v44, %v7668_v17 }
 0x581   : > { %v5963_v57 = vadd.f32 %v7630_v58, %v6573_v38  ;;  %v6025_v63 = vadd.f32 %v7667_v61, %v5960_v9 }
 0x583   : > { %v6028_v42 = vadd.f32 %v7670_v27, %v5963_v57  ;;  %v7631_v3 = vpop.f32.mrb[44].mxu0 }
 0x584   : > { %v7632_v22 = vpop.f32.mrb[45].mxu0 }
 0x585   : > { %v7633_v18 = vadd.f32 %v7632_v22, %v7631_v3  ;;  %v7634_v55 = vpop.f32.mrb[46].mxu0 }
 0x586   : > { %v7635_v25 = vpop.f32.mrb[47].mxu0 }
 0x587   : > { %v7636_v14 = vadd.f32 %v7635_v25, %v7634_v55  ;;  %v5968_v0 = vadd.f32 %v7633_v18, %v6573_v38 }
 0x589   : > { %v5971_v35 = vadd.f32 %v7636_v14, %v6573_v38 }
 0x58a   : > { %v7671_v60 = vpop.f32.mrb[44].mxu1 }
 0x58b   : > { %v7672_v52 = vpop.f32.mrb[45].mxu1  ;;  %v7693_v4 = vpop.f32.mrb[48].mxu0 }
 0x58c   : > { %v7673_v12 = vadd.f32 %v7672_v52, %v7671_v60  ;;  %v7674_v37 = vpop.f32.mrb[46].mxu1  ;;  %v7694_v29 = vpop.f32.mrb[49].mxu0 }
 0x58d   : > { %v7675_v8 = vpop.f32.mrb[47].mxu1  ;;  %v7695_v11 = vadd.f32 %v7694_v29, %v7693_v4  ;;  %v7696_v23 = vpop.f32.mrb[50].mxu0 }
 0x58e   : > { %v6033_v34 = vadd.f32 %v7673_v12, %v5968_v0  ;;  %v7676_v50 = vadd.f32 %v7675_v8, %v7674_v37  ;;  %v7697_v41 = vpop.f32.mrb[51].mxu0 }
 0x58f   : > { %v6074_v20 = vadd.f32 %v7695_v11, %v6009_v48  ;;  %v7698_v54 = vadd.f32 %v7697_v41, %v7696_v23 }
 0x590   : > { %v6036_v15 = vadd.f32 %v7676_v50, %v5971_v35 }
 0x591   : > { %v6077_v19 = vadd.f32 %v7698_v54, %v6012_v6 }
 0x592   : > { %v7733_v1 = vpop.f32.mrb[48].mxu1 }
 0x593   : > { %v7734_v43 = vpop.f32.mrb[49].mxu1 }
 0x594   : > { %v7735_v24 = vadd.f32 %v7734_v43, %v7733_v1  ;;  %v7736_v13 = vpop.f32.mrb[50].mxu1  ;;  %v7699_v47 = vpop.f32.mrb[52].mxu0 }
 0x595   : > { %v7737_v16 = vpop.f32.mrb[51].mxu1  ;;  %v7700_v31 = vpop.f32.mrb[53].mxu0 }
 0x596   : > { %v7738_v62 = vadd.f32 %v7737_v16, %v7736_v13  ;;  %v7701_v51 = vadd.f32 %v7700_v31, %v7699_v47  ;;  %v7702_v56 = vpop.f32.mrb[54].mxu0  ;;  %v6139_v40 = vadd.f32 %v7735_v24, %v6074_v20 }
 0x597   : > { %v7703_v21 = vpop.f32.mrb[55].mxu0 }
 0x598   : > { %v6082_v38 = vadd.f32 %v7701_v51, %v6017_v59  ;;  %v7704_v2 = vadd.f32 %v7703_v21, %v7702_v56  ;;  %v6142_v36 = vadd.f32 %v7738_v62, %v6077_v19 }
 0x59a   : > { %v6085_v33 = vadd.f32 %v7704_v2, %v6020_v32  ;;  %v7739_v48 = vpop.f32.mrb[52].mxu1 }
 0x59b   : > { %v7740_v7 = vpop.f32.mrb[53].mxu1 }
 0x59c   : > { %v7741_v26 = vadd.f32 %v7740_v7, %v7739_v48  ;;  %v7742_v6 = vpop.f32.mrb[54].mxu1  ;;  %v7705_v39 = vpop.f32.mrb[56].mxu0 }
 0x59d   : > { %v7743_v5 = vpop.f32.mrb[55].mxu1  ;;  %v7706_v53 = vpop.f32.mrb[57].mxu0 }
 0x59e   : > { %v7744_v49 = vadd.f32 %v7743_v5, %v7742_v6  ;;  %v7707_v30 = vadd.f32 %v7706_v53, %v7705_v39  ;;  %v7708_v28 = vpop.f32.mrb[58].mxu0  ;;  %v6147_v45 = vadd.f32 %v7741_v26, %v6082_v38 }
 0x59f   : > { %v7709_v46 = vpop.f32.mrb[59].mxu0 }
 0x5a0   : > { %v6090_v10 = vadd.f32 %v7707_v30, %v6025_v63  ;;  %v7710_v9 = vadd.f32 %v7709_v46, %v7708_v28  ;;  %v6150_v58 = vadd.f32 %v7744_v49, %v6085_v33 }
 0x5a2   : > { %v6093_v61 = vadd.f32 %v7710_v9, %v6028_v42  ;;  %v7745_v59 = vpop.f32.mrb[56].mxu1 }
 0x5a3   : > { %v7746_v17 = vpop.f32.mrb[57].mxu1 }
 0x5a4   : > { %v7747_v44 = vadd.f32 %v7746_v17, %v7745_v59  ;;  %v7748_v32 = vpop.f32.mrb[58].mxu1  ;;  %v7711_v57 = vpop.f32.mrb[60].mxu0 }
 0x5a5   : > { %v7749_v27 = vpop.f32.mrb[59].mxu1  ;;  %v7712_v3 = vpop.f32.mrb[61].mxu0 }
 0x5a6   : > { %v7750_v22 = vadd.f32 %v7749_v27, %v7748_v32  ;;  %v7713_v18 = vadd.f32 %v7712_v3, %v7711_v57  ;;  %v7714_v55 = vpop.f32.mrb[62].mxu0  ;;  %v6155_v25 = vadd.f32 %v7747_v44, %v6090_v10 }
 0x5a7   : > { %v7715_v14 = vpop.f32.mrb[63].mxu0 }
 0x5a8   : > { %v6098_v60 = vadd.f32 %v7713_v18, %v6033_v34  ;;  %v7716_v52 = vadd.f32 %v7715_v14, %v7714_v55  ;;  %v6158_v4 = vadd.f32 %v7750_v22, %v6093_v61 }
 0x5aa   : > { %v6101_v63 = vadd.f32 %v7716_v52, %v6036_v15  ;;  %v7751_v0 = vpop.f32.mrb[60].mxu1 }
 0x5ab   : > { %v7752_v12 = vpop.f32.mrb[61].mxu1 }
 0x5ac   : > { %v7753_v42 = vadd.f32 %v7752_v12, %v7751_v0  ;;  %v7754_v37 = vpop.f32.mrb[62].mxu1  ;;  %v7883_v29 = vpop.f32.mrb[64].mxu0 }
 0x5ad   : > { %v7755_v8 = vpop.f32.mrb[63].mxu1  ;;  %v6212_v11 = vadd.f32 %v7883_v29, %v6147_v45  ;;  %v6203_v23 = vpop.f32.mrb[65].mxu0 }
 0x5ae   : > { %v7756_v35 = vadd.f32 %v7755_v8, %v7754_v37  ;;  %v6204_v50 = vadd.f32 %v6203_v23, %v6139_v40  ;;  %v7884_v41 = vpop.f32.mrb[66].mxu0  ;;  %v6163_v20 = vadd.f32 %v7753_v42, %v6098_v60 }
 0x5af   : > { %v6236_v54 = vmax.f32 %v6212_v11, 0.0  ;;  %v6215_v19 = vadd.f32 %v7884_v41, %v6150_v58  ;;  %v6206_v1 = vpop.f32.mrb[67].mxu0 }
 0x5b0   : > { %v6234_v34 = vmax.f32 %v6204_v50, 0.0  ;;  %v6207_v43 = vadd.f32 %v6206_v1, %v6142_v36  ;;  %v6166_v15 = vadd.f32 %v7756_v35, %v6101_v63 }
 0x5b1   : > { %6244 = vst [vmem:[%s230_s25 + $0x10] sm:$0xff] %v6236_v54  ;;  %v6237_v24 = vmax.f32 %v6215_v19, 0.0 }
 0x5b2   : > { %6242 = vst [vmem:[%s230_s25] sm:$0xff] %v6234_v34  ;;  %v6235_v13 = vmax.f32 %v6207_v43, 0.0  ;;  %v7887_v47 = vpop.f32.mrb[64].mxu1 }
 0x5b3   : > { %6245 = vst [vmem:[%s230_s25 + $0x18] sm:$0xff] %v6237_v24  ;;  %v6228_v16 = vadd.f32 %v7887_v47, %v6163_v20  ;;  %v6219_v31 = vpop.f32.mrb[65].mxu1 }
 0x5b4   : > { %6243 = vst [vmem:[%s230_s25 + $0x8] sm:$0xff] %v6235_v13  ;;  %v6220_v62 = vadd.f32 %v6219_v31, %v6155_v25  ;;  %v7888_v51 = vpop.f32.mrb[66].mxu1 }
 0x5b5   : > { %v6240_v56 = vmax.f32 %v6228_v16, 0.0  ;;  %v6231_v40 = vadd.f32 %v7888_v51, %v6166_v15  ;;  %v6222_v21 = vpop.f32.mrb[67].mxu1 }
 0x5b6   : > { %v6238_v38 = vmax.f32 %v6220_v62, 0.0  ;;  %v6223_v2 = vadd.f32 %v6222_v21, %v6158_v4 }
 0x5b7   : > { %6248 = vst [vmem:[%s230_s25 + $0x30] sm:$0xff] %v6240_v56  ;;  %v6241_v36 = vmax.f32 %v6231_v40, 0.0 }
 0x5b8   : > { %6246 = vst [vmem:[%s230_s25 + $0x20] sm:$0xff] %v6238_v38  ;;  %v6239_v33 = vmax.f32 %v6223_v2, 0.0 }
 0x5b9   : > { %6249 = vst [vmem:[%s230_s25 + $0x38] sm:$0xff] %v6241_v36 }
 0x5ba   : > { %6247 = vst [vmem:[%s230_s25 + $0x28] sm:$0xff] %v6239_v33 }
 0x5bb   : > { %8262 = shalt.err (!%p8259_p7)
}
 0x5bc   : > { %s8263_s10 = scalar_lea.hbm %s10557_s21, 1024  ;;  %s8267_s7 = scalar_lea.hbm %s10605_s4, 2048 }
 0x5bd   : > { %p8264_p9 = scmp.ne.s32.totalorder %s10557_s21, %s8263_s10  ;;  %p8268_p5 = scmp.lt.u32.totalorder %s10557_s21, %s10605_s4 }
 0x5be   : > { %p8269_p11 = scmp.lt.u32.totalorder %s8267_s7, %s8263_s10  ;;  %p8271_p4 = scmp.lt.u32.totalorder %s8263_s10, %s10557_s21 }
 0x5bf   : > { %p8265_p2 = pnand %p8264_p9, %p8449_p12 }
 0x5c0   : > { %p8270_p1 = por %p8269_p11, %p8268_p5 }
 0x5c1   : > { %p8266_p0 = pneg %p8265_p2 }
 0x5c2   : > { %p8272_p6 = por %p8271_p4, %p8270_p1 }
 0x5c4   : > { %p8273_p8 = pnand %p8272_p6, %p8266_p0 }
 0x5c6   : > { %8276 = shalt.err (!%p8273_p8)
}
 0x5c7   : > { %s8331_s25 = smov 128   ;;  %s8332_s13 = smov 8  }
 0x5c8   : > { %7911 = dma.vmem_to_hbm [thread:$0]  (%p8449_p12), %s10552_s11, 1024, %s10557_s21, %s6251_s19, %s8331_s25, %s8331_s25, %s8332_s13  }
 0x5c9 PF: > { %s6279_s14 = sand.u32 1, %s8307_s15   ;;  %p10651_p10 = scmp.ne.s32.totalorder %s10616_s22, 0 }
 0x5ca   : > { %p10652_p13 = scmp.ge.s32.totalorder %s8319_s18, 2  ;;  %s6280_s20 = scalar_lea.sflag [#allocation5], %s6279_s14 }
 0x5cc   : > { %p7922_p3 = pnand %p10652_p13, %p10651_p10 }
 0x5ce   : > { %8302 = dma.done.wait (!%p7922_p3), %s6280_s20, 1024  }
 0x5cf   : > { %8304 = vsyncadd (!%p7922_p3), %s6280_s20, 4294966272  ;;  %p18_p7 = scmp.ge.s32.totalorder %s8414_s27, 4   ;;  %s10653_s15 = smov %s8311_s16 }
 0x5d0   : > { %s10654_s16 = smov %s8315_s17  ;;  %s10655_s17 = smov %s8445_s24 }
 0x5d1   : > { %s10656_s18 = smov %s8414_s27  ;;  %20 = sbr.rel (!%p18_p7) target bundleno = 6 (0x6), region = 91 }
 0x5d8   :  { %6285 = vsyncpa [#allocation4], 1 }
 0x5d9   :  { %6287 = vsyncpa [#allocation4 + $0x1], 1 }
 0x5da   :  { %6288 = vsyncpa [#allocation7], 1 }
 0x5db   :  { %6289 = vsyncpa [#allocation5], 1 }
 0x5dc   :  { %6291 = vsyncpa [#allocation5 + $0x1], 1 }

</bundles_post_ra>
